<compile_context>
chip_gen: v7x
topology: tpu7x:2x2x1
jax: 0.10.0
libtpu: 0.0.40
codegen_flags: <defaults>
</compile_context>

<pallas_src>
import functools

import numpy as np
import jax
import jax.numpy as jnp
from jax.experimental import pallas as pl
from jax.experimental.pallas import tpu as pltpu


# ---------------------------------------------------------------------------
# Host-side construction of the small constant operator matrices.
# (Params are closure constants under jit, so this is constant-folded.)
# ---------------------------------------------------------------------------
def _band_weights(w, W):
    """Conv weights (3,3,Cin,Cout) -> block-banded A (3, W*Cin, W*Cout).

    A[kh][w'*Cin+ci, w*Cout+co] = w[kh, w'-w+1, ci, co] if 0 <= w'-w+1 < 3 else 0,
    i.e. (row h+kh-1 of the slab) @ A[kh] applies the kw taps + zero 'same'
    padding in W.  w[kh, kw, ci, co] == torch_weight[co, ci, kh, kw].
    """
    KH, KW, Cin, Cout = w.shape
    wp = np.arange(W)[:, None]          # input  column block (w')
    wq = np.arange(W)[None, :]          # output column block (w)
    kw = wp - wq + 1                    # tap index, shape (W, W)
    valid = (kw >= 0) & (kw < KW)
    kwc = np.clip(kw, 0, KW - 1)
    blocks = w[:, kwc] * jnp.asarray(valid, w.dtype)[None, :, :, None, None]
    # (3, W, W, Cin, Cout) -> (3, W, Cin, W, Cout) -> (3, W*Cin, W*Cout)
    return blocks.transpose(0, 1, 3, 2, 4).reshape(KH, W * Cin, W * Cout)


def _col_pool_group_index(W, C):
    """Old-column indices s.t. new columns = [even-w channel blocks | odd-w blocks]."""
    Wo = W // 2
    idx = np.empty((W * C,), np.int32)
    for wo in range(Wo):
        for c in range(C):
            idx[wo * C + c] = (2 * wo) * C + c
            idx[Wo * C + wo * C + c] = (2 * wo + 1) * C + c
    return idx


def _pick_batch_tile(B, H, rows_cap=128):
    """Images per grid step: target Bt*H ~= 128 MXU rows (vreg-pressure cap),
    while keeping >= 2 grid steps when possible (v7x has 2 TensorCores)."""
    cap = max(1, rows_cap // H)
    best = 1
    for bt in range(1, min(cap, B) + 1):
        if B % bt != 0:
            continue
        if B >= 2 and B // bt < 2:
            continue
        best = bt
    return best


# ---------------------------------------------------------------------------
# Fused kernel: conv3x3+ReLU -> conv3x3+ReLU -> maxpool2x2, Bt images per step.
# ---------------------------------------------------------------------------
def _conv3x3_relu(act, z_ref, a_ref, b_ref):
    """act: (Bt, H, W*Cin) f32.  One MXU matmul per conv (kh taps fused into K).

    z_ref is a (Bt, H+2, 3*W*Cin) bf16 staging scratch.  The three kh taps are
    written side-by-side in lanes at row offsets 2/1/0, so reading the window
    rows 1..H yields X3[h] = [act[h-1] | act[h] | act[h+1]] with zero rows at
    the per-image 'same' padding boundaries.  Only static sub-window ld/st.
    """
    Bt, H, WC = act.shape
    a16 = act.astype(z_ref.dtype)
    zrow = jnp.zeros((Bt, 1, WC), z_ref.dtype)
    z_ref[:, 1:2, 0:WC] = zrow                       # act[-1]  -> 0  (top pad)
    z_ref[:, 2:H + 2, 0:WC] = a16                    # kh=0: act[h-1]
    z_ref[:, 1:H + 1, WC:2 * WC] = a16               # kh=1: act[h]
    z_ref[:, 0:H, 2 * WC:3 * WC] = a16               # kh=2: act[h+1]
    z_ref[:, H:H + 1, 2 * WC:3 * WC] = zrow          # act[H]   -> 0  (bottom pad)

    x3 = z_ref[:, 1:H + 1, :].reshape(Bt * H, 3 * WC)            # (Bt*H, 3*WC) bf16
    y = jnp.dot(x3, a_ref[...], preferred_element_type=jnp.float32)  # MXU, f32 acc
    y = jnp.maximum(y + b_ref[...], 0.0)                          # bias+ReLU, f32 VPU
    return y.reshape(Bt, H, a_ref.shape[1])


def _fused_vgg_block_kernel(x_ref, a1_ref, b1_ref, a2_ref, b2_ref, o_ref,
                            z1_ref, z2_ref):
    x = x_ref[...]                                   # (Bt, H, W*Cin) f32
    Bt, H, _ = x.shape

    y1 = _conv3x3_relu(x, z1_ref, a1_ref, b1_ref)    # (Bt, H, W*C1)
    y2 = _conv3x3_relu(y1, z2_ref, a2_ref, b2_ref)   # (Bt, H, W*C2), cols = [even-w | odd-w]

    # 2x2 max pool.  W direction: conv2's columns were pre-grouped, so it is a
    # single aligned lane-half max.  H direction: Ho adjacent-row maxes stored
    # directly into the 128-lane-dense output block.
    half = y2.shape[-1] // 2
    wp = jnp.maximum(y2[..., :half], y2[..., half:])  # (Bt, H, Wo*C2)
    Ho = H // 2
    for r in range(Ho):
        o_ref[:, r:r + 1, :] = jnp.maximum(
            wp[:, 2 * r:2 * r + 1, :],
            wp[:, 2 * r + 1:2 * r + 2, :]).astype(o_ref.dtype)


# ---------------------------------------------------------------------------
# Pretrained_network.forward equivalent (public wrapper, NCHW in / NCHW out).
# ---------------------------------------------------------------------------
def pretrained_network_forward(x_nchw, params):
    w1, b1 = params["w1"], params["b1"]
    w2, b2 = params["w2"], params["b2"]
    B, Cin, H, W = x_nchw.shape
    C1, C2 = int(w1.shape[-1]), int(w2.shape[-1])
    # TODO(synk): odd spatial dims (torch MaxPool2d floor behaviour) not handled.
    assert H % 2 == 0 and W % 2 == 0, (H, W)
    Ho, Wo = H // 2, W // 2

    # NCHW -> NHWC -> (B, H, W*Cin) lane-major slab (layout plumbing only).
    x = jnp.transpose(x_nchw, (0, 2, 3, 1)).astype(jnp.float32).reshape(B, H, W * Cin)

    # Constant operator matrices; kh taps stacked along K so each conv is ONE
    # (Bt*H, 3*W*Cin) @ (3*W*Cin, W*Cout) matmul.  Stored in bf16: halves the
    # dominant constant DMA and enables bf16 MXU (f32 accumulate).
    A1 = _band_weights(w1.astype(jnp.float32), W).reshape(3 * W * Cin, W * C1)
    A2 = _band_weights(w2.astype(jnp.float32), W)
    cperm = _col_pool_group_index(W, C2)
    A2 = A2[:, :, cperm].reshape(3 * W * C1, W * C2)   # fold W-pool grouping into columns
    A1 = A1.astype(jnp.bfloat16)
    A2 = A2.astype(jnp.bfloat16)
    b1r = jnp.tile(b1.astype(jnp.float32), W)[None, :]           # (1, W*C1)
    b2r = jnp.tile(b2.astype(jnp.float32), W)[cperm][None, :]    # (1, W*C2)

    Bt = _pick_batch_tile(B, H)       # M = Bt*H rows per matmul (<=128), >=2 steps if B>=2
    steps = B // Bt

    out = pl.pallas_call(
        _fused_vgg_block_kernel,
        out_shape=jax.ShapeDtypeStruct((B, Ho, Wo * C2), jnp.float32),
        grid_spec=pltpu.PrefetchScalarGridSpec(
            num_scalar_prefetch=0,
            grid=(steps,),
            in_specs=[
                pl.BlockSpec((Bt, H, W * Cin), lambda i: (i, 0, 0)),
                pl.BlockSpec((3 * W * Cin, W * C1), lambda i: (0, 0)),
                pl.BlockSpec((1, W * C1), lambda i: (0, 0)),
                pl.BlockSpec((3 * W * C1, W * C2), lambda i: (0, 0)),
                pl.BlockSpec((1, W * C2), lambda i: (0, 0)),
            ],
            out_specs=pl.BlockSpec((Bt, Ho, Wo * C2), lambda i: (i, 0, 0)),
            scratch_shapes=[
                pltpu.VMEM((Bt, H + 2, 3 * W * Cin), jnp.bfloat16),  # conv1 tap staging
                pltpu.VMEM((Bt, H + 2, 3 * W * C1), jnp.bfloat16),   # conv2 tap staging
            ],
        ),
        compiler_params=pltpu.CompilerParams(
            dimension_semantics=("parallel",)),      # shards steps across TCs on v7x
    )(x, A1, b1r, A2, b2r)

    out = out.reshape(B, Ho, Wo, C2)
    return jnp.transpose(out, (0, 3, 1, 2))          # NHWC -> NCHW (torch convention)


# ---------------------------------------------------------------------------
# Pure-JAX reference (mirrors torch Conv2d/ReLU/MaxPool2d semantics) + params.
# quantize=True emulates the kernel's bf16 matmul operands (f32 accumulate).
# ---------------------------------------------------------------------------
def _reference_forward(x_nchw, params, quantize=False):
    if quantize:
        q = lambda a: a.astype(jnp.bfloat16).astype(jnp.float32)
    else:
        q = lambda a: a.astype(jnp.float32)
    x = jnp.transpose(x_nchw, (0, 2, 3, 1)).astype(jnp.float32)

    def conv3x3_relu(x, w, b):
        B, H, W, _ = x.shape
        xp = jnp.pad(q(x), ((0, 0), (1, 1), (1, 1), (0, 0)))
        wq = q(w)
        acc = jnp.zeros(x.shape[:3] + (w.shape[-1],), jnp.float32) + b.astype(jnp.float32)
        for kh in range(3):
            for kw in range(3):
                acc = acc + jnp.einsum('bhwc,cd->bhwd',
                                       xp[:, kh:kh + H, kw:kw + W, :], wq[kh, kw],
                                       precision=jax.lax.Precision.HIGHEST)
        return jnp.maximum(acc, 0.0)

    y = conv3x3_relu(x, params["w1"], params["b1"])
    y = conv3x3_relu(y, params["w2"], params["b2"])
    B, H, W, C = y.shape
    y = y.reshape(B, H // 2, 2, W // 2, 2, C).max(axis=(2, 4))
    return jnp.transpose(y, (0, 3, 1, 2))


def init_params(key):
    k1, k2, k3, k4 = jax.random.split(key, 4)
    return {
        "w1": 0.1 * jax.random.normal(k1, (3, 3, 4, 8), jnp.float32),
        "b1": 0.1 * jax.random.normal(k2, (8,), jnp.float32),
        "w2": 0.1 * jax.random.normal(k3, (3, 3, 8, 16), jnp.float32),
        "b2": 0.1 * jax.random.normal(k4, (16,), jnp.float32),
    }


if __name__ == "__main__":
    key = jax.random.PRNGKey(0)
    kx, kp = jax.random.split(key)
    params = init_params(kp)

    # Small shapes consistent with the module: channels=4, spatial=16.
    # batch=16 so the batched path is exercised: 2 grid steps of 8 images each
    # (M = 128 matmul rows per step, >=2 steps for v7x's two TensorCores).
    B, Cin, H, W = 16, 4, 16, 16
    x = jax.random.normal(kx, (B, Cin, H, W), jnp.float32)   # NCHW

    fwd = jax.jit(functools.partial(pretrained_network_forward, params=params))
    out = fwd(x)
    jax.block_until_ready(out)

    assert out.shape == (B, 16, H // 2, W // 2), out.shape
    assert bool(jnp.all(jnp.isfinite(out)))

    # Tight structural check vs a reference that applies the same bf16
    # quantization of the matmul operands (f32 accumulation).
    ref_q = _reference_forward(x, params, quantize=True)
    err_q = float(jnp.max(jnp.abs(out - ref_q)))
    assert err_q < 2e-2, f"max abs error vs bf16-emulating reference: {err_q}"

    # Looser sanity check vs the pure-f32 torch-semantics reference
    # (difference is just bf16 quantization noise of the conv operands).
    ref32 = _reference_forward(x, params, quantize=False)
    err32 = float(jnp.max(jnp.abs(out - ref32)))
    assert err32 < 5e-2, f"max abs error vs f32 reference: {err32}"

    print("KERNEL_OK")
</pallas_src>

<mosaic_0001>
module attributes {stable_mosaic.version = 11 : i64} {
  func.func @_fused_vgg_block_kernel(%arg0: i32, %arg1: memref<8x16x64xf32, #tpu.memory_space<vmem>>, %arg2: memref<192x128xbf16, #tpu.memory_space<vmem>>, %arg3: memref<1x128xf32, #tpu.memory_space<vmem>>, %arg4: memref<384x256xbf16, #tpu.memory_space<vmem>>, %arg5: memref<1x256xf32, #tpu.memory_space<vmem>>, %arg6: memref<8x8x128xf32, #tpu.memory_space<vmem>>, %arg7: memref<8x18x192xbf16, #tpu.memory_space<vmem>>, %arg8: memref<8x18x384xbf16, #tpu.memory_space<vmem>>) attributes {dimension_semantics = [#tpu.dimension_semantics<parallel>], iteration_bounds = array<i64: 2>, scalar_prefetch = 0 : i64, scratch_operands = 2 : i64, tpu.core_type = #tpu.core_type<tc>, window_params = [{transform_indices = @transform_0, window_bounds = array<i64: 8, 16, 64>}, {pipeline_mode = #tpu.pipeline_mode<synchronous>, transform_indices = @transform_1, window_bounds = array<i64: 192, 128>}, {pipeline_mode = #tpu.pipeline_mode<synchronous>, transform_indices = @transform_2, window_bounds = array<i64: 1, 128>}, {pipeline_mode = #tpu.pipeline_mode<synchronous>, transform_indices = @transform_3, window_bounds = array<i64: 384, 256>}, {pipeline_mode = #tpu.pipeline_mode<synchronous>, transform_indices = @transform_4, window_bounds = array<i64: 1, 256>}, {transform_indices = @transform_5, window_bounds = array<i64: 8, 8, 128>}]} {
    %c0 = arith.constant 0 : index
    %c0_0 = arith.constant 0 : index
    %c0_1 = arith.constant 0 : index
    %0 = vector.load %arg1[%c0, %c0_0, %c0_1] : memref<8x16x64xf32, #tpu.memory_space<vmem>>, vector<8x16x64xf32>
    %1 = arith.truncf %0 : vector<8x16x64xf32> to vector<8x16x64xbf16>
    %cst = arith.constant 0.000000e+00 : bf16
    %2 = vector.broadcast %cst : bf16 to vector<8x1x64xbf16>
    %c0_2 = arith.constant 0 : index
    %c1 = arith.constant 1 : index
    %c0_3 = arith.constant 0 : index
    %3 = vector.load %arg7[%c0_2, %c1, %c0_3] : memref<8x18x192xbf16, #tpu.memory_space<vmem>>, vector<8x1x64xbf16>
    tpu.vector_store %arg7[%c0_2, %c1, %c0_3], %2 {strides = array<i32>} : memref<8x18x192xbf16, #tpu.memory_space<vmem>>, vector<8x1x64xbf16>,
    %c0_4 = arith.constant 0 : index
    %c2 = arith.constant 2 : index
    %c0_5 = arith.constant 0 : index
    %4 = vector.load %arg7[%c0_4, %c2, %c0_5] : memref<8x18x192xbf16, #tpu.memory_space<vmem>>, vector<8x16x64xbf16>
    tpu.vector_store %arg7[%c0_4, %c2, %c0_5], %1 {strides = array<i32>} : memref<8x18x192xbf16, #tpu.memory_space<vmem>>, vector<8x16x64xbf16>,
    %c0_6 = arith.constant 0 : index
    %c1_7 = arith.constant 1 : index
    %c64 = arith.constant 64 : index
    %5 = vector.load %arg7[%c0_6, %c1_7, %c64] : memref<8x18x192xbf16, #tpu.memory_space<vmem>>, vector<8x16x64xbf16>
    tpu.vector_store %arg7[%c0_6, %c1_7, %c64], %1 {strides = array<i32>} : memref<8x18x192xbf16, #tpu.memory_space<vmem>>, vector<8x16x64xbf16>,
    %c0_8 = arith.constant 0 : index
    %c0_9 = arith.constant 0 : index
    %c128 = arith.constant 128 : index
    %6 = vector.load %arg7[%c0_8, %c0_9, %c128] : memref<8x18x192xbf16, #tpu.memory_space<vmem>>, vector<8x16x64xbf16>
    tpu.vector_store %arg7[%c0_8, %c0_9, %c128], %1 {strides = array<i32>} : memref<8x18x192xbf16, #tpu.memory_space<vmem>>, vector<8x16x64xbf16>,
    %c0_10 = arith.constant 0 : index
    %c16 = arith.constant 16 : index
    %c128_11 = arith.constant 128 : index
    %7 = vector.load %arg7[%c0_10, %c16, %c128_11] : memref<8x18x192xbf16, #tpu.memory_space<vmem>>, vector<8x1x64xbf16>
    tpu.vector_store %arg7[%c0_10, %c16, %c128_11], %2 {strides = array<i32>} : memref<8x18x192xbf16, #tpu.memory_space<vmem>>, vector<8x1x64xbf16>,
    %c0_12 = arith.constant 0 : index
    %c1_13 = arith.constant 1 : index
    %c0_14 = arith.constant 0 : index
    %8 = vector.load %arg7[%c0_12, %c1_13, %c0_14] : memref<8x18x192xbf16, #tpu.memory_space<vmem>>, vector<8x16x192xbf16>
    %9 = vector.shape_cast %8 : vector<8x16x192xbf16> to vector<128x192xbf16>
    %c0_15 = arith.constant 0 : index
    %c0_16 = arith.constant 0 : index
    %10 = vector.load %arg2[%c0_15, %c0_16] : memref<192x128xbf16, #tpu.memory_space<vmem>>, vector<192x128xbf16>
    %cst_17 = arith.constant dense<0.000000e+00> : vector<128x128xf32>
    %11 = tpu.matmul %9, %10, %cst_17 {dimension_numbers = #tpu.dot_dimension_numbers<[1], [0], [0], [1], [0, 0, 1, 1], [], []>} : vector<128x192xbf16>, vector<192x128xbf16>, vector<128x128xf32> -> vector<128x128xf32>
    %c0_18 = arith.constant 0 : index
    %c0_19 = arith.constant 0 : index
    %12 = vector.load %arg3[%c0_18, %c0_19] : memref<1x128xf32, #tpu.memory_space<vmem>>, vector<1x128xf32>
    %13 = vector.broadcast %12 : vector<1x128xf32> to vector<128x128xf32>
    %14 = arith.addf %11, %13 : vector<128x128xf32>
    %cst_20 = arith.constant 0.000000e+00 : f32
    %15 = vector.broadcast %cst_20 : f32 to vector<128x128xf32>
    %16 = arith.maximumf %14, %15 : vector<128x128xf32>
    %17 = vector.shape_cast %16 : vector<128x128xf32> to vector<8x16x128xf32>
    %18 = arith.truncf %17 : vector<8x16x128xf32> to vector<8x16x128xbf16>
    %cst_21 = arith.constant 0.000000e+00 : bf16
    %19 = vector.broadcast %cst_21 : bf16 to vector<8x1x128xbf16>
    %c0_22 = arith.constant 0 : index
    %c1_23 = arith.constant 1 : index
    %c0_24 = arith.constant 0 : index
    %20 = vector.load %arg8[%c0_22, %c1_23, %c0_24] : memref<8x18x384xbf16, #tpu.memory_space<vmem>>, vector<8x1x128xbf16>
    tpu.vector_store %arg8[%c0_22, %c1_23, %c0_24], %19 {strides = array<i32>} : memref<8x18x384xbf16, #tpu.memory_space<vmem>>, vector<8x1x128xbf16>,
    %c0_25 = arith.constant 0 : index
    %c2_26 = arith.constant 2 : index
    %c0_27 = arith.constant 0 : index
    %21 = vector.load %arg8[%c0_25, %c2_26, %c0_27] : memref<8x18x384xbf16, #tpu.memory_space<vmem>>, vector<8x16x128xbf16>
    tpu.vector_store %arg8[%c0_25, %c2_26, %c0_27], %18 {strides = array<i32>} : memref<8x18x384xbf16, #tpu.memory_space<vmem>>, vector<8x16x128xbf16>,
    %c0_28 = arith.constant 0 : index
    %c1_29 = arith.constant 1 : index
    %c128_30 = arith.constant 128 : index
    %22 = vector.load %arg8[%c0_28, %c1_29, %c128_30] : memref<8x18x384xbf16, #tpu.memory_space<vmem>>, vector<8x16x128xbf16>
    tpu.vector_store %arg8[%c0_28, %c1_29, %c128_30], %18 {strides = array<i32>} : memref<8x18x384xbf16, #tpu.memory_space<vmem>>, vector<8x16x128xbf16>,
    %c0_31 = arith.constant 0 : index
    %c0_32 = arith.constant 0 : index
    %c256 = arith.constant 256 : index
    %23 = vector.load %arg8[%c0_31, %c0_32, %c256] : memref<8x18x384xbf16, #tpu.memory_space<vmem>>, vector<8x16x128xbf16>
    tpu.vector_store %arg8[%c0_31, %c0_32, %c256], %18 {strides = array<i32>} : memref<8x18x384xbf16, #tpu.memory_space<vmem>>, vector<8x16x128xbf16>,
    %c0_33 = arith.constant 0 : index
    %c16_34 = arith.constant 16 : index
    %c256_35 = arith.constant 256 : index
    %24 = vector.load %arg8[%c0_33, %c16_34, %c256_35] : memref<8x18x384xbf16, #tpu.memory_space<vmem>>, vector<8x1x128xbf16>
    tpu.vector_store %arg8[%c0_33, %c16_34, %c256_35], %19 {strides = array<i32>} : memref<8x18x384xbf16, #tpu.memory_space<vmem>>, vector<8x1x128xbf16>,
    %c0_36 = arith.constant 0 : index
    %c1_37 = arith.constant 1 : index
    %c0_38 = arith.constant 0 : index
    %25 = vector.load %arg8[%c0_36, %c1_37, %c0_38] : memref<8x18x384xbf16, #tpu.memory_space<vmem>>, vector<8x16x384xbf16>
    %26 = vector.shape_cast %25 : vector<8x16x384xbf16> to vector<128x384xbf16>
    %c0_39 = arith.constant 0 : index
    %c0_40 = arith.constant 0 : index
    %27 = vector.load %arg4[%c0_39, %c0_40] : memref<384x256xbf16, #tpu.memory_space<vmem>>, vector<384x256xbf16>
    %cst_41 = arith.constant dense<0.000000e+00> : vector<128x256xf32>
    %28 = tpu.matmul %26, %27, %cst_41 {dimension_numbers = #tpu.dot_dimension_numbers<[1], [0], [0], [1], [0, 0, 1, 1], [], []>} : vector<128x384xbf16>, vector<384x256xbf16>, vector<128x256xf32> -> vector<128x256xf32>
    %c0_42 = arith.constant 0 : index
    %c0_43 = arith.constant 0 : index
    %29 = vector.load %arg5[%c0_42, %c0_43] : memref<1x256xf32, #tpu.memory_space<vmem>>, vector<1x256xf32>
    %30 = vector.broadcast %29 : vector<1x256xf32> to vector<128x256xf32>
    %31 = arith.addf %28, %30 : vector<128x256xf32>
    %cst_44 = arith.constant 0.000000e+00 : f32
    %32 = vector.broadcast %cst_44 : f32 to vector<128x256xf32>
    %33 = arith.maximumf %31, %32 : vector<128x256xf32>
    %34 = vector.shape_cast %33 : vector<128x256xf32> to vector<8x16x256xf32>
    %35 = vector.extract_strided_slice %34 {offsets = [0, 0, 0], sizes = [8, 16, 128], strides = [1, 1, 1]} : vector<8x16x256xf32> to vector<8x16x128xf32>
    %36 = vector.extract_strided_slice %34 {offsets = [0, 0, 128], sizes = [8, 16, 128], strides = [1, 1, 1]} : vector<8x16x256xf32> to vector<8x16x128xf32>
    %37 = arith.maximumf %35, %36 : vector<8x16x128xf32>
    %38 = vector.extract_strided_slice %37 {offsets = [0, 0, 0], sizes = [8, 1, 128], strides = [1, 1, 1]} : vector<8x16x128xf32> to vector<8x1x128xf32>
    %39 = vector.extract_strided_slice %37 {offsets = [0, 1, 0], sizes = [8, 1, 128], strides = [1, 1, 1]} : vector<8x16x128xf32> to vector<8x1x128xf32>
    %40 = arith.maximumf %38, %39 : vector<8x1x128xf32>
    %c0_45 = arith.constant 0 : index
    %c0_46 = arith.constant 0 : index
    %c0_47 = arith.constant 0 : index
    %41 = vector.load %arg6[%c0_45, %c0_46, %c0_47] : memref<8x8x128xf32, #tpu.memory_space<vmem>>, vector<8x1x128xf32>
    tpu.vector_store %arg6[%c0_45, %c0_46, %c0_47], %40 {strides = array<i32>} : memref<8x8x128xf32, #tpu.memory_space<vmem>>, vector<8x1x128xf32>,
    %42 = vector.extract_strided_slice %37 {offsets = [0, 2, 0], sizes = [8, 1, 128], strides = [1, 1, 1]} : vector<8x16x128xf32> to vector<8x1x128xf32>
    %43 = vector.extract_strided_slice %37 {offsets = [0, 3, 0], sizes = [8, 1, 128], strides = [1, 1, 1]} : vector<8x16x128xf32> to vector<8x1x128xf32>
    %44 = arith.maximumf %42, %43 : vector<8x1x128xf32>
    %c0_48 = arith.constant 0 : index
    %c1_49 = arith.constant 1 : index
    %c0_50 = arith.constant 0 : index
    %45 = vector.load %arg6[%c0_48, %c1_49, %c0_50] : memref<8x8x128xf32, #tpu.memory_space<vmem>>, vector<8x1x128xf32>
    tpu.vector_store %arg6[%c0_48, %c1_49, %c0_50], %44 {strides = array<i32>} : memref<8x8x128xf32, #tpu.memory_space<vmem>>, vector<8x1x128xf32>,
    %46 = vector.extract_strided_slice %37 {offsets = [0, 4, 0], sizes = [8, 1, 128], strides = [1, 1, 1]} : vector<8x16x128xf32> to vector<8x1x128xf32>
    %47 = vector.extract_strided_slice %37 {offsets = [0, 5, 0], sizes = [8, 1, 128], strides = [1, 1, 1]} : vector<8x16x128xf32> to vector<8x1x128xf32>
    %48 = arith.maximumf %46, %47 : vector<8x1x128xf32>
    %c0_51 = arith.constant 0 : index
    %c2_52 = arith.constant 2 : index
    %c0_53 = arith.constant 0 : index
    %49 = vector.load %arg6[%c0_51, %c2_52, %c0_53] : memref<8x8x128xf32, #tpu.memory_space<vmem>>, vector<8x1x128xf32>
    tpu.vector_store %arg6[%c0_51, %c2_52, %c0_53], %48 {strides = array<i32>} : memref<8x8x128xf32, #tpu.memory_space<vmem>>, vector<8x1x128xf32>,
    %50 = vector.extract_strided_slice %37 {offsets = [0, 6, 0], sizes = [8, 1, 128], strides = [1, 1, 1]} : vector<8x16x128xf32> to vector<8x1x128xf32>
    %51 = vector.extract_strided_slice %37 {offsets = [0, 7, 0], sizes = [8, 1, 128], strides = [1, 1, 1]} : vector<8x16x128xf32> to vector<8x1x128xf32>
    %52 = arith.maximumf %50, %51 : vector<8x1x128xf32>
    %c0_54 = arith.constant 0 : index
    %c3 = arith.constant 3 : index
    %c0_55 = arith.constant 0 : index
    %53 = vector.load %arg6[%c0_54, %c3, %c0_55] : memref<8x8x128xf32, #tpu.memory_space<vmem>>, vector<8x1x128xf32>
    tpu.vector_store %arg6[%c0_54, %c3, %c0_55], %52 {strides = array<i32>} : memref<8x8x128xf32, #tpu.memory_space<vmem>>, vector<8x1x128xf32>,
    %54 = vector.extract_strided_slice %37 {offsets = [0, 8, 0], sizes = [8, 1, 128], strides = [1, 1, 1]} : vector<8x16x128xf32> to vector<8x1x128xf32>
    %55 = vector.extract_strided_slice %37 {offsets = [0, 9, 0], sizes = [8, 1, 128], strides = [1, 1, 1]} : vector<8x16x128xf32> to vector<8x1x128xf32>
    %56 = arith.maximumf %54, %55 : vector<8x1x128xf32>
    %c0_56 = arith.constant 0 : index
    %c4 = arith.constant 4 : index
    %c0_57 = arith.constant 0 : index
    %57 = vector.load %arg6[%c0_56, %c4, %c0_57] : memref<8x8x128xf32, #tpu.memory_space<vmem>>, vector<8x1x128xf32>
    tpu.vector_store %arg6[%c0_56, %c4, %c0_57], %56 {strides = array<i32>} : memref<8x8x128xf32, #tpu.memory_space<vmem>>, vector<8x1x128xf32>,
    %58 = vector.extract_strided_slice %37 {offsets = [0, 10, 0], sizes = [8, 1, 128], strides = [1, 1, 1]} : vector<8x16x128xf32> to vector<8x1x128xf32>
    %59 = vector.extract_strided_slice %37 {offsets = [0, 11, 0], sizes = [8, 1, 128], strides = [1, 1, 1]} : vector<8x16x128xf32> to vector<8x1x128xf32>
    %60 = arith.maximumf %58, %59 : vector<8x1x128xf32>
    %c0_58 = arith.constant 0 : index
    %c5 = arith.constant 5 : index
    %c0_59 = arith.constant 0 : index
    %61 = vector.load %arg6[%c0_58, %c5, %c0_59] : memref<8x8x128xf32, #tpu.memory_space<vmem>>, vector<8x1x128xf32>
    tpu.vector_store %arg6[%c0_58, %c5, %c0_59], %60 {strides = array<i32>} : memref<8x8x128xf32, #tpu.memory_space<vmem>>, vector<8x1x128xf32>,
    %62 = vector.extract_strided_slice %37 {offsets = [0, 12, 0], sizes = [8, 1, 128], strides = [1, 1, 1]} : vector<8x16x128xf32> to vector<8x1x128xf32>
    %63 = vector.extract_strided_slice %37 {offsets = [0, 13, 0], sizes = [8, 1, 128], strides = [1, 1, 1]} : vector<8x16x128xf32> to vector<8x1x128xf32>
    %64 = arith.maximumf %62, %63 : vector<8x1x128xf32>
    %c0_60 = arith.constant 0 : index
    %c6 = arith.constant 6 : index
    %c0_61 = arith.constant 0 : index
    %65 = vector.load %arg6[%c0_60, %c6, %c0_61] : memref<8x8x128xf32, #tpu.memory_space<vmem>>, vector<8x1x128xf32>
    tpu.vector_store %arg6[%c0_60, %c6, %c0_61], %64 {strides = array<i32>} : memref<8x8x128xf32, #tpu.memory_space<vmem>>, vector<8x1x128xf32>,
    %66 = vector.extract_strided_slice %37 {offsets = [0, 14, 0], sizes = [8, 1, 128], strides = [1, 1, 1]} : vector<8x16x128xf32> to vector<8x1x128xf32>
    %67 = vector.extract_strided_slice %37 {offsets = [0, 15, 0], sizes = [8, 1, 128], strides = [1, 1, 1]} : vector<8x16x128xf32> to vector<8x1x128xf32>
    %68 = arith.maximumf %66, %67 : vector<8x1x128xf32>
    %c0_62 = arith.constant 0 : index
    %c7 = arith.constant 7 : index
    %c0_63 = arith.constant 0 : index
    %69 = vector.load %arg6[%c0_62, %c7, %c0_63] : memref<8x8x128xf32, #tpu.memory_space<vmem>>, vector<8x1x128xf32>
    tpu.vector_store %arg6[%c0_62, %c7, %c0_63], %68 {strides = array<i32>} : memref<8x8x128xf32, #tpu.memory_space<vmem>>, vector<8x1x128xf32>,
    return
  }
  func.func @transform_0(%arg0: i32) -> (i32, i32, i32) {
    %c0_i32 = arith.constant 0 : i32
    %c0_i32_0 = arith.constant 0 : i32
    %c0_i32_1 = arith.constant 0 : i32
    return %arg0, %c0_i32, %c0_i32_0 : i32, i32, i32
  }
  func.func @transform_1(%arg0: i32) -> (i32, i32) {
    %c0_i32 = arith.constant 0 : i32
    %c0_i32_0 = arith.constant 0 : i32
    %c0_i32_1 = arith.constant 0 : i32
    return %c0_i32, %c0_i32_0 : i32, i32
  }
  func.func @transform_2(%arg0: i32) -> (i32, i32) {
    %c0_i32 = arith.constant 0 : i32
    %c0_i32_0 = arith.constant 0 : i32
    %c0_i32_1 = arith.constant 0 : i32
    return %c0_i32, %c0_i32_0 : i32, i32
  }
  func.func @transform_3(%arg0: i32) -> (i32, i32) {
    %c0_i32 = arith.constant 0 : i32
    %c0_i32_0 = arith.constant 0 : i32
    %c0_i32_1 = arith.constant 0 : i32
    return %c0_i32, %c0_i32_0 : i32, i32
  }
  func.func @transform_4(%arg0: i32) -> (i32, i32) {
    %c0_i32 = arith.constant 0 : i32
    %c0_i32_0 = arith.constant 0 : i32
    %c0_i32_1 = arith.constant 0 : i32
    return %c0_i32, %c0_i32_0 : i32, i32
  }
  func.func @transform_5(%arg0: i32) -> (i32, i32, i32) {
    %c0_i32 = arith.constant 0 : i32
    %c0_i32_0 = arith.constant 0 : i32
    %c0_i32_1 = arith.constant 0 : i32
    return %arg0, %c0_i32, %c0_i32_0 : i32, i32, i32
  }
}

</mosaic_0001>

<bundles_post_ra>
// kernel: tile.14
= control target key start
LH: loop header
LB: loop body
LE: loop exit
PB: predicated region body
PF: predicated region fallthrough
CT: control target
= control target key end

     0   :  { %s28_s0 = inlined_call_operand.vmem [shape: f32[16], index: 0, kind: input, shape index: {}]   ;;  %s29_s1 = inlined_call_operand.vmem [shape: f32[16,16], index: 1, kind: output, shape index: {}]  }
   0x1   :  { %v4_v0 = vld [vmem:[%s28_s0] ss:$0 sm:$0xff] }
   0x2   :  { %5 = vst [vmem:[%s29_s1] sm:$0xff] %v4_v0  ;;  %8 = vst [vmem:[%s29_s1 + $0x8] sm:$0xff] %v4_v0 }

// kernel: tile.15
= control target key start
LH: loop header
LB: loop body
LE: loop exit
PB: predicated region body
PF: predicated region fallthrough
CT: control target
= control target key end

     0   :  { %s7_s6 = smov 3  ;;  %s21_s9 = smov 3  ;;  %vm4_vm0 = vcmask 130048   ;;  %vm11_vm1 = vcmask 1048448   ;;  %vm18_vm2 = vcmask 917248   ;;  %vm25_vm3 = vcmask 786048   ;;  %s119_s0 = inlined_call_operand.vmem [shape: f32[16,16], index: 0, kind: input, shape index: {}]   ;;  %s120_s1 = inlined_call_operand.vmem [shape: f32[256], index: 1, kind: output, shape index: {}]  }
   0x1   :  { %v61_v0 = vld [vmem:[%s119_s0 + $0x7] ss:$8 sm:%s7_s6]   ;;  %s75_s10 = smov 112   ;;  %v63_v1 = vld [vmem:[%s119_s0 + $0x5] ss:$8 sm:%s21_s9]   ;;  %s14_s13 = smov 3 }
   0x2   :  { %9 = vrot.lane.b32.xlu0 %v61_v0, %s75_s10  ;;  %s76_s14 = smov 80   ;;  %v62_v2 = vld [vmem:[%s119_s0 + $0x6] ss:$8 sm:%s14_s13]   ;;  %s28_s17 = smov 3  ;;  %vm32_vm4 = vcmask 654848   ;;  %vm39_vm5 = vcmask 523648  }
   0x3   :  { %23 = vrot.lane.b32.xlu1 %v63_v1, %s76_s14  ;;  %v64_v3 = vld [vmem:[%s119_s0 + $0x4] ss:$8 sm:%s28_s17]   ;;  %s35_s20 = smov 3  ;;  %s42_s21 = smov 3  ;;  %vm46_vm6 = vcmask 392448   ;;  %vm53_vm7 = vcmask 261248  }
   0x4   :  { %s77_s22 = smov 96   ;;  %s78_s23 = smov 64   ;;  %v65_v4 = vld [vmem:[%s119_s0 + $0x3] ss:$8 sm:%s35_s20]   ;;  %v66_v5 = vld [vmem:[%s119_s0 + $0x2] ss:$8 sm:%s42_s21]  }
   0x5   :  { %s2_s26 = smov 3  ;;  %s49_s29 = smov 3 }
   0x6   :  { %16 = vrot.lane.b32.xlu0 %v62_v2, %s77_s22  ;;  %v3_v6 = vld [vmem:[%s119_s0] ss:$8 sm:%s2_s26]   ;;  %s79_s3 = smov 48   ;;  %s80_s4 = smov 32  }
   0x7   :  { %30 = vrot.lane.b32.xlu1 %v64_v3, %s78_s23  ;;  %5 = vst.msk [vmem:[#allocation0] sm:$0x3] %vm4_vm0, %v3_v6   ;;  %v67_v7 = vld [vmem:[%s119_s0 + $0x1] ss:$8 sm:%s49_s29]   ;;  %s81_s0 = smov 16  }
   0xa   :  { %37 = vrot.lane.b32.xlu0 %v65_v4, %s79_s3 }
   0xb   :  { %44 = vrot.lane.b32.xlu1 %v66_v5, %s80_s4 }
   0xe   :  { %51 = vrot.lane.b32.xlu0 %v67_v7, %s81_s0 }
  0x74   :  { %v10_v8 = vpop.permute.xlu0 %9  }
  0x75   :  { %12 = vst.msk [vmem:[#allocation0] sm:$0x3] %vm11_vm1, %v10_v8   ;;  %v24_v9 = vpop.permute.xlu1 %23  }
  0x78   :  { %v17_v10 = vpop.permute.xlu0 %16  }
  0x79   :  { %19 = vst.msk [vmem:[#allocation0] sm:$0x3] %vm18_vm2, %v17_v10   ;;  %v31_v11 = vpop.permute.xlu1 %30  }
  0x7a   :  { %26 = vst.msk [vmem:[#allocation0] sm:$0x3] %vm25_vm3, %v24_v9  }
  0x7b   :  { %33 = vst.msk [vmem:[#allocation0] sm:$0x3] %vm32_vm4, %v31_v11  }
  0x7c   :  { %v38_v12 = vpop.permute.xlu0 %37  }
  0x7d   :  { %40 = vst.msk [vmem:[#allocation0] sm:$0x3] %vm39_vm5, %v38_v12   ;;  %v45_v13 = vpop.permute.xlu1 %44  }
  0x7e   :  { %47 = vst.msk [vmem:[#allocation0] sm:$0x3] %vm46_vm6, %v45_v13  }
  0x80   :  { %v52_v14 = vpop.permute.xlu0 %51  }
  0x81   :  { %54 = vst.msk [vmem:[#allocation0] sm:$0x3] %vm53_vm7, %v52_v14  }
  0x88   :  { %v58_v15 = vld [vmem:[#allocation0] sm:$0x3] }
  0x89   :  { %60 = vst [vmem:[%s120_s1] sm:$0x3] %v58_v15 }

// kernel: tile.10
= control target key start
LH: loop header
LB: loop body
LE: loop exit
PB: predicated region body
PF: predicated region fallthrough
CT: control target
= control target key end

     0   :  { %s28_s0 = inlined_call_operand.vmem [shape: f32[8], index: 0, kind: input, shape index: {}]   ;;  %s29_s1 = inlined_call_operand.vmem [shape: f32[16,8], index: 1, kind: output, shape index: {}]  }
   0x1   :  { %v4_v0 = vld [vmem:[%s28_s0] ss:$0 sm:$0xff] }
   0x2   :  { %5 = vst [vmem:[%s29_s1] sm:$0xff] %v4_v0  ;;  %8 = vst [vmem:[%s29_s1 + $0x8] sm:$0xff] %v4_v0 }

// kernel: tile.11
= control target key start
LH: loop header
LB: loop body
LE: loop exit
PB: predicated region body
PF: predicated region fallthrough
CT: control target
= control target key end

     0   :  { %s131_s10 = smov 120   ;;  %s132_s11 = smov 104   ;;  %vm3_vm0 = vcmask 64512   ;;  %vm9_vm1 = vcmask 1048512   ;;  %vm15_vm2 = vcmask 982912   ;;  %vm21_vm3 = vcmask 917312   ;;  %s207_s0 = inlined_call_operand.vmem [shape: f32[16,8], index: 0, kind: input, shape index: {}]   ;;  %s208_s1 = inlined_call_operand.vmem [shape: f32[1,128], index: 1, kind: output, shape index: {}]  }
   0x1   :  { %v101_v0 = vld [vmem:[%s207_s0 + $0xf] sm:$0x1]   ;;  %v103_v1 = vld [vmem:[%s207_s0 + $0xd] sm:$0x1]   ;;  %v102_v2 = vld [vmem:[%s207_s0 + $0xe] sm:$0x1]  }
   0x2   :  { %7 = vrot.lane.b32.xlu0 %v101_v0, %s131_s10  ;;  %19 = vrot.lane.b32.xlu1 %v103_v1, %s132_s11  ;;  %v104_v3 = vld [vmem:[%s207_s0 + $0xc] sm:$0x1]   ;;  %s133_s16 = smov 112   ;;  %s134_s17 = smov 96   ;;  %v105_v4 = vld [vmem:[%s207_s0 + $0xb] sm:$0x1]  }
   0x3   :  { %v106_v5 = vld [vmem:[%s207_s0 + $0xa] sm:$0x1]   ;;  %v2_v6 = vld [vmem:[%s207_s0] sm:$0x1]   ;;  %s135_s24 = smov 88   ;;  %s136_s25 = smov 80  }
   0x4   :  { %4 = vst.msk [vmem:[#allocation0] sm:$0x1] %vm3_vm0, %v2_v6   ;;  %v107_v7 = vld [vmem:[%s207_s0 + $0x9] sm:$0x1]   ;;  %v108_v8 = vld [vmem:[%s207_s0 + $0x8] sm:$0x1]  }
   0x5   :  { %s137_s30 = smov 72   ;;  %s138_s2 = smov 64   ;;  %v109_v9 = vld [vmem:[%s207_s0 + $0x7] sm:$0x1]   ;;  %v110_v10 = vld [vmem:[%s207_s0 + $0x6] sm:$0x1]  }
   0x6   :  { %13 = vrot.lane.b32.xlu0 %v102_v2, %s133_s16  ;;  %25 = vrot.lane.b32.xlu1 %v104_v3, %s134_s17  ;;  %s139_s7 = smov 56   ;;  %s140_s8 = smov 48   ;;  %v111_v11 = vld [vmem:[%s207_s0 + $0x5] sm:$0x1]   ;;  %v112_v12 = vld [vmem:[%s207_s0 + $0x4] sm:$0x1]  }
   0x7   :  { %s141_s13 = smov 40   ;;  %s142_s14 = smov 32   ;;  %v113_v13 = vld [vmem:[%s207_s0 + $0x3] sm:$0x1]   ;;  %v114_v14 = vld [vmem:[%s207_s0 + $0x2] sm:$0x1]  }
   0x8   :  { %s143_s19 = smov 24   ;;  %s144_s20 = smov 16   ;;  %v115_v15 = vld [vmem:[%s207_s0 + $0x1] sm:$0x1]   ;;  %vm27_vm4 = vcmask 851712   ;;  %vm33_vm5 = vcmask 786112  }
   0x9   :  { %s145_s0 = smov 8   ;;  %vm39_vm6 = vcmask 720512   ;;  %vm45_vm7 = vcmask 654912   ;;  %vm51_vm8 = vcmask 589312   ;;  %vm57_vm9 = vcmask 523712  }
   0xa   :  { %31 = vrot.lane.b32.xlu0 %v105_v4, %s135_s24  ;;  %37 = vrot.lane.b32.xlu1 %v106_v5, %s136_s25  ;;  %vm63_vm10 = vcmask 458112   ;;  %vm69_vm11 = vcmask 392512   ;;  %vm75_vm12 = vcmask 326912   ;;  %vm81_vm13 = vcmask 261312  }
   0xb   :  { %vm87_vm14 = vcmask 195712   ;;  %vm93_vm15 = vcmask 130112  }
   0xe   :  { %43 = vrot.lane.b32.xlu0 %v107_v7, %s137_s30  ;;  %49 = vrot.lane.b32.xlu1 %v108_v8, %s138_s2 }
  0x12   :  { %55 = vrot.lane.b32.xlu0 %v109_v9, %s139_s7  ;;  %61 = vrot.lane.b32.xlu1 %v110_v10, %s140_s8 }
  0x16   :  { %67 = vrot.lane.b32.xlu0 %v111_v11, %s141_s13  ;;  %73 = vrot.lane.b32.xlu1 %v112_v12, %s142_s14 }
  0x1a   :  { %79 = vrot.lane.b32.xlu0 %v113_v13, %s143_s19  ;;  %85 = vrot.lane.b32.xlu1 %v114_v14, %s144_s20 }
  0x1e   :  { %91 = vrot.lane.b32.xlu0 %v115_v15, %s145_s0 }
  0x74   :  { %v8_v16 = vpop.permute.xlu0 %7   ;;  %v20_v17 = vpop.permute.xlu1 %19  }
  0x75   :  { %10 = vst.msk [vmem:[#allocation0] sm:$0x1] %vm9_vm1, %v8_v16  }
  0x78   :  { %v14_v18 = vpop.permute.xlu0 %13   ;;  %v26_v19 = vpop.permute.xlu1 %25  }
  0x79   :  { %16 = vst.msk [vmem:[#allocation0] sm:$0x1] %vm15_vm2, %v14_v18  }
  0x7a   :  { %22 = vst.msk [vmem:[#allocation0] sm:$0x1] %vm21_vm3, %v20_v17  }
  0x7b   :  { %28 = vst.msk [vmem:[#allocation0] sm:$0x1] %vm27_vm4, %v26_v19  }
  0x7c   :  { %v32_v20 = vpop.permute.xlu0 %31   ;;  %v38_v21 = vpop.permute.xlu1 %37  }
  0x7d   :  { %34 = vst.msk [vmem:[#allocation0] sm:$0x1] %vm33_vm5, %v32_v20  }
  0x7e   :  { %40 = vst.msk [vmem:[#allocation0] sm:$0x1] %vm39_vm6, %v38_v21  }
  0x80   :  { %v44_v22 = vpop.permute.xlu0 %43   ;;  %v50_v23 = vpop.permute.xlu1 %49  }
  0x81   :  { %46 = vst.msk [vmem:[#allocation0] sm:$0x1] %vm45_vm7, %v44_v22  }
  0x82   :  { %52 = vst.msk [vmem:[#allocation0] sm:$0x1] %vm51_vm8, %v50_v23  }
  0x84   :  { %v56_v24 = vpop.permute.xlu0 %55   ;;  %v62_v25 = vpop.permute.xlu1 %61  }
  0x85   :  { %58 = vst.msk [vmem:[#allocation0] sm:$0x1] %vm57_vm9, %v56_v24  }
  0x86   :  { %64 = vst.msk [vmem:[#allocation0] sm:$0x1] %vm63_vm10, %v62_v25  }
  0x88   :  { %v68_v26 = vpop.permute.xlu0 %67   ;;  %v74_v27 = vpop.permute.xlu1 %73  }
  0x89   :  { %70 = vst.msk [vmem:[#allocation0] sm:$0x1] %vm69_vm11, %v68_v26  }
  0x8a   :  { %76 = vst.msk [vmem:[#allocation0] sm:$0x1] %vm75_vm12, %v74_v27  }
  0x8c   :  { %v80_v28 = vpop.permute.xlu0 %79   ;;  %v86_v29 = vpop.permute.xlu1 %85  }
  0x8d   :  { %82 = vst.msk [vmem:[#allocation0] sm:$0x1] %vm81_vm13, %v80_v28  }
  0x8e   :  { %88 = vst.msk [vmem:[#allocation0] sm:$0x1] %vm87_vm14, %v86_v29  }
  0x90   :  { %v92_v30 = vpop.permute.xlu0 %91  }
  0x91   :  { %94 = vst.msk [vmem:[#allocation0] sm:$0x1] %vm93_vm15, %v92_v30  }
  0x98   :  { %v98_v31 = vld [vmem:[#allocation0] sm:$0x1] }
  0x99   :  { %100 = vst [vmem:[%s208_s1] sm:$0x1] %v98_v31 }

// kernel: pretrained_network_forward.1
= control target key start
LH: loop header
LB: loop body
LE: loop exit
PB: predicated region body
PF: predicated region fallthrough
CT: control target
= control target key end

     0   :  { %s3385_s18 = smov 0   ;;  %s4472_s0 = inlined_call_operand.vmem [shape: f32[16,16,64], index: 0, kind: input, shape index: {}]   ;;  %s4473_s1 = inlined_call_operand.vmem [shape: bf16[192,128], index: 1, kind: input, shape index: {}]   ;;  %s4474_s2 = inlined_call_operand.vmem [shape: f32[1,128], index: 2, kind: input, shape index: {}]   ;;  %s4475_s3 = inlined_call_operand.vmem [shape: bf16[384,256], index: 3, kind: input, shape index: {}]   ;;  %s4476_s4 = inlined_call_operand.vmem [shape: f32[1,256], index: 4, kind: input, shape index: {}]   ;;  %s4477_s5 = inlined_call_operand.vmem [shape: f32[16,8,128], index: 5, kind: output, shape index: {}]  }
   0x1 LB: > { %s2984_s19 = sadd.s32 4294967295, %s3351_s18   ;;  %p2988_p0 = scmp.ge.s32.totalorder %s3351_s18, 1  ;;  %s3351_s18 = sphi %s3385_s18, %s15_s18  }
   0x2   : > { %p189_p1 = scmp.lt.s32.totalorder %s3351_s18, 3 }
   0x4   : > { %p190_p2 = pnand %p2988_p0, %p189_p1 }
   0x5   : > { %s2989_s20 = sshll.u32 (!%p190_p2), %s2984_s19, 3  ;;  %v3353_v0 = vmov (!%p190_p2), 0   ;;  %v3260_v1 = vld [vmem:[%s4473_s1] sm:$0xff] (!%p190_p2)   ;;  %v3261_v2 = vld [vmem:[%s4473_s1 + $0x8] sm:$0xff] (!%p190_p2)   ;;  %v3262_v3 = vld [vmem:[%s4473_s1 + $0x10] sm:$0xff] (!%p190_p2)   ;;  %vm392_vm0 = vcmask (!%p190_p2), 519168  }
   0x6   : > { %193 = sbr.rel (%p190_p2) target bundleno = 758 (0x2f6), region = 40  ;;  %p219_p3 = scmp.lt.s32.totalorder (!%p190_p2), %s2989_s20, 15  ;;  %1149 = vmatprep.subr.bf16.mxu0 (!%p190_p2), %v3353_v0  ;;  %vm417_vm1 = vsmask.f32 (!%p190_p2), 256  ;;  %vm418_vm2 = vsmask.f32 (!%p190_p2), 4368 }
   0x7   : > { %1150 = vmatpush1.bf16.msra.mxu0 (!%p190_p2), %v3260_v1  ;;  %v3263_v23 = vld [vmem:[%s4473_s1 + $0x18] sm:$0xff] (!%p190_p2)   ;;  %vm3458_vm3 = vmor (!%p190_p2), %vm417_vm1, %vm418_vm2  ;;  %vm323_vm4 = vcmask (!%p190_p2), 1040384   ;;  %v3264_v43 = vld [vmem:[%s4473_s1 + $0x20] sm:$0xff] (!%p190_p2)   ;;  %vm257_vm5 = vsmask.f32 (!%p190_p2), 7938  ;;  %s3354_s10 = smov (!%p190_p2), 64  }
   0x8   : > { %1151 = vmatprep.subr.bf16.mxu0 (!%p190_p2), %v3353_v0  ;;  %vm3475_vm6 = vmand (!%p190_p2), %vm323_vm4, %vm417_vm1  ;;  %vm256_vm7 = vcmask (!%p190_p2), 516096   ;;  %v3265_v60 = vld [vmem:[%s4473_s1 + $0x28] sm:$0xff] (!%p190_p2)   ;;  %vm324_vm10 = vcmask (!%p190_p2), 1044484   ;;  %vm390_vm11 = vcmask (!%p190_p2), 519169   ;;  %vm628_vm14 = vcmask (!%p190_p2), 1043968  }
   0x9   : > { %vm3553_vm8 = vmand (!%p190_p2), %vm256_vm7, %vm257_vm5  ;;  %vm635_vm15 = vcmask (!%p190_p2), 1040896  }
   0xa   : > { %vm3565_vm9 = vmand (!%p190_p2), %vm323_vm4, %vm257_vm5 }
   0xb   : > { %1152 = vmatpush1.bf16.msra.mxu0 (!%p190_p2), %v3261_v2  ;;  %vm3662_vm12 = vmor (!%p190_p2), %vm323_vm4, %vm324_vm10  ;;  %vm771_vm4 = vsmask.f32 (!%p190_p2), 7440 }
   0xc   : > { %1153 = vmatprep.subr.bf16.mxu0 (!%p190_p2), %v3353_v0  ;;  %vm3681_vm13 = vmand (!%p190_p2), %vm256_vm7, %vm417_vm1 }
   0xd   : > { %s4499_s20 = smov (!%p219_p3, %s2989_s20), 15  ;;  %vm3871_vm2 = vmand %vm635_vm15, %vm417_vm1  ;;  %vm770_vm1 = vsmask.f32 3328 }
   0xe   : > { %s3137_s25 = sshll.u32 %s4499_s20, 4  ;;  %s2993_s12 = sshll.u32 %s4499_s20, 3 }
   0xf   : > { %s3410_s30 = scalar_lea.vmem %s4472_s0, %s3137_s25  ;;  %1154 = vmatpush1.bf16.msra.mxu0 %v3262_v3  ;;  %s4375_s15 = scalar_lea.vmem %s4477_s5, %s2993_s12 }
  0x10   : > { %v232_v4 = vld [vmem:[%s3410_s30] sm:$0xff]  ;;  %v233_v5 = vld [vmem:[%s3410_s30 + $0x8] sm:$0xff]  ;;  %v234_v6 = vld [vmem:[%s3410_s30 + $0x10] sm:$0xff]  ;;  %1155 = vmatprep.subr.bf16.mxu0 %v3353_v0 }
  0x11   : > { %v3415_v7 = vpack.c.bf16 %v232_v4, %v232_v4  ;;  %v3417_v8 = vpack.c.bf16 %v233_v5, %v233_v5  ;;  %v3419_v9 = vpack.c.bf16 %v234_v6, %v234_v6  ;;  %v235_v10 = vld [vmem:[%s3410_s30 + $0x18] sm:$0xff]  ;;  %v236_v11 = vld [vmem:[%s3410_s30 + $0x20] sm:$0xff]  ;;  %v237_v12 = vld [vmem:[%s3410_s30 + $0x28] sm:$0xff] }
  0x12   : > { %v3425_v13 = vpack.c.bf16 %v235_v10, %v235_v10  ;;  %v3427_v14 = vpack.c.bf16 %v236_v11, %v236_v11  ;;  %v3429_v15 = vpack.c.bf16 %v237_v12, %v237_v12  ;;  %v238_v32 = vld [vmem:[%s3410_s30 + $0x30] sm:$0xff]  ;;  %v239_v33 = vld [vmem:[%s3410_s30 + $0x38] sm:$0xff]  ;;  %v240_v38 = vld [vmem:[%s3410_s30 + $0x40] sm:$0xff] }
  0x13   : > { %v421_v16 = vshrl.u32 %v3415_v7, 16  ;;  %v424_v17 = vshll.u32 %v3415_v7, 16  ;;  %705 = vst.msk [vmem:[#allocation2 + $0x4] sm:$0xf] %vm392_vm0, %v3415_v7  ;;  %v429_v18 = vshrl.u32 %v3417_v8, 16  ;;  %v432_v19 = vshll.u32 %v3417_v8, 16  ;;  %1156 = vmatpush1.bf16.msra.mxu0 %v3263_v23 }
  0x14   : > { %706 = vst.msk [vmem:[#allocation2 + $0xc] sm:$0xf] %vm392_vm0, %v3417_v8  ;;  %707 = vst.msk [vmem:[#allocation2 + $0x1c] sm:$0xf] %vm392_vm0, %v3419_v9  ;;  %v438_v20 = vshrl.u32 %v3419_v9, 16  ;;  %v441_v21 = vshll.u32 %v3419_v9, 16  ;;  %v3484_v48 = vpack.c.bf16 %v238_v32, %v238_v32  ;;  %v3488_v50 = vpack.c.bf16 %v239_v33, %v239_v33  ;;  %1157 = vmatprep.subr.bf16.mxu0 %v3353_v0 }
  0x15   : > { %v446_v22 = vshrl.u32 %v3425_v13, 16  ;;  %708 = vst.msk [vmem:[#allocation2 + $0x24] sm:$0xf] %vm392_vm0, %v3425_v13  ;;  %709 = vst.msk [vmem:[#allocation2 + $0x34] sm:$0xf] %vm392_vm0, %v3427_v14  ;;  %v423_v24 = vrot.slane %v421_v16, 7  ;;  %v3490_v51 = vpack.c.bf16 %v240_v38, %v240_v38 }
  0x16   : > { %710 = vst.msk [vmem:[#allocation2 + $0x3c] sm:$0xf] %vm392_vm0, %v3429_v15  ;;  %v431_v25 = vrot.slane %v429_v18, 7  ;;  %v449_v26 = vshll.u32 %v3425_v13, 16  ;;  %v455_v27 = vshrl.u32 %v3427_v14, 16  ;;  %v440_v29 = vrot.slane %v438_v20, 7 }
  0x17   : > { %v3462_v30 = vrot.slane %v446_v22, 7  ;;  %v463_v31 = vshrl.u32 %v3429_v15, 16  ;;  %v426_v34 = vor.u32 %v424_v17, %v423_v24  ;;  %v427_v35 = vrot.slane %v423_v24, 4  ;;  %v241_v39 = vld [vmem:[%s3410_s30 + $0x48] sm:$0xff]  ;;  %v242_v53 = vld [vmem:[%s3410_s30 + $0x50] sm:$0xff]  ;;  %v243_v55 = vld [vmem:[%s3410_s30 + $0x58] sm:$0xff]  ;;  %1158 = vmatpush1.bf16.msra.mxu0 %v3264_v43 }
  0x18   : > { %v436_v36 = vrot.slane %v431_v25, 4  ;;  %v434_v37 = vor.u32 %v432_v19, %v431_v25  ;;  %v443_v40 = vor.u32 %v441_v21, %v440_v29  ;;  %v444_v41 = vrot.slane %v440_v29, 4  ;;  %711 = vst.msk [vmem:[#allocation2 + $0x4c] sm:$0xf] %vm392_vm0, %v3484_v48  ;;  %v244_v56 = vld [vmem:[%s3410_s30 + $0x60] sm:$0xff]  ;;  %1159 = vmatprep.subr.bf16.mxu0 %v3353_v0  ;;  %v245_v16 = vld [vmem:[%s3410_s30 + $0x68] sm:$0xff] }
  0x19   : > { %v466_v42 = vshll.u32 %v3429_v15, 16  ;;  %556 = vrot.lane.b32.xlu0 %v426_v34, %s3354_s10  ;;  %v451_v46 = vor.u32 %v449_v26, %v3462_v30  ;;  %v457_v47 = vrot.slane %v455_v27, 7  ;;  %v3486_v49 = vrot.slane %v463_v31, 7  ;;  %712 = vst.msk [vmem:[#allocation2 + $0x54] sm:$0xf] %vm392_vm0, %v3488_v50  ;;  %v246_v19 = vld [vmem:[%s3410_s30 + $0x70] sm:$0xff] }
  0x1a   : > { %560 = vrot.lane.b32.xlu1 %v436_v36, %s3354_s10  ;;  %v435_v45 = vsel %vm3458_vm3, %v427_v35, %v434_v37  ;;  %v3492_v52 = vpack.c.bf16 %v241_v39, %v241_v39  ;;  %v458_v54 = vshll.u32 %v3427_v14, 16  ;;  %v453_v57 = vrot.slane %v3462_v30, 4  ;;  %713 = vst.msk [vmem:[#allocation2 + $0x64] sm:$0xf] %vm392_vm0, %v3490_v51  ;;  %v259_v20 = vld [vmem:[#allocation2] sm:$0x1] }
  0x1b   : > { %v472_v58 = vshrl.u32 %v3484_v48, 16  ;;  %v480_v59 = vshrl.u32 %v3488_v50, 16  ;;  %v452_v61 = vsel %vm3458_vm3, %v444_v41, %v451_v46  ;;  %v461_v62 = vrot.slane %v457_v47, 4  ;;  %1160 = vmatpush1.bf16.msra.mxu0 %v3265_v60  ;;  %v3266_v21 = vld [vmem:[%s4473_s1 + $0x30] sm:$0xff]   ;;  %v247_v30 = vld [vmem:[%s3410_s30 + $0x78] sm:$0xff] }
  0x1c   : > { %714 = vst.msk [vmem:[#allocation2 + $0x6c] sm:$0xf] %vm392_vm0, %v3492_v52  ;;  %v489_v63 = vshrl.u32 %v3490_v51, 16  ;;  %v497_v1 = vshrl.u32 %v3492_v52, 16  ;;  %v468_v2 = vor.u32 %v466_v42, %v3486_v49  ;;  %v483_v4 = vshll.u32 %v3488_v50, 16  ;;  %1161 = vmatprep.subr.bf16.mxu0 %v3353_v0  ;;  %v3267_v43 = vld [vmem:[%s4473_s1 + $0x38] sm:$0xff]  }
  0x1d   : > { %558 = vrot.lane.b32.xlu0 %v435_v45, %s3354_s10  ;;  %v3520_v3 = vrot.slane %v472_v58, 7  ;;  %v3523_v5 = vpack.c.bf16 %v242_v53, %v242_v53  ;;  %v3526_v6 = vrot.slane %v480_v59, 7  ;;  %v3530_v11 = vpack.c.bf16 %v243_v55, %v243_v55  ;;  %v1271_v32 = vld [vmem:[#allocation3] sm:$0x1]  ;;  %v1274_v41 = vld [vmem:[#allocation3 + $0x24] sm:$0x1] }
  0x1e   : > { %562 = vrot.lane.b32.xlu1 %v443_v40, %s3354_s10  ;;  %v3528_v10 = vrot.slane %v489_v63, 7  ;;  %v3532_v12 = vpack.c.bf16 %v244_v56, %v244_v56  ;;  %v3535_v17 = vrot.slane %v497_v1, 7  ;;  %v500_v18 = vshll.u32 %v3492_v52, 16  ;;  %v1277_v42 = vld [vmem:[#allocation3 + $0x48] sm:$0x1] }
  0x1f   : > { %715 = vst.msk [vmem:[#allocation2 + $0x7c] sm:$0xf] %vm392_vm0, %v3523_v5  ;;  %v460_v22 = vor.u32 %v458_v54, %v457_v47  ;;  %v475_v23 = vshll.u32 %v3484_v48, 16  ;;  %716 = vst.msk [vmem:[#allocation2 + $0x84] sm:$0xf] %vm392_vm0, %v3530_v11  ;;  %v469_v25 = vsel %vm3458_vm3, %v461_v62, %v468_v2  ;;  %v470_v26 = vrot.slane %v3486_v49, 4  ;;  %1162 = vmatpush1.bf16.msra.mxu0 %v3266_v21 }
  0x20   : > { %717 = vst.msk [vmem:[#allocation2 + $0x94] sm:$0xf] %vm392_vm0, %v3532_v12  ;;  %v492_v27 = vshll.u32 %v3490_v51, 16  ;;  %v506_v29 = vshrl.u32 %v3523_v5, 16  ;;  %v478_v33 = vrot.slane %v3520_v3, 4  ;;  %v485_v34 = vor.u32 %v483_v4, %v3526_v6  ;;  %1163 = vmatprep.subr.bf16.mxu0 %v3353_v0 }
  0x21   : > { %564 = vrot.lane.b32.xlu0 %v452_v61, %s3354_s10  ;;  %v495_v35 = vrot.slane %v3528_v10, 4  ;;  %v523_v36 = vshrl.u32 %v3532_v12, 16  ;;  %v502_v37 = vor.u32 %v500_v18, %v3535_v17  ;;  %v514_v38 = vshrl.u32 %v3530_v11, 16  ;;  %v1280_v53 = vld [vmem:[#allocation3 + $0x6c] sm:$0x1] }
  0x22   : > { %566 = vrot.lane.b32.xlu1 %v453_v57, %s3354_s10  ;;  %v3576_v39 = vpack.c.bf16 %v245_v16, %v245_v16  ;;  %v3578_v40 = vpack.c.bf16 %v246_v19, %v246_v19  ;;  %v477_v45 = vor.u32 %v475_v23, %v3520_v3  ;;  %v3586_v46 = vpack.c.bf16 %v247_v30, %v247_v30  ;;  %v1283_v56 = vld [vmem:[#allocation3 + $0x90] sm:$0x1]  ;;  %v1286_v57 = vld [vmem:[#allocation3 + $0xb4] sm:$0x1]  ;;  %v1289_v62 = vld [vmem:[#allocation3 + $0xd8] sm:$0x1] }
  0x23   : > { %v260_v47 = vsel %vm3553_vm8, 0, %v259_v20  ;;  %v1272_v49 = vsel %vm3565_vm9, 0, %v1271_v32  ;;  %v487_v54 = vrot.slane %v3526_v6, 4  ;;  %v3593_v55 = vrot.slane %v506_v29, 7  ;;  %v1292_v4 = vld [vmem:[#allocation3 + $0xfc] sm:$0x1]  ;;  %1164 = vmatpush1.bf16.msra.mxu0 %v3267_v43 }
  0x24   : > { %718 = vst.msk [vmem:[#allocation2 + $0x9c] sm:$0xf] %vm392_vm0, %v3576_v39  ;;  %719 = vst.msk [vmem:[#allocation2 + $0xac] sm:$0xf] %vm392_vm0, %v3578_v40  ;;  %v3601_v58 = vor.u32 %v492_v27, %v3528_v10  ;;  %v504_v59 = vrot.slane %v3535_v17, 4  ;;  %v509_v60 = vshll.u32 %v3523_v5, 16  ;;  %v486_v63 = vsel %vm3458_vm3, %v478_v33, %v485_v34  ;;  %1165 = vmatprep.subr.bf16.mxu0 %v3353_v0 }
  0x25   : > { %568 = vrot.lane.b32.xlu0 %v460_v22, %s3354_s10  ;;  %261 = vst [vmem:[#allocation2] sm:$0x1] %v260_v47  ;;  %1273 = vst [vmem:[#allocation3] sm:$0x1] %v1272_v49  ;;  %v3605_v61 = vrot.slane %v523_v36, 7  ;;  %v3613_v1 = vsel %vm3458_vm3, %v495_v35, %v502_v37  ;;  %v3615_v2 = vrot.slane %v514_v38, 7 }
  0x26   : > { %570 = vrot.lane.b32.xlu1 %v469_v25, %s3354_s10  ;;  %720 = vst.msk [vmem:[#allocation2 + $0xb4] sm:$0xf] %vm392_vm0, %v3586_v46  ;;  %v517_v3 = vshll.u32 %v3530_v11, 16  ;;  %v3268_v6 = vld [vmem:[%s4473_s1 + $0x40] sm:$0xff]   ;;  %v526_v10 = vshll.u32 %v3532_v12, 16  ;;  %v531_v16 = vshrl.u32 %v3576_v39, 16  ;;  %v3640_v29 = vor.u32 %v509_v60, %v3593_v55 }
  0x27   : > { %v1275_v18 = vsel %vm3565_vm9, 0, %v1274_v41  ;;  %v1278_v19 = vsel %vm3565_vm9, 0, %v1277_v42  ;;  %v262_v20 = vld [vmem:[#allocation2 + $0x18] sm:$0x1]  ;;  %v512_v21 = vrot.slane %v3593_v55, 4  ;;  %v521_v22 = vrot.slane %v3615_v2, 4  ;;  %1166 = vmatpush1.bf16.msra.mxu0 %v3268_v6 }
  0x28   : > { %1276 = vst [vmem:[#allocation3 + $0x24] sm:$0x1] %v1275_v18  ;;  %1279 = vst [vmem:[#allocation3 + $0x48] sm:$0x1] %v1278_v19  ;;  %v1281_v23 = vsel %vm3565_vm9, 0, %v1280_v53  ;;  %v1284_v25 = vsel %vm3565_vm9, 0, %v1283_v56  ;;  %v519_v35 = vor.u32 %v517_v3, %v3615_v2  ;;  %1167 = vmatprep.subr.bf16.mxu0 %v3353_v0 }
  0x29   : > { %572 = vrot.lane.b32.xlu0 %v470_v26, %s3354_s10  ;;  %v3269_v26 = vld [vmem:[%s4473_s1 + $0x48] sm:$0xff]   ;;  %v265_v27 = vld [vmem:[#allocation2 + $0x30] sm:$0x1]  ;;  %v529_v30 = vrot.slane %v3605_v61, 4  ;;  %1282 = vst [vmem:[#allocation3 + $0x6c] sm:$0x1] %v1281_v23 }
  0x2a   : > { %574 = vrot.lane.b32.xlu1 %v477_v45, %s3354_s10  ;;  %1285 = vst [vmem:[#allocation3 + $0x90] sm:$0x1] %v1284_v25  ;;  %v1287_v32 = vsel %vm3565_vm9, 0, %v1286_v57  ;;  %v1290_v33 = vsel %vm3565_vm9, 0, %v1289_v62  ;;  %v268_v34 = vld [vmem:[#allocation2 + $0x48] sm:$0x1] }
  0x2b   : > { %v534_v36 = vshll.u32 %v3576_v39, 16  ;;  %v540_v37 = vshrl.u32 %v3578_v40, 16  ;;  %v543_v38 = vshll.u32 %v3578_v40, 16  ;;  %1288 = vst [vmem:[#allocation3 + $0xb4] sm:$0x1] %v1287_v32  ;;  %v3653_v41 = vrot.slane %v531_v16, 7  ;;  %1168 = vmatpush1.bf16.msra.mxu0 %v3269_v26 }
  0x2c   : > { %1291 = vst [vmem:[#allocation3 + $0xd8] sm:$0x1] %v1290_v33  ;;  %v548_v42 = vshrl.u32 %v3586_v46, 16  ;;  %v1293_v43 = vsel %vm3565_vm9, 0, %v1292_v4  ;;  %v326_v45 = vrot.slane %v3415_v7, 7  ;;  %v551_v49 = vshll.u32 %v3586_v46, 16  ;;  %1169 = vmatprep.subr.bf16.mxu0 %v3353_v0 }
  0x2d   : > { %576 = vrot.lane.b32.xlu0 %v486_v63, %s3354_s10  ;;  %v722_v47 = vld [vmem:[#allocation2 + $0x14] sm:$0x1]  ;;  %1294 = vst [vmem:[#allocation3 + $0xfc] sm:$0x1] %v1293_v43  ;;  %v263_v56 = vsel %vm3553_vm8, 0, %v262_v20  ;;  %v331_v31 = vrot.slane %v3419_v9, 7  ;;  %v3712_v32 = vor.u32 %v526_v10, %v3605_v61 }
  0x2e   : > { %578 = vrot.lane.b32.xlu1 %v487_v54, %s3354_s10  ;;  %v328_v54 = vrot.slane %v3417_v8, 7  ;;  %v3270_v7 = vld [vmem:[%s4473_s1 + $0x50] sm:$0xff]   ;;  %391 = vst.msk [vmem:[#allocation2] sm:$0xe] %vm390_vm11, %v326_v45  ;;  %v327_v57 = vrot.slane %v326_v45, 4  ;;  %v333_v60 = vrot.slane %v3425_v13, 7 }
  0x2f   : > { %264 = vst [vmem:[#allocation2 + $0x18] sm:$0x1] %v263_v56  ;;  %v266_v8 = vsel %vm3553_vm8, 0, %v265_v27  ;;  %v336_v62 = vrot.slane %v3427_v14, 7  ;;  %v725_v63 = vld [vmem:[#allocation2 + $0x2c] sm:$0x1]  ;;  %1170 = vmatpush1.bf16.msra.mxu0 %v3270_v7 }
  0x30   : > { %v271_v3 = vld [vmem:[#allocation2 + $0x60] sm:$0x1]  ;;  %v330_v4 = vrot.slane %v328_v54, 4  ;;  %396 = vst.msk [vmem:[#allocation2 + $0x18] sm:$0xe] %vm390_vm11, %v331_v31  ;;  %v332_v6 = vrot.slane %v331_v31, 4  ;;  %v329_v18 = vsel %vm3662_vm12, %v327_v57, %v328_v54  ;;  %1171 = vmatprep.subr.bf16.mxu0 %v3353_v0 }
  0x31   : > { %267 = vst [vmem:[#allocation2 + $0x30] sm:$0x1] %v266_v8  ;;  %v338_v13 = vrot.slane %v3429_v15, 7  ;;  %v269_v16 = vsel %vm3553_vm8, 0, %v268_v34  ;;  %v728_v14 = vld [vmem:[#allocation2 + $0x44] sm:$0x1]  ;;  %580 = vrot.lane.b32.xlu0 %v3601_v58, %s3354_s10 }
  0x32   : > { %582 = vrot.lane.b32.xlu1 %v3613_v1, %s3354_s10  ;;  %v335_v19 = vrot.slane %v333_v60, 4  ;;  %399 = vst.msk [vmem:[#allocation2 + $0x30] sm:$0xe] %vm390_vm11, %v336_v62  ;;  %v337_v20 = vrot.slane %v336_v62, 4  ;;  %270 = vst [vmem:[#allocation2 + $0x48] sm:$0x1] %v269_v16  ;;  %v334_v58 = vsel %vm3662_vm12, %v332_v6, %v333_v60 }
  0x33   : > { %v341_v15 = vrot.slane %v3484_v48, 7  ;;  %v274_v23 = vld [vmem:[#allocation2 + $0x78] sm:$0x1]  ;;  %395 = vst.msk [vmem:[#allocation2 + $0x10] sm:$0x1] %vm256_vm7, %v330_v4  ;;  %v340_v1 = vrot.slane %v338_v13, 4  ;;  %v520_v48 = vsel %vm3458_vm3, %v512_v21, %v519_v35  ;;  %v536_v21 = vor.u32 %v534_v36, %v3653_v41 }
  0x34   : > { %393 = vst.msk [vmem:[#allocation2 + $0x8] sm:$0xf] %vm392_vm0, %v329_v18  ;;  %v343_v25 = vrot.slane %v3488_v50, 7  ;;  %v723_v26 = vsel %vm3681_vm13, 0, %v722_v47  ;;  %v731_v27 = vld [vmem:[#allocation2 + $0x5c] sm:$0x1]  ;;  %v339_v50 = vsel %vm3662_vm12, %v337_v20, %v338_v13 }
  0x35   : > { %397 = vst.msk [vmem:[#allocation2 + $0x20] sm:$0xf] %vm392_vm0, %v334_v58  ;;  %v342_v33 = vrot.slane %v341_v15, 4  ;;  %724 = vst [vmem:[#allocation2 + $0x14] sm:$0x1] %v723_v26  ;;  %v3271_v10 = vld [vmem:[%s4473_s1 + $0x58] sm:$0xff]   ;;  %584 = vrot.lane.b32.xlu0 %v504_v59, %s3354_s10  ;;  %v537_v2 = vsel %vm3458_vm3, %v529_v30, %v536_v21 }
  0x36   : > { %398 = vst.msk [vmem:[#allocation2 + $0x28] sm:$0x1] %vm256_vm7, %v335_v19  ;;  %v277_v55 = vld [vmem:[#allocation2 + $0x90] sm:$0x1]  ;;  %v734_v34 = vld [vmem:[#allocation2 + $0x74] sm:$0x1]  ;;  %586 = vrot.lane.b32.xlu1 %v3640_v29, %s3354_s10  ;;  %1172 = vmatpush1.bf16.msra.mxu0 %v3271_v10 }
  0x37   : > { %402 = vst.msk [vmem:[#allocation2 + $0x48] sm:$0xe] %vm390_vm11, %v341_v15  ;;  %v345_v35 = vrot.slane %v343_v25, 4  ;;  %v726_v43 = vsel %vm3681_vm13, 0, %v725_v63  ;;  %v272_v45 = vsel %vm3553_vm8, 0, %v271_v3  ;;  %v344_v36 = vsel %vm3662_vm12, %v342_v33, %v343_v25 }
  0x38   : > { %400 = vst.msk [vmem:[#allocation2 + $0x38] sm:$0xf] %vm392_vm0, %v339_v50  ;;  %727 = vst [vmem:[#allocation2 + $0x2c] sm:$0x1] %v726_v43  ;;  %v346_v47 = vrot.slane %v3490_v51, 7  ;;  %v348_v54 = vrot.slane %v3492_v52, 7 }
  0x39   : > { %401 = vst.msk [vmem:[#allocation2 + $0x40] sm:$0x1] %vm256_vm7, %v340_v1  ;;  %273 = vst [vmem:[#allocation2 + $0x60] sm:$0x1] %v272_v45  ;;  %v729_v56 = vsel %vm3681_vm13, 0, %v728_v14  ;;  %v275_v17 = vsel %vm3553_vm8, 0, %v274_v23  ;;  %588 = vrot.lane.b32.xlu0 %v520_v48, %s3354_s10 }
  0x3a   : > { %403 = vst.msk [vmem:[#allocation2 + $0x50] sm:$0xf] %vm392_vm0, %v344_v36  ;;  %730 = vst [vmem:[#allocation2 + $0x44] sm:$0x1] %v729_v56  ;;  %v351_v59 = vrot.slane %v3523_v5, 7  ;;  %v353_v29 = vrot.slane %v3530_v11, 7  ;;  %590 = vrot.lane.b32.xlu1 %v521_v22, %s3354_s10 }
  0x3b   : > { %404 = vst.msk [vmem:[#allocation2 + $0x58] sm:$0x1] %vm256_vm7, %v345_v35  ;;  %v732_v51 = vsel %vm3681_vm13, 0, %v731_v27  ;;  %v347_v52 = vrot.slane %v346_v47, 4  ;;  %v350_v31 = vrot.slane %v348_v54, 4  ;;  %v278_v7 = vsel %vm3553_vm8, 0, %v277_v55 }
  0x3c   : > { %405 = vst.msk [vmem:[#allocation2 + $0x60] sm:$0xe] %vm390_vm11, %v346_v47  ;;  %276 = vst [vmem:[#allocation2 + $0x78] sm:$0x1] %v275_v17  ;;  %v356_v57 = vrot.slane %v3532_v12, 7  ;;  %v352_v5 = vrot.slane %v351_v59, 4 }
  0x3d   : > { %733 = vst [vmem:[#allocation2 + $0x5c] sm:$0x1] %v732_v51  ;;  %408 = vst.msk [vmem:[#allocation2 + $0x78] sm:$0xe] %vm390_vm11, %v351_v59  ;;  %v355_v60 = vrot.slane %v353_v29, 4  ;;  %v358_v11 = vrot.slane %v3576_v39, 7  ;;  %v349_v63 = vsel %vm3662_vm12, %v347_v52, %v348_v54  ;;  %592 = vrot.lane.b32.xlu0 %v3712_v32, %s3354_s10 }
  0x3e   : > { %279 = vst [vmem:[#allocation2 + $0x90] sm:$0x1] %v278_v7  ;;  %v735_v8 = vsel %vm3681_vm13, 0, %v734_v34  ;;  %v542_v12 = vrot.slane %v540_v37, 7  ;;  %v550_v62 = vrot.slane %v548_v42, 7  ;;  %v357_v39 = vrot.slane %v356_v57, 4  ;;  %594 = vrot.lane.b32.xlu1 %v537_v2, %s3354_s10 }
  0x3f   : > { %407 = vst.msk [vmem:[#allocation2 + $0x70] sm:$0x1] %vm256_vm7, %v350_v31  ;;  %736 = vst [vmem:[#allocation2 + $0x74] sm:$0x1] %v735_v8  ;;  %v737_v3 = vld [vmem:[#allocation2 + $0x8c] sm:$0x1]  ;;  %v354_v22 = vsel %vm3662_vm12, %v352_v5, %v353_v29 }
  0x40   : > { %411 = vst.msk [vmem:[#allocation2 + $0x90] sm:$0xe] %vm390_vm11, %v356_v57  ;;  %v360_v37 = vrot.slane %v358_v11, 4  ;;  %v361_v42 = vrot.slane %v3578_v40, 7  ;;  %v359_v4 = vsel %vm3662_vm12, %v357_v39, %v358_v11  ;;  %v280_v6 = vld [vmem:[#allocation2 + $0xa8] sm:$0x1]  ;;  %v545_v14 = vor.u32 %v543_v38, %v542_v12 }
  0x41   : > { %406 = vst.msk [vmem:[#allocation2 + $0x68] sm:$0xf] %vm392_vm0, %v349_v63  ;;  %409 = vst.msk [vmem:[#allocation2 + $0x80] sm:$0xf] %vm392_vm0, %v354_v22  ;;  %v738_v61 = vsel %vm3681_vm13, 0, %v737_v3  ;;  %v281_v30 = vsel %vm3553_vm8, 0, %v280_v6  ;;  %v553_v24 = vor.u32 %v551_v49, %v550_v62 }
  0x42   : > { %410 = vst.msk [vmem:[#allocation2 + $0x88] sm:$0x1] %vm256_vm7, %v355_v60  ;;  %413 = vst.msk [vmem:[#allocation2 + $0xa0] sm:$0x1] %vm256_vm7, %v360_v37  ;;  %v363_v13 = vrot.slane %v3586_v46, 7  ;;  %v538_v16 = vrot.slane %v3653_v41, 4  ;;  %598 = vrot.lane.b32.xlu1 %v545_v14, %s3354_s10 }
  0x43   : > { %412 = vst.msk [vmem:[#allocation2 + $0x98] sm:$0xf] %vm392_vm0, %v359_v4  ;;  %739 = vst [vmem:[#allocation2 + $0x8c] sm:$0x1] %v738_v61  ;;  %v362_v18 = vrot.slane %v361_v42, 4  ;;  %v546_v19 = vrot.slane %v542_v12, 4 }
  0x44   : > { %414 = vst.msk [vmem:[#allocation2 + $0xa8] sm:$0xe] %vm390_vm11, %v361_v42  ;;  %282 = vst [vmem:[#allocation2 + $0xa8] sm:$0x1] %v281_v30  ;;  %v365_v20 = vrot.slane %v363_v13, 4  ;;  %596 = vrot.lane.b32.xlu0 %v538_v16, %s3354_s10  ;;  %v555_v40 = vrot.slane %v550_v62, 4 }
  0x45   : > { %v364_v15 = vsel %vm3662_vm12, %v362_v18, %v363_v13  ;;  %v740_v23 = vld [vmem:[#allocation2 + $0xa4] sm:$0x1]  ;;  %v554_v46 = vsel %vm3458_vm3, %v546_v19, %v553_v24  ;;  %v743_v38 = vld [vmem:[#allocation2 + $0xbc] sm:$0x1]  ;;  %v3274_v1 = vld [vmem:[%s4475_s3] ss:$8 sps:$4 sm:$0xff]  }
  0x46   : > { %415 = vst.msk [vmem:[#allocation2 + $0xb0] sm:$0xf] %vm392_vm0, %v364_v15  ;;  %v741_v41 = vsel %vm3681_vm13, 0, %v740_v23  ;;  %602 = vrot.lane.b32.xlu1 %v555_v40, %s3354_s10  ;;  %v744_v49 = vsel %vm3681_vm13, 0, %v743_v38  ;;  %v3272_v58 = vld [vmem:[%s4475_s3 + $0x4] ss:$8 sps:$4 sm:$0xff]   ;;  %vm3866_vm0 = vmand %vm628_vm14, %vm257_vm5 }
  0x47   : > { %416 = vst.msk [vmem:[#allocation2 + $0xb8] sm:$0x1] %vm256_vm7, %v365_v20  ;;  %742 = vst [vmem:[#allocation2 + $0xa4] sm:$0x1] %v741_v41  ;;  %v3275_v25 = vld [vmem:[%s4475_s3 + $0x14] ss:$8 sps:$4 sm:$0xff]   ;;  %2526 = vmatprep.subr.bf16.mxu1 %v3272_v58 }
  0x48   : > { %600 = vrot.lane.b32.xlu0 %v554_v46, %s3354_s10  ;;  %745 = vst [vmem:[#allocation2 + $0xbc] sm:$0x1] %v744_v49  ;;  %2527 = vmatpush1.bf16.msra.mxu1 %v3274_v1  ;;  %v3277_v9 = vld [vmem:[%s4475_s3 + $0x10] ss:$8 sps:$4 sm:$0xff]   ;;  %v3278_v26 = vld [vmem:[%s4475_s3 + $0x24] ss:$8 sps:$4 sm:$0xff]   ;;  %vm3894_vm7 = vmor %vm770_vm1, %vm771_vm4 }
  0x49   : > { %2528 = vmatprep.subr.bf16.mxu1 %v3275_v25  ;;  %v3831_v27 = vld [vmem:[%s4475_s3 + $0x104] ss:$8 sps:$4 sm:$0xff]   ;;  %v3280_v48 = vld [vmem:[%s4475_s3 + $0x20] ss:$8 sps:$4 sm:$0xff]   ;;  %v3281_v32 = vld [vmem:[%s4475_s3 + $0x34] ss:$8 sps:$4 sm:$0xff]  }
  0x4a   : > { %2639 = vmatprep.subr.bf16.mxu0 %v3831_v27  ;;  %v3283_v50 = vld [vmem:[%s4475_s3 + $0x30] ss:$8 sps:$4 sm:$0xff]   ;;  %v3284_v33 = vld [vmem:[%s4475_s3 + $0x44] ss:$8 sps:$4 sm:$0xff]   ;;  %v3286_v55 = vld [vmem:[%s4475_s3 + $0x40] ss:$8 sps:$4 sm:$0xff]  }
  0x4b   : > { %v3287_v34 = vld [vmem:[%s4475_s3 + $0x54] ss:$8 sps:$4 sm:$0xff]   ;;  %v3289_v21 = vld [vmem:[%s4475_s3 + $0x50] ss:$8 sps:$4 sm:$0xff]   ;;  %v3290_v10 = vld [vmem:[%s4475_s3 + $0x64] ss:$8 sps:$4 sm:$0xff]  }
  0x4c   : > { %2529 = vmatpush1.bf16.msra.mxu1 %v3277_v9  ;;  %v3292_v35 = vld [vmem:[%s4475_s3 + $0x60] ss:$8 sps:$4 sm:$0xff]   ;;  %v3296_v43 = vld [vmem:[%s4475_s3 + $0x74] ss:$8 sps:$4 sm:$0xff]   ;;  %v637_v54 = vld [vmem:[#allocation2 + $0x10] sm:$0x1] }
  0x4d   : > { %2530 = vmatprep.subr.bf16.mxu1 %v3278_v26  ;;  %v630_v36 = vld [vmem:[#allocation2] sm:$0xf]  ;;  %v640_v51 = vld [vmem:[#allocation2 + $0x18] sm:$0xf]  ;;  %v644_v57 = vld [vmem:[#allocation2 + $0x28] sm:$0x1] }
  0x4e   : > { %v647_v62 = vld [vmem:[#allocation2 + $0x30] sm:$0xf]  ;;  %v651_v16 = vld [vmem:[#allocation2 + $0x40] sm:$0x1]  ;;  %v654_v14 = vld [vmem:[#allocation2 + $0x48] sm:$0xf] }
  0x4f   : > { %vm1124_vm8 = vcmask 523264   ;;  %vm1583_vm9 = vcmask 1043456  }
  0x50   : > { %2531 = vmatpush1.bf16.msra.mxu1 %v3280_v48  ;;  %vm4130_vm10 = vmand %vm1583_vm9, %vm257_vm5 }
  0x51   : > { %2532 = vmatprep.subr.bf16.mxu1 %v3281_v32 }
  0x54   : > { %2533 = vmatpush1.bf16.msra.mxu1 %v3283_v50  ;;  %v658_v50 = vld [vmem:[#allocation2 + $0x58] sm:$0x1] }
  0x55   : > { %2534 = vmatprep.subr.bf16.mxu1 %v3284_v33 }
  0x58   : > { %2535 = vmatpush1.bf16.msra.mxu1 %v3286_v55 }
  0x59   : > { %2536 = vmatprep.subr.bf16.mxu1 %v3287_v34 }
  0x5c   : > { %2537 = vmatpush1.bf16.msra.mxu1 %v3289_v21 }
  0x5d   : > { %2538 = vmatprep.subr.bf16.mxu1 %v3290_v10 }
  0x60   : > { %2539 = vmatpush1.bf16.msra.mxu1 %v3292_v35 }
  0x61   : > { %2540 = vmatprep.subr.bf16.mxu1 %v3296_v43 }
  0x8b   : > { %v557_v56 = vpop.permute.xlu0 %556 }
  0x8c   : > { %v561_v17 = vpop.permute.xlu1 %560  ;;  %v631_v59 = vsel %vm3866_vm0, %v557_v56, %v630_v36 }
  0x8d   : > { %v638_v29 = vsel %vm3871_vm2, %v561_v17, %v637_v54  ;;  %632 = vst [vmem:[#allocation2] sm:$0xf] %v631_v59 }
  0x8e   : > { %639 = vst [vmem:[#allocation2 + $0x10] sm:$0x1] %v638_v29 }
  0x8f   : > { %v559_v52 = vpop.permute.xlu0 %558 }
  0x90   : > { %v563_v31 = vpop.permute.xlu1 %562  ;;  %634 = vst.msk [vmem:[#allocation2 + $0x8] sm:$0xf] %vm628_vm14, %v559_v52 }
  0x91   : > { %v641_v7 = vsel %vm3866_vm0, %v563_v31, %v640_v51 }
  0x92   : > { %642 = vst [vmem:[#allocation2 + $0x18] sm:$0xf] %v641_v7 }
  0x93   : > { %v565_v5 = vpop.permute.xlu0 %564 }
  0x94   : > { %v567_v60 = vpop.permute.xlu1 %566  ;;  %643 = vst.msk [vmem:[#allocation2 + $0x20] sm:$0xf] %vm628_vm14, %v565_v5  ;;  %v746_v8 = vld [vmem:[#allocation2] sm:$0xff] }
  0x95   : > { %v645_v11 = vsel %vm3871_vm2, %v567_v60, %v644_v57  ;;  %v748_v12 = vld [vmem:[#allocation2 + $0x10] sm:$0x11]  ;;  %v774_v63 = vshrl.u32 %v746_v8, 16  ;;  %v777_v39 = vshll.u32 %v746_v8, 16  ;;  %v3293_v8 = vld [vmem:[%s4475_s3 + $0x100] ss:$8 sps:$4 sm:$0xff]  }
  0x96   : > { %646 = vst [vmem:[#allocation2 + $0x28] sm:$0x1] %v645_v11  ;;  %v793_v4 = vshll.u32 %v748_v12, 16  ;;  %v661_v11 = vld [vmem:[#allocation2 + $0x60] sm:$0xf] }
  0x97   : > { %v569_v3 = vpop.permute.xlu0 %568  ;;  %v747_v22 = vld [vmem:[#allocation2 + $0x8] sm:$0xff]  ;;  %v776_v37 = vrot.slane %v774_v63, 4  ;;  %v779_v42 = vrot.slane %v777_v39, 5 }
  0x98   : > { %v571_v2 = vpop.permute.xlu1 %570  ;;  %v648_v6 = vsel %vm3866_vm0, %v569_v3, %v647_v62  ;;  %v783_v61 = vshll.u32 %v747_v22, 16  ;;  %v787_v30 = vshrl.u32 %v747_v22, 16  ;;  %v795_v46 = vrot.slane %v793_v4, 5 }
  0x99   : > { %650 = vst.msk [vmem:[#allocation2 + $0x38] sm:$0xf] %vm628_vm14, %v571_v2  ;;  %v749_v13 = vld [vmem:[#allocation2 + $0x18] sm:$0xff]  ;;  %649 = vst [vmem:[#allocation2 + $0x30] sm:$0xf] %v648_v6  ;;  %v780_v18 = vor.u32 %v779_v42, %v776_v37 }
  0x9a   : > { %v798_v19 = vshrl.u32 %v749_v13, 16  ;;  %v801_v24 = vshll.u32 %v749_v13, 16  ;;  %v785_v20 = vrot.slane %v783_v61, 5  ;;  %v789_v15 = vrot.slane %v787_v30, 4  ;;  %v668_v42 = vld [vmem:[#allocation2 + $0x78] sm:$0xf] }
  0x9b   : > { %v573_v23 = vpop.permute.xlu0 %572  ;;  %v781_v40 = vrot.slane %v780_v18, 4  ;;  %v750_v38 = vld [vmem:[#allocation2 + $0x20] sm:$0xff]  ;;  %v665_v18 = vld [vmem:[#allocation2 + $0x70] sm:$0x1] }
  0x9c   : > { %v575_v41 = vpop.permute.xlu1 %574  ;;  %v800_v49 = vrot.slane %v798_v19, 4  ;;  %v803_v58 = vrot.slane %v801_v24, 5  ;;  %v652_v1 = vsel %vm3871_vm2, %v573_v23, %v651_v16  ;;  %v790_v26 = vor.u32 %v789_v15, %v785_v20 }
  0x9d   : > { %v655_v25 = vsel %vm3866_vm0, %v575_v41, %v654_v14  ;;  %v751_v48 = vld [vmem:[#allocation2 + $0x28] sm:$0x11]  ;;  %v807_v32 = vshll.u32 %v750_v38, 16  ;;  %653 = vst [vmem:[#allocation2 + $0x40] sm:$0x1] %v652_v1  ;;  %v811_v55 = vshrl.u32 %v750_v38, 16  ;;  %v786_v43 = vsel %vm3894_vm7, %v781_v40, %v785_v20 }
  0x9e   : > { %656 = vst [vmem:[#allocation2 + $0x48] sm:$0xf] %v655_v25  ;;  %v804_v33 = vor.u32 %v803_v58, %v800_v49  ;;  %v817_v34 = vshll.u32 %v751_v48, 16  ;;  %v791_v21 = vrot.slane %v790_v26, 4 }
  0x9f   : > { %v809_v10 = vrot.slane %v807_v32, 5  ;;  %v577_v35 = vpop.permute.xlu0 %576  ;;  %v813_v56 = vrot.slane %v811_v55, 4  ;;  %v672_v55 = vld [vmem:[#allocation2 + $0x88] sm:$0x1] }
  0xa0   : > { %v579_v36 = vpop.permute.xlu1 %578  ;;  %v805_v54 = vrot.slane %v804_v33, 4  ;;  %v753_v17 = vld [vmem:[#allocation2 + $0x38] sm:$0xff]  ;;  %657 = vst.msk [vmem:[#allocation2 + $0x50] sm:$0xf] %vm628_vm14, %v577_v35  ;;  %v796_v59 = vsel %vm3894_vm7, %v791_v21, %v795_v46  ;;  %v752_v51 = vld [vmem:[#allocation2 + $0x30] sm:$0xff]  ;;  %v819_v60 = vrot.slane %v817_v34, 5 }
  0xa1   : > { %v659_v29 = vsel %vm3871_vm2, %v579_v36, %v658_v50  ;;  %v831_v52 = vshll.u32 %v753_v17, 16  ;;  %v835_v31 = vshrl.u32 %v753_v17, 16  ;;  %v3011_v7 = vcombine.low %v786_v43, %v796_v59 }
  0xa2   : > { %v3012_v57 = vcombine.high %v786_v43, %v796_v59  ;;  %660 = vst [vmem:[#allocation2 + $0x58] sm:$0x1] %v659_v29  ;;  %v814_v5 = vor.u32 %v813_v56, %v809_v10  ;;  %v822_v12 = vshrl.u32 %v752_v51, 16  ;;  %v825_v62 = vshll.u32 %v752_v51, 16 }
  0xa3   : > { %v833_v63 = vrot.slane %v831_v52, 5  ;;  %v837_v39 = vrot.slane %v835_v31, 4  ;;  %v810_v3 = vsel %vm3894_vm7, %v805_v54, %v809_v10  ;;  %v581_v22 = vpop.permute.xlu0 %580 }
  0xa4   : > { %3039 = vmatprep.mubr.msk.bf16.mxu0 %vm1124_vm8, %v3012_v57  ;;  %v815_v2 = vrot.slane %v814_v5, 4  ;;  %v583_v37 = vpop.permute.xlu1 %582  ;;  %v662_v4 = vsel %vm3866_vm0, %v581_v22, %v661_v11  ;;  %v754_v6 = vld [vmem:[#allocation2 + $0x40] sm:$0x11]  ;;  %v824_v61 = vrot.slane %v822_v12, 4  ;;  %v827_v30 = vrot.slane %v825_v62, 5 }
  0xa5   : > { %1182 = vmatmul.mubr.bf16.vlgmr.msra.gmra.mrb[0].mxu0 %v3011_v7  ;;  %664 = vst.msk [vmem:[#allocation2 + $0x68] sm:$0xf] %vm628_vm14, %v583_v37  ;;  %v838_v13 = vor.u32 %v837_v39, %v833_v63  ;;  %v755_v16 = vld [vmem:[#allocation2 + $0x48] sm:$0xff]  ;;  %663 = vst [vmem:[#allocation2 + $0x60] sm:$0xf] %v662_v4  ;;  %v841_v19 = vshll.u32 %v754_v6, 16 }
  0xa6   : > { %v820_v14 = vsel %vm3894_vm7, %v815_v2, %v819_v60  ;;  %v846_v24 = vshrl.u32 %v755_v16, 16  ;;  %v849_v20 = vshll.u32 %v755_v16, 16  ;;  %2640 = vmatpush1.bf16.msra.mxu0 %v3293_v8  ;;  %v828_v23 = vor.u32 %v827_v30, %v824_v61  ;;  %v675_v11 = vld [vmem:[#allocation2 + $0x90] sm:$0xf]  ;;  %v679_v16 = vld [vmem:[#allocation2 + $0xa0] sm:$0x1] }
  0xa7   : > { %v3014_v15 = vcombine.high %v810_v3, %v820_v14  ;;  %v839_v41 = vrot.slane %v838_v13, 4  ;;  %v585_v40 = vpop.permute.xlu0 %584  ;;  %v843_v46 = vrot.slane %v841_v19, 5  ;;  %v756_v49 = vld [vmem:[#allocation2 + $0x50] sm:$0xff]  ;;  %v3013_v35 = vcombine.low %v810_v3, %v820_v14  ;;  %v682_v19 = vld [vmem:[#allocation2 + $0xa8] sm:$0xf] }
  0xa8   : > { %v587_v38 = vpop.permute.xlu1 %586  ;;  %v848_v58 = vrot.slane %v846_v24, 4  ;;  %v851_v1 = vrot.slane %v849_v20, 5  ;;  %v666_v25 = vsel %vm3871_vm2, %v585_v40, %v665_v18  ;;  %v829_v26 = vrot.slane %v828_v23, 4 }
  0xa9   : > { %3040 = vmatprep.mubr.msk.bf16.mxu0 %vm1124_vm8, %v3014_v15  ;;  %v669_v48 = vsel %vm3866_vm0, %v587_v38, %v668_v42  ;;  %v757_v32 = vld [vmem:[#allocation2 + $0x58] sm:$0x11]  ;;  %v855_v50 = vshll.u32 %v756_v49, 16  ;;  %667 = vst [vmem:[#allocation2 + $0x70] sm:$0x1] %v666_v25  ;;  %v844_v33 = vsel %vm3894_vm7, %v839_v41, %v843_v46  ;;  %v859_v21 = vshrl.u32 %v756_v49, 16 }
  0xaa   : > { %670 = vst [vmem:[#allocation2 + $0x78] sm:$0xf] %v669_v48  ;;  %v852_v34 = vor.u32 %v851_v1, %v848_v58  ;;  %v865_v10 = vshll.u32 %v757_v32, 16  ;;  %v834_v43 = vsel %vm3894_vm7, %v829_v26, %v833_v63 }
  0xab   : > { %v857_v36 = vrot.slane %v855_v50, 5  ;;  %v3016_v54 = vcombine.high %v834_v43, %v844_v33  ;;  %v589_v56 = vpop.permute.xlu0 %588  ;;  %v861_v29 = vrot.slane %v859_v21, 4  ;;  %v3015_v20 = vcombine.low %v834_v43, %v844_v33 }
  0xac   : > { %v591_v17 = vpop.permute.xlu1 %590  ;;  %v853_v59 = vrot.slane %v852_v34, 4  ;;  %v759_v51 = vld [vmem:[#allocation2 + $0x68] sm:$0xff]  ;;  %671 = vst.msk [vmem:[#allocation2 + $0x80] sm:$0xf] %vm628_vm14, %v589_v56  ;;  %v758_v31 = vld [vmem:[#allocation2 + $0x60] sm:$0xff]  ;;  %v867_v60 = vrot.slane %v865_v10, 5 }
  0xad   : > { %1190 = vmatmul.mubr.bf16.gmra.mrb[4].mxu0 %v3013_v35  ;;  %v673_v52 = vsel %vm3871_vm2, %v591_v17, %v672_v55  ;;  %v879_v7 = vshll.u32 %v759_v51, 16  ;;  %v883_v57 = vshrl.u32 %v759_v51, 16  ;;  %v862_v5 = vor.u32 %v861_v29, %v857_v36  ;;  %v686_v34 = vld [vmem:[#allocation2 + $0xb8] sm:$0x1] }
  0xae   : > { %3041 = vmatprep.mubr.msk.bf16.mxu0 %vm1124_vm8, %v3016_v54  ;;  %674 = vst [vmem:[#allocation2 + $0x88] sm:$0x1] %v673_v52  ;;  %v870_v8 = vshrl.u32 %v758_v31, 16  ;;  %v873_v12 = vshll.u32 %v758_v31, 16  ;;  %v3931_v39 = vsel %vm3894_vm7, %v853_v59, %v857_v36 }
  0xaf   : > { %v881_v62 = vrot.slane %v879_v7, 5  ;;  %v885_v63 = vrot.slane %v883_v57, 4  ;;  %v863_v3 = vrot.slane %v862_v5, 4  ;;  %v593_v2 = vpop.permute.xlu0 %592 }
  0xb0   : > { %v595_v22 = vpop.permute.xlu1 %594  ;;  %v872_v37 = vrot.slane %v870_v8, 4  ;;  %v875_v42 = vrot.slane %v873_v12, 5  ;;  %v676_v4 = vsel %vm3866_vm0, %v593_v2, %v675_v11  ;;  %v760_v6 = vld [vmem:[#allocation2 + $0x70] sm:$0x11] }
  0xb1   : > { %678 = vst.msk [vmem:[#allocation2 + $0x98] sm:$0xf] %vm628_vm14, %v595_v22  ;;  %v886_v61 = vor.u32 %v885_v63, %v881_v62  ;;  %v761_v30 = vld [vmem:[#allocation2 + $0x78] sm:$0xff]  ;;  %v868_v13 = vsel %vm3894_vm7, %v863_v3, %v867_v60  ;;  %677 = vst [vmem:[#allocation2 + $0x90] sm:$0xf] %v676_v4  ;;  %v889_v18 = vshll.u32 %v760_v6, 16 }
  0xb2   : > { %v876_v14 = vor.u32 %v875_v42, %v872_v37  ;;  %v894_v24 = vshrl.u32 %v761_v30, 16  ;;  %v3018_v15 = vcombine.high %v3931_v39, %v868_v13  ;;  %v897_v41 = vshll.u32 %v761_v30, 16 }
  0xb3   : > { %v887_v23 = vrot.slane %v886_v61, 4  ;;  %v891_v38 = vrot.slane %v889_v18, 5  ;;  %v762_v58 = vld [vmem:[#allocation2 + $0x80] sm:$0xff]  ;;  %v3017_v60 = vcombine.low %v3931_v39, %v868_v13 }
  0xb4   : > { %v877_v46 = vrot.slane %v876_v14, 4  ;;  %v599_v49 = vpop.permute.xlu1 %598  ;;  %v896_v1 = vrot.slane %v894_v24, 4  ;;  %v899_v32 = vrot.slane %v897_v41, 5  ;;  %v903_v50 = vshll.u32 %v762_v58, 16 }
  0xb5   : > { %1198 = vmatmul.mubr.bf16.gmra.mrb[8].mxu0 %v3015_v20  ;;  %v683_v26 = vsel %vm3866_vm0, %v599_v49, %v682_v19  ;;  %v763_v48 = vld [vmem:[#allocation2 + $0x88] sm:$0x11]  ;;  %v892_v55 = vsel %vm3894_vm7, %v887_v23, %v891_v38  ;;  %v907_v21 = vshrl.u32 %v762_v58, 16 }
  0xb6   : > { %v597_v40 = vpop.permute.xlu0 %596  ;;  %3042 = vmatprep.mubr.msk.bf16.mxu0 %vm1124_vm8, %v3018_v15  ;;  %v882_v33 = vsel %vm3894_vm7, %v877_v46, %v881_v62  ;;  %684 = vst [vmem:[#allocation2 + $0xa8] sm:$0xf] %v683_v26  ;;  %v900_v10 = vor.u32 %v899_v32, %v896_v1  ;;  %v905_v35 = vrot.slane %v903_v50, 5  ;;  %v913_v43 = vshll.u32 %v763_v48, 16 }
  0xb7   : > { %v680_v25 = vsel %vm3871_vm2, %v597_v40, %v679_v16  ;;  %v909_v54 = vrot.slane %v907_v21, 4  ;;  %v3020_v17 = vcombine.high %v882_v33, %v892_v55  ;;  %v3019_v14 = vcombine.low %v882_v33, %v892_v55 }
  0xb8   : > { %681 = vst [vmem:[#allocation2 + $0xa0] sm:$0x1] %v680_v25  ;;  %v603_v36 = vpop.permute.xlu1 %602  ;;  %v765_v56 = vld [vmem:[#allocation2 + $0x98] sm:$0xff]  ;;  %v764_v29 = vld [vmem:[#allocation2 + $0x90] sm:$0xff]  ;;  %v901_v31 = vrot.slane %v900_v10, 4  ;;  %v915_v11 = vrot.slane %v913_v43, 5 }
  0xb9   : > { %v687_v59 = vsel %vm3871_vm2, %v603_v36, %v686_v34  ;;  %v927_v51 = vshll.u32 %v765_v56, 16  ;;  %v931_v52 = vshrl.u32 %v765_v56, 16  ;;  %v910_v7 = vor.u32 %v909_v54, %v905_v35  ;;  %v3972_v43 = vld [vmem:[%s4475_s3 + $0x114] ss:$8 sps:$4 sm:$0xff]   ;;  %v3980_v36 = vld [vmem:[%s4475_s3 + $0x110] ss:$8 sps:$4 sm:$0xff]  }
  0xba   : > { %v601_v45 = vpop.permute.xlu0 %600  ;;  %688 = vst [vmem:[#allocation2 + $0xb8] sm:$0x1] %v687_v59  ;;  %v918_v57 = vshrl.u32 %v764_v29, 16  ;;  %v921_v5 = vshll.u32 %v764_v29, 16  ;;  %v906_v22 = vsel %vm3894_vm7, %v901_v31, %v905_v35  ;;  %2641 = vmatprep.subr.bf16.mxu0 %v3972_v43  ;;  %v3302_v54 = vld [vmem:[%s4475_s3 + $0x84] ss:$8 sps:$4 sm:$0xff]  }
  0xbb   : > { %685 = vst.msk [vmem:[#allocation2 + $0xb0] sm:$0xf] %vm628_vm14, %v601_v45  ;;  %v929_v8 = vrot.slane %v927_v51, 5  ;;  %v933_v12 = vrot.slane %v931_v52, 4  ;;  %v911_v62 = vrot.slane %v910_v7, 4  ;;  %2642 = vmatpush1.bf16.msra.mxu0 %v3980_v36 }
  0xbc   : > { %v920_v63 = vrot.slane %v918_v57, 4  ;;  %v923_v3 = vrot.slane %v921_v5, 5  ;;  %v3298_v45 = vld [vmem:[%s4475_s3 + $0x70] ss:$8 sps:$4 sm:$0xff]   ;;  %v3990_v56 = vld [vmem:[%s4475_s3 + $0x124] ss:$8 sps:$4 sm:$0xff]  }
  0xbd   : > { %1206 = vmatmul.mubr.bf16.gmra.mrb[12].mxu0 %v3017_v60  ;;  %v767_v47 = vld [vmem:[#allocation2 + $0xa8] sm:$0xff]  ;;  %v934_v42 = vor.u32 %v933_v12, %v929_v8  ;;  %v916_v4 = vsel %vm3894_vm7, %v911_v62, %v915_v11  ;;  %2541 = vmatpush1.bf16.msra.mxu1 %v3298_v45  ;;  %v3308_v29 = vld [vmem:[%s4475_s3 + $0x94] ss:$8 sps:$4 sm:$0xff]   ;;  %v3310_v52 = vld [vmem:[%s4475_s3 + $0x90] ss:$8 sps:$4 sm:$0xff]  }
  0xbe   : > { %3043 = vmatprep.mubr.msk.bf16.mxu0 %vm1124_vm8, %v3020_v17  ;;  %v924_v37 = vor.u32 %v923_v3, %v920_v63  ;;  %v942_v6 = vshrl.u32 %v767_v47, 16  ;;  %v945_v61 = vshll.u32 %v767_v47, 16  ;;  %v3022_v18 = vcombine.high %v906_v22, %v916_v4  ;;  %v3304_v17 = vld [vmem:[%s4475_s3 + $0x80] ss:$8 sps:$4 sm:$0xff]   ;;  %2542 = vmatprep.subr.bf16.mxu1 %v3302_v54  ;;  %v4008_v51 = vld [vmem:[%s4475_s3 + $0x134] ss:$8 sps:$4 sm:$0xff]  }
  0xbf   : > { %v766_v2 = vld [vmem:[#allocation2 + $0xa0] sm:$0x11]  ;;  %v935_v24 = vrot.slane %v934_v42, 4  ;;  %v3021_v48 = vcombine.low %v906_v22, %v916_v4  ;;  %2643 = vmatprep.subr.bf16.mxu0 %v3990_v56  ;;  %v4016_v31 = vld [vmem:[%s4475_s3 + $0x130] ss:$8 sps:$4 sm:$0xff]  }
  0xc0   : > { %v937_v39 = vshll.u32 %v766_v2, 16  ;;  %v925_v19 = vrot.slane %v924_v37, 4  ;;  %v944_v15 = vrot.slane %v942_v6, 4  ;;  %v947_v23 = vrot.slane %v945_v61, 5  ;;  %v3998_v59 = vld [vmem:[%s4475_s3 + $0x120] ss:$8 sps:$4 sm:$0xff]  }
  0xc1   : > { %v769_v40 = vld [vmem:[#allocation2 + $0xb8] sm:$0x11]  ;;  %2543 = vmatpush1.bf16.msra.mxu1 %v3304_v17  ;;  %2644 = vmatpush1.bf16.msra.mxu0 %v3998_v59  ;;  %v3314_v7 = vld [vmem:[%s4475_s3 + $0xa4] ss:$8 sps:$4 sm:$0xff]   ;;  %v3316_v5 = vld [vmem:[%s4475_s3 + $0xa0] ss:$8 sps:$4 sm:$0xff]  }
  0xc2   : > { %v768_v30 = vld [vmem:[#allocation2 + $0xb0] sm:$0xff]  ;;  %v939_v20 = vrot.slane %v937_v39, 5  ;;  %v930_v38 = vsel %vm3894_vm7, %v925_v19, %v929_v8  ;;  %v948_v58 = vor.u32 %v947_v23, %v944_v15  ;;  %v961_v25 = vshll.u32 %v769_v40, 16  ;;  %2544 = vmatprep.subr.bf16.mxu1 %v3308_v29  ;;  %2645 = vmatprep.subr.bf16.mxu0 %v4008_v51  ;;  %v4026_v57 = vld [vmem:[%s4475_s3 + $0x144] ss:$8 sps:$4 sm:$0xff]  }
  0xc3   : > { %v951_v13 = vshll.u32 %v768_v30, 16  ;;  %v955_v16 = vshrl.u32 %v768_v30, 16  ;;  %v4034_v60 = vld [vmem:[%s4475_s3 + $0x140] ss:$8 sps:$4 sm:$0xff]   ;;  %v3320_v12 = vld [vmem:[%s4475_s3 + $0xb4] ss:$8 sps:$4 sm:$0xff]  }
  0xc4   : > { %v940_v49 = vsel %vm3894_vm7, %v935_v24, %v939_v20  ;;  %v949_v32 = vrot.slane %v948_v58, 4  ;;  %v963_v33 = vrot.slane %v961_v25, 5  ;;  %v1674_v11 = vld [vmem:[#allocation3 + $0x20] sm:$0x1]  ;;  %v4046_v62 = vld [vmem:[%s4475_s3 + $0x154] ss:$8 sps:$4 sm:$0xff]  }
  0xc5   : > { %v953_v41 = vrot.slane %v951_v13, 5  ;;  %v957_v46 = vrot.slane %v955_v16, 4  ;;  %1214 = vmatmul.mubr.bf16.gmra.mrb[16].mxu0 %v3019_v14  ;;  %v3024_v26 = vcombine.high %v930_v38, %v940_v49  ;;  %v3023_v10 = vcombine.low %v930_v38, %v940_v49  ;;  %2545 = vmatpush1.bf16.msra.mxu1 %v3310_v52  ;;  %v3322_v63 = vld [vmem:[%s4475_s3 + $0xb0] ss:$8 sps:$4 sm:$0xff]   ;;  %v3326_v2 = vld [vmem:[%s4475_s3 + $0xc4] ss:$8 sps:$4 sm:$0xff]  }
  0xc6   : > { %3044 = vmatprep.mubr.msk.bf16.mxu0 %vm1124_vm8, %v3022_v18  ;;  %2646 = vmatpush1.bf16.msra.mxu0 %v4016_v31  ;;  %v1675_v8 = vsel %vm3475_vm6, 0, %v1674_v11  ;;  %v4054_v3 = vld [vmem:[%s4475_s3 + $0x150] ss:$8 sps:$4 sm:$0xff]   ;;  %v4064_v47 = vld [vmem:[%s4475_s3 + $0x164] ss:$8 sps:$4 sm:$0xff]  }
  0xc7   : > { %v958_v1 = vor.u32 %v957_v46, %v953_v41  ;;  %v954_v55 = vsel %vm3894_vm7, %v949_v32, %v953_v41  ;;  %2546 = vmatprep.subr.bf16.mxu1 %v3314_v7  ;;  %2647 = vmatprep.subr.bf16.mxu0 %v4026_v57  ;;  %1676 = vst [vmem:[#allocation3 + $0x20] sm:$0x1] %v1675_v8  ;;  %v3328_v22 = vld [vmem:[%s4475_s3 + $0xc0] ss:$8 sps:$4 sm:$0xff]   ;;  %v3332_v42 = vld [vmem:[%s4475_s3 + $0xd4] ss:$8 sps:$4 sm:$0xff]  }
  0xc8   : > { %v4072_v37 = vld [vmem:[%s4475_s3 + $0x160] ss:$8 sps:$4 sm:$0xff]   ;;  %v4082_v4 = vld [vmem:[%s4475_s3 + $0x174] ss:$8 sps:$4 sm:$0xff]   ;;  %v3334_v39 = vld [vmem:[%s4475_s3 + $0xd0] ss:$8 sps:$4 sm:$0xff]  }
  0xc9   : > { %v959_v50 = vrot.slane %v958_v1, 4  ;;  %2547 = vmatpush1.bf16.msra.mxu1 %v3316_v5  ;;  %v4090_v6 = vld [vmem:[%s4475_s3 + $0x170] ss:$8 sps:$4 sm:$0xff]   ;;  %v3338_v61 = vld [vmem:[%s4475_s3 + $0xe4] ss:$8 sps:$4 sm:$0xff]  }
  0xca   : > { %2648 = vmatpush1.bf16.msra.mxu0 %v4034_v60  ;;  %2548 = vmatprep.subr.bf16.mxu1 %v3320_v12  ;;  %v3340_v30 = vld [vmem:[%s4475_s3 + $0xe0] ss:$8 sps:$4 sm:$0xff]   ;;  %v1677_v13 = vld [vmem:[#allocation3 + $0x44] sm:$0x1]  ;;  %v3341_v16 = vld [vmem:[%s4475_s3 + $0xf4] ss:$8 sps:$4 sm:$0xff]  }
  0xcb   : > { %v964_v34 = vsel %vm3894_vm7, %v959_v50, %v963_v33  ;;  %2649 = vmatprep.subr.bf16.mxu0 %v4046_v62  ;;  %v1678_v14 = vsel %vm3475_vm6, 0, %v1677_v13  ;;  %v3343_v18 = vld [vmem:[%s4475_s3 + $0xf0] ss:$8 sps:$4 sm:$0xff]   ;;  %v1680_v19 = vld [vmem:[#allocation3 + $0x68] sm:$0x1] }
  0xcc   : > { %v3026_v21 = vcombine.high %v954_v55, %v964_v34  ;;  %v3025_v35 = vcombine.low %v954_v55, %v964_v34  ;;  %1679 = vst [vmem:[#allocation3 + $0x44] sm:$0x1] %v1678_v14  ;;  %v1681_v24 = vsel %vm3475_vm6, 0, %v1680_v19  ;;  %v1683_v20 = vld [vmem:[#allocation3 + $0x8c] sm:$0x1] }
  0xcd   : > { %1222 = vmatmul.mubr.bf16.gmra.mrb[20].mxu0 %v3021_v48  ;;  %2549 = vmatpush1.bf16.msra.mxu1 %v3322_v63  ;;  %1682 = vst [vmem:[#allocation3 + $0x68] sm:$0x1] %v1681_v24  ;;  %v1684_v15 = vsel %vm3475_vm6, 0, %v1683_v20  ;;  %v1686_v23 = vld [vmem:[#allocation3 + $0xb0] sm:$0x1] }
  0xce   : > { %3045 = vmatprep.mubr.msk.bf16.mxu0 %vm1124_vm8, %v3024_v26  ;;  %2650 = vmatpush1.bf16.msra.mxu0 %v4054_v3  ;;  %1685 = vst [vmem:[#allocation3 + $0x8c] sm:$0x1] %v1684_v15  ;;  %v1687_v41 = vsel %vm3475_vm6, 0, %v1686_v23  ;;  %v1689_v40 = vld [vmem:[#allocation3 + $0xd4] sm:$0x1] }
  0xcf   : > { %2550 = vmatprep.subr.bf16.mxu1 %v3326_v2  ;;  %2651 = vmatprep.subr.bf16.mxu0 %v4064_v47  ;;  %1688 = vst [vmem:[#allocation3 + $0xb0] sm:$0x1] %v1687_v41  ;;  %v1690_v46 = vsel %vm3475_vm6, 0, %v1689_v40  ;;  %v1695_v49 = vld [vmem:[#allocation3 + $0x11c] sm:$0x1] }
  0xd0   : > { %1691 = vst [vmem:[#allocation3 + $0xd4] sm:$0x1] %v1690_v46  ;;  %v1696_v58 = vsel %vm3475_vm6, 0, %v1695_v49  ;;  %v4124_v1 = vld [vmem:[%s4474_s2] ss:$0 sm:$0xff] }
  0xd1   : > { %2551 = vmatpush1.bf16.msra.mxu1 %v3328_v22  ;;  %1697 = vst [vmem:[#allocation3 + $0x11c] sm:$0x1] %v1696_v58  ;;  %v1703_v34 = vld [vmem:[#allocation3 + $0x20] sm:$0x1]  ;;  %v1590_v58 = vld [vmem:[#allocation3 + $0x1c] sm:$0x1] }
  0xd2   : > { %2652 = vmatpush1.bf16.msra.mxu0 %v4072_v37  ;;  %2552 = vmatprep.subr.bf16.mxu1 %v3332_v42  ;;  %v1790_v54 = vshll.u32 %v1703_v34, 16 }
  0xd3   : > { %2653 = vmatprep.subr.bf16.mxu0 %v4082_v4 }
  0xd4   : > { %v1715_v45 = vld [vmem:[#allocation3 + $0x68] sm:$0x1]  ;;  %v4135_v14 = vrot.slane %v1790_v54, 5 }
  0xd5   : > { %1230 = vmatmul.mubr.bf16.gmra.mrb[24].mxu0 %v3023_v10  ;;  %2553 = vmatpush1.bf16.msra.mxu1 %v3334_v39  ;;  %v1886_v8 = vshll.u32 %v1715_v45, 16  ;;  %v1721_v12 = vld [vmem:[#allocation3 + $0x8c] sm:$0x1] }
  0xd6   : > { %3046 = vmatprep.mubr.msk.bf16.mxu0 %vm1124_vm8, %v3026_v21  ;;  %2654 = vmatpush1.bf16.msra.mxu0 %v4090_v6  ;;  %v1934_v15 = vshll.u32 %v1721_v12, 16 }
  0xd7   : > { %2554 = vmatprep.subr.bf16.mxu1 %v3338_v61 }
  0xd9   : > { %2555 = vmatpush1.bf16.msra.mxu1 %v3340_v30  ;;  %v1585_v30 = vld [vmem:[#allocation3 + $0x4] sm:$0xf] }
  0xda   : > { %2556 = vmatprep.subr.bf16.mxu1 %v3341_v16 }
  0xdd   : > { %1238 = vmatmul.mubr.bf16.gmra.mrb[28].mxu0 %v3025_v35  ;;  %2557 = vmatpush1.bf16.msra.mxu1 %v3343_v18  ;;  %v1709_v35 = vld [vmem:[#allocation3 + $0x44] sm:$0x1] }
  0xde   : > { %2671 = vmatprep.mubr.bf16.mxu0 %v3353_v0  ;;  %3170 = vmatprep.subr.bf16.mxu1 %v3831_v27  ;;  %v1692_v27 = vld [vmem:[#allocation3 + $0xf8] sm:$0x1]  ;;  %v1838_v11 = vshll.u32 %v1709_v35, 16 }
  0xdf   : > { %v1693_v38 = vsel %vm3475_vm6, 0, %v1692_v27  ;;  %v4140_v27 = vld [vmem:[#allocation3 + $0xb0] sm:$0x1] }
  0xe0   : > { %1694 = vst [vmem:[#allocation3 + $0xf8] sm:$0x1] %v1693_v38  ;;  %v1982_v35 = vshll.u32 %v4140_v27, 16 }
  0xe2   : > { %v1984_v44 = vrot.slane %v1982_v35, 5 }
 0x178   : > { %v1183_v25 = vpop.f32.mrb[0].mxu0 }
 0x179   : > { %v1184_v26 = vadd.f32 %v4124_v1, %v1183_v25  ;;  %v1185_v48 = vpop.f32.mrb[1].mxu0  ;;  %v4144_v25 = vrot.slane %v1838_v11, 5  ;;  %v1593_v11 = vld [vmem:[#allocation3 + $0x28] sm:$0xf] }
 0x17a   : > { %v1186_v32 = vpop.f32.mrb[2].mxu0 }
 0x17b   : > { %v1246_v50 = vmax.f32 %v1184_v26, 0.0  ;;  %v1187_v33 = vadd.f32 %v4124_v1, %v1186_v32  ;;  %v1188_v55 = vpop.f32.mrb[3].mxu0  ;;  %v4146_v26 = vrot.slane %v1886_v8, 5 }
 0x17d   : > { %v3154_v21 = vpack.c.bf16 %v1246_v50, %v1246_v50  ;;  %v1247_v10 = vmax.f32 %v1187_v33, 0.0 }
 0x17f   : > { %v1335_v17 = vrot.slane %v3154_v21, 7  ;;  %v1424_v29 = vshrl.u32 %v3154_v21, 16  ;;  %1658 = vst [vmem:[#allocation3 + $0x8] sm:$0xf] %v3154_v21  ;;  %v3155_v52 = vpack.c.bf16 %v1247_v10, %v1247_v10  ;;  %v1427_v7 = vshll.u32 %v3154_v21, 16 }
 0x180   : > { %v1191_v5 = vpop.f32.mrb[4].mxu0  ;;  %v4148_v10 = vrot.slane %v1934_v15, 5 }
 0x181   : > { %v1336_v63 = vrot.slane %v1335_v17, 4  ;;  %1399 = vst [vmem:[#allocation3] sm:$0xe] %v1335_v17  ;;  %v1426_v2 = vrot.slane %v1424_v29, 7  ;;  %v1337_v22 = vrot.slane %v3155_v52, 7  ;;  %v1432_v42 = vshrl.u32 %v3155_v52, 16 }
 0x182   : > { %1659 = vst [vmem:[#allocation3 + $0x14] sm:$0xf] %v3155_v52  ;;  %v1193_v39 = vpop.f32.mrb[5].mxu0  ;;  %v1192_v13 = vadd.f32 %v4124_v1, %v1191_v5  ;;  %v1435_v41 = vshll.u32 %v3155_v52, 16 }
 0x183   : > { %v1194_v16 = vpop.f32.mrb[6].mxu0  ;;  %v1429_v18 = vor.u32 %v1427_v7, %v1426_v2  ;;  %v1338_v19 = vsel %vm3662_vm12, %v1336_v63, %v1337_v22  ;;  %v1339_v24 = vrot.slane %v1337_v22, 4  ;;  %v1434_v23 = vrot.slane %v1432_v42, 7 }
 0x184   : > { %v1196_v20 = vpop.f32.mrb[7].mxu0  ;;  %1400 = vst [vmem:[#allocation3 + $0xc] sm:$0xf] %v1338_v19  ;;  %v1248_v40 = vmax.f32 %v1192_v13, 0.0  ;;  %v1195_v46 = vadd.f32 %v4124_v1, %v1194_v16  ;;  %v1430_v38 = vrot.slane %v1426_v2, 4 }
 0x185   : > { %v1586_v49 = vsel %vm4130_vm10, %v1429_v18, %v1585_v30  ;;  %1401 = vst [vmem:[#allocation3 + $0x18] sm:$0x1] %v1339_v24  ;;  %v1437_v48 = vor.u32 %v1435_v41, %v1434_v23  ;;  %v1439_v32 = vrot.slane %v1434_v23, 4 }
 0x186   : > { %1587 = vst [vmem:[#allocation3 + $0x4] sm:$0xf] %v1586_v49  ;;  %v3156_v50 = vpack.c.bf16 %v1248_v40, %v1248_v40  ;;  %v1249_v33 = vmax.f32 %v1195_v46, 0.0  ;;  %v1699_v55 = vld [vmem:[#allocation3 + $0x8] sm:$0xf] }
 0x187   : > { %v1761_v34 = vshrl.u32 %v1699_v55, 16  ;;  %v1764_v21 = vshll.u32 %v1699_v55, 16  ;;  %v1438_v45 = vsel %vm3458_vm3, %v1430_v38, %v1437_v48  ;;  %v1591_v54 = vsel %vm3475_vm6, %v1439_v32, %v1590_v58  ;;  %v1597_v32 = vld [vmem:[#allocation3 + $0x40] sm:$0x1] }
 0x188   : > { %v1340_v17 = vrot.slane %v3156_v50, 7  ;;  %v1441_v29 = vshrl.u32 %v3156_v50, 16  ;;  %1660 = vst [vmem:[#allocation3 + $0x2c] sm:$0xf] %v3156_v50  ;;  %v1199_v52 = vpop.f32.mrb[8].mxu0  ;;  %v1444_v5 = vshll.u32 %v3156_v50, 16  ;;  %v3157_v8 = vpack.c.bf16 %v1249_v33, %v1249_v33 }
 0x189   : > { %v4155_v7 = vld [vmem:[#allocation3 + $0x14] sm:$0xf]  ;;  %1588 = vst [vmem:[#allocation3 + $0x10] sm:$0xf] %v1438_v45  ;;  %1592 = vst [vmem:[#allocation3 + $0x1c] sm:$0x1] %v1591_v54  ;;  %v1200_v12 = vadd.f32 %v4124_v1, %v1199_v52 }
 0x18a   : > { %v1201_v63 = vpop.f32.mrb[9].mxu0  ;;  %v1763_v2 = vrot.slane %v1761_v34, 4  ;;  %v1341_v22 = vrot.slane %v1340_v17, 4  ;;  %1402 = vst [vmem:[#allocation3 + $0x24] sm:$0xe] %v1340_v17  ;;  %v1443_v42 = vrot.slane %v1441_v29, 7 }
 0x18b   : > { %v1202_v39 = vpop.f32.mrb[10].mxu0  ;;  %v1766_v30 = vrot.slane %v1764_v21, 5  ;;  %v1770_v13 = vshll.u32 %v4155_v7, 16  ;;  %v1342_v16 = vrot.slane %v3157_v8, 7  ;;  %v1449_v18 = vshrl.u32 %v3157_v8, 16 }
 0x18c   : > { %v1452_v19 = vshll.u32 %v3157_v8, 16  ;;  %1661 = vst [vmem:[#allocation3 + $0x38] sm:$0xf] %v3157_v8  ;;  %v1250_v24 = vmax.f32 %v1200_v12, 0.0  ;;  %v1204_v20 = vpop.f32.mrb[11].mxu0  ;;  %v1446_v15 = vor.u32 %v1444_v5, %v1443_v42  ;;  %v1447_v23 = vrot.slane %v1443_v42, 4 }
 0x18d   : > { %v1203_v41 = vadd.f32 %v4124_v1, %v1202_v39  ;;  %v1767_v40 = vor.u32 %v1766_v30, %v1763_v2  ;;  %v1343_v46 = vsel %vm3662_vm12, %v1341_v22, %v1342_v16  ;;  %v1344_v38 = vrot.slane %v1342_v16, 4  ;;  %v1600_v22 = vld [vmem:[#allocation3 + $0x4c] sm:$0xf] }
 0x18e   : > { %v1451_v49 = vrot.slane %v1449_v18, 7  ;;  %v3158_v58 = vpack.c.bf16 %v1250_v24, %v1250_v24  ;;  %v1594_v48 = vsel %vm4130_vm10, %v1446_v15, %v1593_v11  ;;  %1403 = vst [vmem:[#allocation3 + $0x30] sm:$0xf] %v1343_v46  ;;  %v4166_v55 = vrot.slane %v1770_v13, 5  ;;  %v4178_v18 = vld [vmem:[#allocation3] sm:$0xff] }
 0x18f   : > { %v1251_v50 = vmax.f32 %v1203_v41, 0.0  ;;  %v4164_v33 = vrot.slane %v1767_v40, 4  ;;  %1595 = vst [vmem:[#allocation3 + $0x28] sm:$0xf] %v1594_v48  ;;  %1404 = vst [vmem:[#allocation3 + $0x3c] sm:$0x1] %v1344_v38 }
 0x190   : > { %v1454_v34 = vor.u32 %v1452_v19, %v1451_v49  ;;  %v1456_v21 = vrot.slane %v1451_v49, 4  ;;  %v1345_v45 = vrot.slane %v3158_v58, 7  ;;  %v1458_v54 = vshrl.u32 %v3158_v58, 16  ;;  %1662 = vst [vmem:[#allocation3 + $0x50] sm:$0xf] %v3158_v58  ;;  %v1207_v52 = vpop.f32.mrb[12].mxu0 }
 0x191   : > { %v1461_v17 = vshll.u32 %v3158_v58, 16  ;;  %v3159_v29 = vpack.c.bf16 %v1251_v50, %v1251_v50  ;;  %v1773_v5 = vsel %vm3894_vm7, %v4164_v33, %v4166_v55  ;;  %v1784_v11 = vshrl.u32 %v4155_v7, 16  ;;  %v1209_v42 = vpop.f32.mrb[13].mxu0  ;;  %v4183_v49 = vld [vmem:[#allocation3 + $0xc] sm:$0xff]  ;;  %v1604_v48 = vld [vmem:[#allocation3 + $0x64] sm:$0x1] }
 0x192   : > { %v1455_v8 = vsel %vm3458_vm3, %v1447_v23, %v1454_v34  ;;  %v1598_v12 = vsel %vm3475_vm6, %v1456_v21, %v1597_v32  ;;  %v1346_v63 = vrot.slane %v1345_v45, 4  ;;  %1405 = vst [vmem:[#allocation3 + $0x48] sm:$0xe] %v1345_v45  ;;  %v1460_v2 = vrot.slane %v1458_v54, 7  ;;  %v1210_v7 = vpop.f32.mrb[14].mxu0 }
 0x193   : > { %1596 = vst [vmem:[#allocation3 + $0x34] sm:$0xf] %v1455_v8  ;;  %1599 = vst [vmem:[#allocation3 + $0x40] sm:$0x1] %v1598_v12  ;;  %v1347_v39 = vrot.slane %v3159_v29, 7  ;;  %v1466_v30 = vshrl.u32 %v3159_v29, 16  ;;  %v1208_v16 = vadd.f32 %v4124_v1, %v1207_v52  ;;  %v1211_v20 = vadd.f32 %v4124_v1, %v1210_v7 }
 0x194   : > { %v1469_v13 = vshll.u32 %v3159_v29, 16  ;;  %1663 = vst [vmem:[#allocation3 + $0x5c] sm:$0xf] %v3159_v29  ;;  %v1463_v19 = vor.u32 %v1461_v17, %v1460_v2  ;;  %v1464_v24 = vrot.slane %v1460_v2, 4  ;;  %v1212_v15 = vpop.f32.mrb[15].mxu0  ;;  %v1786_v23 = vrot.slane %v1784_v11, 4 }
 0x195   : > { %v1348_v41 = vsel %vm3662_vm12, %v1346_v63, %v1347_v39  ;;  %v1349_v40 = vrot.slane %v1347_v39, 4  ;;  %v1468_v46 = vrot.slane %v1466_v30, 7  ;;  %v1252_v38 = vmax.f32 %v1208_v16, 0.0 }
 0x196   : > { %v1601_v58 = vsel %vm4130_vm10, %v1463_v19, %v1600_v22  ;;  %1406 = vst [vmem:[#allocation3 + $0x54] sm:$0xf] %v1348_v41  ;;  %v1253_v32 = vmax.f32 %v1211_v20, 0.0  ;;  %v1787_v50 = vor.u32 %v1786_v23, %v4166_v55  ;;  %v1747_v34 = vshrl.u32 %v4178_v18, 16  ;;  %v1607_v23 = vld [vmem:[#allocation3 + $0x70] sm:$0xf] }
 0x197   : > { %1602 = vst [vmem:[#allocation3 + $0x4c] sm:$0xf] %v1601_v58  ;;  %1407 = vst [vmem:[#allocation3 + $0x60] sm:$0x1] %v1349_v40  ;;  %v1471_v21 = vor.u32 %v1469_v13, %v1468_v46  ;;  %v1473_v45 = vrot.slane %v1468_v46, 4  ;;  %v3160_v54 = vpack.c.bf16 %v1252_v38, %v1252_v38  ;;  %v1750_v17 = vshll.u32 %v4178_v18, 16 }
 0x198   : > { %v3161_v29 = vpack.c.bf16 %v1253_v32, %v1253_v32  ;;  %v1788_v52 = vrot.slane %v1787_v50, 4  ;;  %v4190_v11 = vrot.slane %v1747_v34, 4  ;;  %v1756_v8 = vshll.u32 %v4183_v49, 16  ;;  %v1215_v42 = vpop.f32.mrb[16].mxu0  ;;  %v1611_v50 = vld [vmem:[#allocation3 + $0x88] sm:$0x1] }
 0x199   : > { %v1472_v12 = vsel %vm3458_vm3, %v1464_v24, %v1471_v21  ;;  %v1605_v63 = vsel %vm3475_vm6, %v1473_v45, %v1604_v48  ;;  %v1350_v2 = vrot.slane %v3160_v54, 7  ;;  %v1475_v22 = vshrl.u32 %v3160_v54, 16  ;;  %1664 = vst [vmem:[#allocation3 + $0x74] sm:$0xf] %v3160_v54  ;;  %v1217_v7 = vpop.f32.mrb[17].mxu0 }
 0x19a   : > { %1603 = vst [vmem:[#allocation3 + $0x58] sm:$0xf] %v1472_v12  ;;  %1606 = vst [vmem:[#allocation3 + $0x64] sm:$0x1] %v1605_v63  ;;  %v1478_v39 = vshll.u32 %v3160_v54, 16  ;;  %v1352_v30 = vrot.slane %v3161_v29, 7  ;;  %v1793_v24 = vsel %vm3894_vm7, %v1788_v52, %v4135_v14  ;;  %v1216_v20 = vadd.f32 %v4124_v1, %v1215_v42 }
 0x19b   : > { %v1483_v13 = vshrl.u32 %v3161_v29, 16  ;;  %v1486_v16 = vshll.u32 %v3161_v29, 16  ;;  %1665 = vst [vmem:[#allocation3 + $0x80] sm:$0xf] %v3161_v29  ;;  %v1351_v18 = vrot.slane %v1350_v2, 4  ;;  %v1477_v19 = vrot.slane %v1475_v22, 7 }
 0x19c   : > { %1408 = vst [vmem:[#allocation3 + $0x6c] sm:$0xe] %v1350_v2  ;;  %v1218_v15 = vpop.f32.mrb[18].mxu0  ;;  %v1354_v41 = vrot.slane %v1352_v30, 4  ;;  %v3065_v46 = vcombine.low %v1773_v5, %v1793_v24  ;;  %v1254_v34 = vmax.f32 %v1216_v20, 0.0  ;;  %v1752_v29 = vrot.slane %v1750_v17, 5 }
 0x19d   : > { %v1485_v40 = vrot.slane %v1483_v13, 7  ;;  %v1219_v38 = vadd.f32 %v4124_v1, %v1218_v15  ;;  %v1220_v58 = vpop.f32.mrb[19].mxu0  ;;  %v1480_v48 = vor.u32 %v1478_v39, %v1477_v19  ;;  %v1481_v32 = vrot.slane %v1477_v19, 4  ;;  %v1702_v22 = vld [vmem:[#allocation3 + $0x18] sm:$0x11] }
 0x19e   : > { %v1353_v14 = vsel %vm3662_vm12, %v1351_v18, %v1352_v30  ;;  %1410 = vst [vmem:[#allocation3 + $0x84] sm:$0x1] %v1354_v41  ;;  %2672 = vmatmul.mubr.bf16.vlgmr.msra.gmra.mrb[32].mxu0 %v3065_v46  ;;  %v3162_v55 = vpack.c.bf16 %v1254_v34, %v1254_v34  ;;  %v1758_v5 = vrot.slane %v1756_v8, 5  ;;  %v1774_v52 = vshrl.u32 %v4183_v49, 16  ;;  %v1705_v42 = vld [vmem:[#allocation3 + $0x2c] sm:$0xf] }
 0x19f   : > { %1409 = vst [vmem:[#allocation3 + $0x78] sm:$0xf] %v1353_v14  ;;  %v1488_v21 = vor.u32 %v1486_v16, %v1485_v40  ;;  %v1490_v45 = vrot.slane %v1485_v40, 4  ;;  %v1255_v54 = vmax.f32 %v1219_v38, 0.0  ;;  %v1608_v33 = vsel %vm4130_vm10, %v1480_v48, %v1607_v23  ;;  %2681 = vmatprep.mubr.bf16.mxu0 %v3353_v0  ;;  %v1614_v23 = vld [vmem:[#allocation3 + $0x94] sm:$0xf] }
 0x1a0   : > { %1609 = vst [vmem:[#allocation3 + $0x70] sm:$0xf] %v1608_v33  ;;  %v1753_v17 = vor.u32 %v1752_v29, %v4190_v11  ;;  %v1355_v39 = vrot.slane %v3162_v55, 7  ;;  %v1492_v8 = vshrl.u32 %v3162_v55, 16  ;;  %v1495_v30 = vshll.u32 %v3162_v55, 16  ;;  %v1223_v13 = vpop.f32.mrb[20].mxu0 }
 0x1a1   : > { %v1489_v12 = vsel %vm3458_vm3, %v1481_v32, %v1488_v21  ;;  %v1612_v63 = vsel %vm3475_vm6, %v1490_v45, %v1611_v50  ;;  %v3163_v2 = vpack.c.bf16 %v1255_v54, %v1255_v54  ;;  %1666 = vst [vmem:[#allocation3 + $0x98] sm:$0xf] %v3162_v55  ;;  %v1776_v49 = vrot.slane %v1774_v52, 4  ;;  %v1225_v24 = vpop.f32.mrb[21].mxu0  ;;  %v1707_v48 = vld [vmem:[#allocation3 + $0x38] sm:$0xf] }
 0x1a2   : > { %1610 = vst [vmem:[#allocation3 + $0x7c] sm:$0xf] %v1489_v12  ;;  %1613 = vst [vmem:[#allocation3 + $0x88] sm:$0x1] %v1612_v63  ;;  %v1754_v19 = vrot.slane %v1753_v17, 4  ;;  %v1356_v20 = vrot.slane %v1355_v39, 4 }
 0x1a3   : > { %v1357_v16 = vrot.slane %v3163_v2, 7  ;;  %v1500_v7 = vshrl.u32 %v3163_v2, 16  ;;  %v1503_v18 = vshll.u32 %v3163_v2, 16  ;;  %1667 = vst [vmem:[#allocation3 + $0xa4] sm:$0xf] %v3163_v2  ;;  %v1494_v15 = vrot.slane %v1492_v8, 7 }
 0x1a4   : > { %1411 = vst [vmem:[#allocation3 + $0x90] sm:$0xe] %v1355_v39  ;;  %v1777_v11 = vor.u32 %v1776_v49, %v1758_v5  ;;  %v1780_v41 = vshll.u32 %v1702_v22, 16  ;;  %v1226_v40 = vpop.f32.mrb[22].mxu0  ;;  %v1759_v58 = vsel %vm3894_vm7, %v1754_v19, %v1758_v5  ;;  %v1809_v32 = vshrl.u32 %v1705_v42, 16  ;;  %v1704_v22 = vld [vmem:[#allocation3 + $0x24] sm:$0xff] }
 0x1a5   : > { %v1359_v46 = vrot.slane %v1357_v16, 4  ;;  %v1502_v38 = vrot.slane %v1500_v7, 7  ;;  %v1228_v14 = vpop.f32.mrb[23].mxu0  ;;  %v1497_v50 = vor.u32 %v1495_v30, %v1494_v15  ;;  %v1498_v34 = vrot.slane %v1494_v15, 4  ;;  %v1618_v45 = vld [vmem:[#allocation3 + $0xac] sm:$0x1] }
 0x1a6   : > { %v1358_v21 = vsel %vm3662_vm12, %v1356_v20, %v1357_v16  ;;  %v1778_v54 = vrot.slane %v1777_v11, 4  ;;  %v1782_v55 = vrot.slane %v1780_v41, 5  ;;  %v1811_v52 = vrot.slane %v1809_v32, 4  ;;  %v1706_v49 = vld [vmem:[#allocation3 + $0x30] sm:$0xff] }
 0x1a7   : > { %1412 = vst [vmem:[#allocation3 + $0x9c] sm:$0xf] %v1358_v21  ;;  %1413 = vst [vmem:[#allocation3 + $0xa8] sm:$0x1] %v1359_v46  ;;  %v1505_v29 = vor.u32 %v1503_v18, %v1502_v38  ;;  %v1507_v33 = vrot.slane %v1502_v38, 4  ;;  %v1615_v12 = vsel %vm4130_vm10, %v1497_v50, %v1614_v23  ;;  %v1812_v5 = vshll.u32 %v1705_v42, 16 }
 0x1a8   : > { %v1818_v63 = vshll.u32 %v1707_v48, 16  ;;  %v1832_v2 = vshrl.u32 %v1707_v48, 16  ;;  %1616 = vst [vmem:[#allocation3 + $0x94] sm:$0xf] %v1615_v12  ;;  %v1783_v8 = vsel %vm3894_vm7, %v1778_v54, %v1782_v55  ;;  %v1224_v30 = vadd.f32 %v4124_v1, %v1223_v13  ;;  %v4231_v19 = vpop.f32.mrb[24].mxu0 }
 0x1a9   : > { %v1506_v17 = vsel %vm3458_vm3, %v1498_v34, %v1505_v29  ;;  %v1619_v39 = vsel %vm3475_vm6, %v1507_v33, %v1618_v45  ;;  %v3063_v16 = vcombine.low %v1759_v58, %v1783_v8  ;;  %v3064_v42 = vcombine.high %v1759_v58, %v1783_v8  ;;  %v1233_v11 = vpop.f32.mrb[25].mxu0  ;;  %v3344_v21 = vld [vmem:[%s4475_s3 + $0x100] ss:$8 sps:$4 sm:$0xff]  }
 0x1aa   : > { %1617 = vst [vmem:[#allocation3 + $0xa0] sm:$0xf] %v1506_v17  ;;  %1620 = vst [vmem:[#allocation3 + $0xac] sm:$0x1] %v1619_v39  ;;  %v1814_v7 = vrot.slane %v1812_v5, 5  ;;  %v1820_v18 = vrot.slane %v1818_v63, 5  ;;  %v1227_v15 = vadd.f32 %v4124_v1, %v1226_v40 }
 0x1ab   : > { %v1834_v24 = vrot.slane %v1832_v2, 4  ;;  %v1256_v20 = vmax.f32 %v1224_v30, 0.0  ;;  %v1795_v23 = vshrl.u32 %v1704_v22, 16  ;;  %2558 = vmatprep.mubr.bf16.mxu1 %v3064_v42  ;;  %v1798_v46 = vshll.u32 %v1704_v22, 16  ;;  %v4234_v48 = vpop.f32.mrb[26].mxu0 }
 0x1ac   : > { %v1815_v41 = vor.u32 %v1814_v7, %v1811_v52  ;;  %v1804_v38 = vshll.u32 %v1706_v49, 16  ;;  %v1822_v13 = vshrl.u32 %v1706_v49, 16  ;;  %2559 = vmatmul.mubr.bf16.vlgmr.msra.gmra.mrb[0].mxu1 %v3063_v16  ;;  %v1257_v14 = vmax.f32 %v1227_v15, 0.0  ;;  %v1236_v34 = vpop.f32.mrb[27].mxu0  ;;  %v1708_v45 = vld [vmem:[#allocation3 + $0x3c] sm:$0x11] }
 0x1ad   : > { %v1835_v32 = vor.u32 %v1834_v24, %v1820_v18  ;;  %v3164_v58 = vpack.c.bf16 %v1256_v20, %v1256_v20  ;;  %v1797_v50 = vrot.slane %v1795_v23, 4  ;;  %3178 = vmatpush1.bf16.msra.mxu1 %v3344_v21  ;;  %v1800_v54 = vrot.slane %v1798_v46, 5  ;;  %v1621_v49 = vld [vmem:[#allocation3 + $0xb8] sm:$0xf] }
 0x1ae   : > { %v1816_v40 = vrot.slane %v1815_v41, 4  ;;  %v1806_v29 = vrot.slane %v1804_v38, 5  ;;  %v1824_v33 = vrot.slane %v1822_v13, 4  ;;  %3171 = vmatprep.subr.bf16.mxu1 %v3972_v43  ;;  %v3165_v2 = vpack.c.bf16 %v1257_v14, %v1257_v14  ;;  %v1711_v43 = vld [vmem:[#allocation3 + $0x50] sm:$0xf] }
 0x1af   : > { %v1836_v55 = vrot.slane %v1835_v32, 4  ;;  %v1360_v52 = vrot.slane %v3164_v58, 7  ;;  %v1509_v12 = vshrl.u32 %v3164_v58, 16  ;;  %v1512_v5 = vshll.u32 %v3164_v58, 16  ;;  %1668 = vst [vmem:[#allocation3 + $0xbc] sm:$0xf] %v3164_v58 }
 0x1b0   : > { %v1821_v63 = vsel %vm3894_vm7, %v1816_v40, %v1820_v18  ;;  %v1801_v22 = vor.u32 %v1800_v54, %v1797_v50  ;;  %v1825_v17 = vor.u32 %v1824_v33, %v1806_v29  ;;  %v1828_v16 = vshll.u32 %v1708_v45, 16  ;;  %1669 = vst [vmem:[#allocation3 + $0xc8] sm:$0xf] %v3165_v2  ;;  %v4246_v18 = vpop.f32.mrb[28].mxu0  ;;  %v1625_v50 = vld [vmem:[#allocation3 + $0xd0] sm:$0x1] }
 0x1b1   : > { %v1841_v39 = vsel %vm3894_vm7, %v1836_v55, %v4144_v25  ;;  %v1361_v8 = vrot.slane %v1360_v52, 4  ;;  %1414 = vst [vmem:[#allocation3 + $0xb4] sm:$0xe] %v1360_v52  ;;  %v1511_v30 = vrot.slane %v1509_v12, 7  ;;  %v1362_v7 = vrot.slane %v3165_v2, 7  ;;  %3179 = vmatpush1.bf16.msra.mxu1 %v3980_v36  ;;  %v1241_v46 = vpop.f32.mrb[29].mxu0 }
 0x1b2   : > { %v3068_v42 = vcombine.low %v1821_v63, %v1841_v39  ;;  %v1517_v24 = vshrl.u32 %v3165_v2, 16  ;;  %v1520_v20 = vshll.u32 %v3165_v2, 16  ;;  %v1802_v11 = vrot.slane %v1801_v22, 4  ;;  %v1713_v25 = vld [vmem:[#allocation3 + $0x5c] sm:$0xf]  ;;  %3172 = vmatprep.subr.bf16.mxu1 %v3990_v56  ;;  %v4251_v14 = vpop.f32.mrb[30].mxu0 }
 0x1b3   : > { %v1514_v15 = vor.u32 %v1512_v5, %v1511_v30  ;;  %v1515_v23 = vrot.slane %v1511_v30, 4  ;;  %v1826_v41 = vrot.slane %v1825_v17, 4  ;;  %v1363_v38 = vsel %vm3662_vm12, %v1361_v8, %v1362_v7  ;;  %v1244_v40 = vpop.f32.mrb[31].mxu0  ;;  %v1710_v52 = vld [vmem:[#allocation3 + $0x48] sm:$0xff]  ;;  %v1712_v2 = vld [vmem:[#allocation3 + $0x54] sm:$0xff] }
 0x1b4   : > { %2682 = vmatmul.mubr.bf16.gmra.mrb[36].mxu0 %v3068_v42  ;;  %v1364_v13 = vrot.slane %v1362_v7, 4  ;;  %v1519_v32 = vrot.slane %v1517_v24, 7  ;;  %v1830_v58 = vrot.slane %v1828_v16, 5  ;;  %1415 = vst [vmem:[#allocation3 + $0xc0] sm:$0xf] %v1363_v38  ;;  %v1807_v34 = vsel %vm3894_vm7, %v1802_v11, %v1806_v29 }
 0x1b5   : > { %v1622_v36 = vsel %vm4130_vm10, %v1514_v15, %v1621_v49  ;;  %2691 = vmatprep.mubr.bf16.mxu0 %v3353_v0  ;;  %v1857_v56 = vshrl.u32 %v1711_v43, 16  ;;  %v1860_v21 = vshll.u32 %v1711_v43, 16  ;;  %v1866_v55 = vshll.u32 %v1713_v25, 16  ;;  %3180 = vmatpush1.bf16.msra.mxu1 %v3998_v59  ;;  %v1714_v42 = vld [vmem:[#allocation3 + $0x60] sm:$0x11] }
 0x1b6   : > { %1623 = vst [vmem:[#allocation3 + $0xb8] sm:$0xf] %v1622_v36  ;;  %1416 = vst [vmem:[#allocation3 + $0xcc] sm:$0x1] %v1364_v13  ;;  %v1522_v45 = vor.u32 %v1520_v20, %v1519_v32  ;;  %v1524_v54 = vrot.slane %v1519_v32, 4  ;;  %v1831_v33 = vsel %vm3894_vm7, %v1826_v41, %v1830_v58  ;;  %3173 = vmatprep.subr.bf16.mxu1 %v4008_v51  ;;  %v1880_v8 = vshrl.u32 %v1713_v25, 16 }
 0x1b7   : > { %v3067_v12 = vcombine.high %v1807_v34, %v1831_v33  ;;  %v3066_v5 = vcombine.low %v1807_v34, %v1831_v33  ;;  %v1859_v63 = vrot.slane %v1857_v56, 4  ;;  %v1862_v29 = vrot.slane %v1860_v21, 5  ;;  %v4270_v41 = vld [vmem:[#allocation3 + $0x74] sm:$0xf] }
 0x1b8   : > { %v1523_v22 = vsel %vm3458_vm3, %v1515_v23, %v1522_v45  ;;  %v1626_v17 = vsel %vm3475_vm6, %v1524_v54, %v1625_v50  ;;  %v1868_v39 = vrot.slane %v1866_v55, 5  ;;  %v1232_v59 = vadd.f32 %v4124_v1, %v4231_v19 }
 0x1b9   : > { %1624 = vst [vmem:[#allocation3 + $0xc4] sm:$0xf] %v1523_v22  ;;  %1627 = vst [vmem:[#allocation3 + $0xd0] sm:$0x1] %v1626_v17  ;;  %2568 = vmatprep.mubr.bf16.mxu1 %v3067_v12  ;;  %v1863_v30 = vor.u32 %v1862_v29, %v1859_v63  ;;  %v1235_v49 = vadd.f32 %v4124_v1, %v4234_v48  ;;  %v1843_v16 = vshrl.u32 %v1710_v52, 16  ;;  %v1882_v51 = vrot.slane %v1880_v8, 4 }
 0x1ba   : > { %2569 = vmatmul.mubr.bf16.gmra.mrb[4].mxu1 %v3066_v5  ;;  %v1846_v7 = vshll.u32 %v1710_v52, 16  ;;  %v1852_v24 = vshll.u32 %v1712_v2, 16  ;;  %v1870_v20 = vshrl.u32 %v1712_v2, 16  ;;  %v1258_v15 = vmax.f32 %v1232_v59, 0.0  ;;  %v1628_v63 = vld [vmem:[#allocation3 + $0xdc] sm:$0xf] }
 0x1bb   : > { %v1864_v43 = vrot.slane %v1863_v30, 4  ;;  %v1259_v23 = vmax.f32 %v1235_v49, 0.0  ;;  %v1845_v11 = vrot.slane %v1843_v16, 4  ;;  %3181 = vmatpush1.bf16.msra.mxu1 %v4016_v31  ;;  %v1883_v25 = vor.u32 %v1882_v51, %v1868_v39 }
 0x1bc   : > { %v1848_v19 = vrot.slane %v1846_v7, 5  ;;  %v1854_v46 = vrot.slane %v1852_v24, 5  ;;  %v1872_v38 = vrot.slane %v1870_v20, 4  ;;  %3174 = vmatprep.subr.bf16.mxu1 %v4026_v57  ;;  %v3166_v13 = vpack.c.bf16 %v1258_v15, %v1258_v15  ;;  %v1716_v7 = vld [vmem:[#allocation3 + $0x6c] sm:$0xff] }
 0x1bd   : > { %v1869_v48 = vsel %vm3894_vm7, %v1864_v43, %v1868_v39  ;;  %v3167_v32 = vpack.c.bf16 %v1259_v23, %v1259_v23  ;;  %v1876_v58 = vshll.u32 %v1714_v42, 16  ;;  %v1884_v36 = vrot.slane %v1883_v25, 4  ;;  %v1719_v39 = vld [vmem:[#allocation3 + $0x80] sm:$0xf] }
 0x1be   : > { %v1849_v50 = vor.u32 %v1848_v19, %v1845_v11  ;;  %v1873_v34 = vor.u32 %v1872_v38, %v1854_v46  ;;  %v1905_v56 = vshrl.u32 %v4270_v41, 16  ;;  %v1365_v21 = vrot.slane %v3166_v13, 7  ;;  %1670 = vst [vmem:[#allocation3 + $0xe0] sm:$0xf] %v3166_v13 }
 0x1bf   : > { %v1526_v40 = vshrl.u32 %v3166_v13, 16  ;;  %v1529_v31 = vshll.u32 %v3166_v13, 16  ;;  %v1367_v45 = vrot.slane %v3167_v32, 7  ;;  %1671 = vst [vmem:[#allocation3 + $0xec] sm:$0xf] %v3167_v32  ;;  %3182 = vmatpush1.bf16.msra.mxu1 %v4034_v60  ;;  %v1889_v57 = vsel %vm3894_vm7, %v1884_v36, %v4146_v26 }
 0x1c0   : > { %v1534_v54 = vshrl.u32 %v3167_v32, 16  ;;  %v1537_v33 = vshll.u32 %v3167_v32, 16  ;;  %v1850_v55 = vrot.slane %v1849_v50, 4  ;;  %3175 = vmatprep.subr.bf16.mxu1 %v4046_v62  ;;  %v3071_v52 = vcombine.low %v1869_v48, %v1889_v57  ;;  %1417 = vst [vmem:[#allocation3 + $0xd8] sm:$0xe] %v1365_v21 }
 0x1c1   : > { %v1366_v12 = vrot.slane %v1365_v21, 4  ;;  %v1528_v5 = vrot.slane %v1526_v40, 7  ;;  %v1369_v29 = vrot.slane %v1367_v45, 4  ;;  %v1874_v60 = vrot.slane %v1873_v34, 4  ;;  %v1632_v62 = vld [vmem:[#allocation3 + $0xf4] sm:$0x1] }
 0x1c2   : > { %v1536_v2 = vrot.slane %v1534_v54, 7  ;;  %v1855_v22 = vsel %vm3894_vm7, %v1850_v55, %v1854_v46  ;;  %v1878_v17 = vrot.slane %v1876_v58, 5  ;;  %2692 = vmatmul.mubr.bf16.gmra.mrb[40].mxu0 %v3071_v52  ;;  %v1907_v59 = vrot.slane %v1905_v56, 4  ;;  %v1720_v32 = vld [vmem:[#allocation3 + $0x84] sm:$0x11] }
 0x1c3   : > { %v1531_v26 = vor.u32 %v1529_v31, %v1528_v5  ;;  %v1532_v8 = vrot.slane %v1528_v5, 4  ;;  %v1368_v30 = vsel %vm3662_vm12, %v1366_v12, %v1367_v45  ;;  %1419 = vst [vmem:[#allocation3 + $0xf0] sm:$0x1] %v1369_v29  ;;  %3183 = vmatpush1.bf16.msra.mxu1 %v4054_v3  ;;  %2701 = vmatprep.mubr.bf16.mxu0 %v3353_v0  ;;  %v1908_v42 = vshll.u32 %v4270_v41, 16  ;;  %v1718_v3 = vld [vmem:[#allocation3 + $0x78] sm:$0xff] }
 0x1c4   : > { %1418 = vst [vmem:[#allocation3 + $0xe4] sm:$0xf] %v1368_v30  ;;  %v1539_v49 = vor.u32 %v1537_v33, %v1536_v2  ;;  %v1541_v16 = vrot.slane %v1536_v2, 4  ;;  %v1879_v51 = vsel %vm3894_vm7, %v1874_v60, %v1878_v17  ;;  %3176 = vmatprep.subr.bf16.mxu1 %v4064_v47  ;;  %v1914_v15 = vshll.u32 %v1719_v39, 16  ;;  %v1723_v40 = vld [vmem:[#allocation3 + $0x98] sm:$0xf] }
 0x1c5   : > { %v1629_v24 = vsel %vm4130_vm10, %v1531_v26, %v1628_v63  ;;  %v3070_v20 = vcombine.high %v1855_v22, %v1879_v51  ;;  %v3069_v43 = vcombine.low %v1855_v22, %v1879_v51  ;;  %v1910_v25 = vrot.slane %v1908_v42, 5  ;;  %v1725_v51 = vld [vmem:[#allocation3 + $0xa4] sm:$0xf]  ;;  %v1722_v42 = vld [vmem:[#allocation3 + $0x90] sm:$0xff] }
 0x1c6   : > { %1630 = vst [vmem:[#allocation3 + $0xdc] sm:$0xf] %v1629_v24  ;;  %v1540_v23 = vsel %vm3458_vm3, %v1532_v8, %v1539_v49  ;;  %v1633_v11 = vsel %vm3475_vm6, %v1541_v16, %v1632_v62  ;;  %v1928_v19 = vshrl.u32 %v1719_v39, 16  ;;  %v1916_v47 = vrot.slane %v1914_v15, 5  ;;  %v1635_v8 = vld [vmem:[#allocation3 + $0x100] sm:$0xf] }
 0x1c7   : > { %1631 = vst [vmem:[#allocation3 + $0xe8] sm:$0xf] %v1540_v23  ;;  %1634 = vst [vmem:[#allocation3 + $0xf4] sm:$0x1] %v1633_v11  ;;  %2578 = vmatprep.mubr.bf16.mxu1 %v3070_v20  ;;  %v1240_v41 = vadd.f32 %v4124_v1, %v4246_v18  ;;  %v1243_v46 = vadd.f32 %v4124_v1, %v4251_v14  ;;  %v1891_v38 = vshrl.u32 %v1716_v7, 16  ;;  %3184 = vmatpush1.bf16.msra.mxu1 %v4072_v37 }
 0x1c8   : > { %2579 = vmatmul.mubr.bf16.gmra.mrb[8].mxu1 %v3069_v43  ;;  %v1911_v48 = vor.u32 %v1910_v25, %v1907_v59  ;;  %v1930_v13 = vrot.slane %v1928_v19, 4  ;;  %v1894_v58 = vshll.u32 %v1716_v7, 16  ;;  %v1900_v36 = vshll.u32 %v1718_v3, 16  ;;  %3177 = vmatprep.subr.bf16.mxu1 %v4082_v4  ;;  %v1639_v20 = vld [vmem:[#allocation3 + $0x118] sm:$0x1] }
 0x1c9   : > { %v1260_v50 = vmax.f32 %v1240_v41, 0.0  ;;  %v1261_v34 = vmax.f32 %v1243_v46, 0.0  ;;  %v1893_v56 = vrot.slane %v1891_v38, 4  ;;  %v1918_v21 = vshrl.u32 %v1718_v3, 16  ;;  %v1724_v41 = vld [vmem:[#allocation3 + $0x9c] sm:$0xff] }
 0x1ca   : > { %v1912_v18 = vrot.slane %v1911_v48, 4  ;;  %v1931_v31 = vor.u32 %v1930_v13, %v1916_v47  ;;  %v1896_v45 = vrot.slane %v1894_v58, 5  ;;  %v1902_v1 = vrot.slane %v1900_v36, 5 }
 0x1cb   : > { %v3168_v14 = vpack.c.bf16 %v1260_v50, %v1260_v50  ;;  %v3169_v57 = vpack.c.bf16 %v1261_v34, %v1261_v34  ;;  %v1920_v37 = vrot.slane %v1918_v21, 4  ;;  %v1924_v54 = vshll.u32 %v1720_v32, 16  ;;  %3185 = vmatpush1.bf16.msra.mxu1 %v4090_v6  ;;  %v1728_v32 = vld [vmem:[#allocation3 + $0xb4] sm:$0xff] }
 0x1cc   : > { %v1917_v33 = vsel %vm3894_vm7, %v1912_v18, %v1916_v47  ;;  %v1932_v55 = vrot.slane %v1931_v31, 4  ;;  %v1897_v4 = vor.u32 %v1896_v45, %v1893_v56  ;;  %v1953_v52 = vshrl.u32 %v1723_v40, 16  ;;  %v1726_v56 = vld [vmem:[#allocation3 + $0xa8] sm:$0x11]  ;;  %v1730_v45 = vld [vmem:[#allocation3 + $0xc0] sm:$0xff] }
 0x1cd   : > { %v1370_v12 = vrot.slane %v3168_v14, 7  ;;  %v1543_v5 = vshrl.u32 %v3168_v14, 16  ;;  %v1546_v63 = vshll.u32 %v3168_v14, 16  ;;  %1672 = vst [vmem:[#allocation3 + $0x104] sm:$0xf] %v3168_v14  ;;  %v1372_v29 = vrot.slane %v3169_v57, 7 }
 0x1ce   : > { %1673 = vst [vmem:[#allocation3 + $0x110] sm:$0xf] %v3169_v57  ;;  %v1937_v2 = vsel %vm3894_vm7, %v1932_v55, %v4148_v10  ;;  %v1551_v22 = vshrl.u32 %v3169_v57, 16  ;;  %v1554_v60 = vshll.u32 %v3169_v57, 16  ;;  %v1898_v17 = vrot.slane %v1897_v4, 4  ;;  %v1734_v35 = vld [vmem:[#allocation3 + $0xd8] sm:$0xff] }
 0x1cf   : > { %v3074_v6 = vcombine.low %v1917_v33, %v1937_v2  ;;  %v1371_v39 = vrot.slane %v1370_v12, 4  ;;  %1420 = vst [vmem:[#allocation3 + $0xfc] sm:$0xe] %v1370_v12  ;;  %v1545_v26 = vrot.slane %v1543_v5, 7  ;;  %v1374_v30 = vrot.slane %v1372_v29, 4 }
 0x1d0   : > { %v1553_v62 = vrot.slane %v1551_v22, 7  ;;  %v1903_v59 = vsel %vm3894_vm7, %v1898_v17, %v1902_v1  ;;  %v1921_v49 = vor.u32 %v1920_v37, %v1902_v1  ;;  %v1926_v16 = vrot.slane %v1924_v54, 5  ;;  %v1732_v54 = vld [vmem:[#allocation3 + $0xcc] sm:$0x11] }
 0x1d1   : > { %2702 = vmatmul.mubr.bf16.gmra.mrb[44].mxu0 %v3074_v6  ;;  %v1548_v7 = vor.u32 %v1546_v63, %v1545_v26  ;;  %v1549_v10 = vrot.slane %v1545_v26, 4  ;;  %v1373_v24 = vsel %vm3662_vm12, %v1371_v39, %v1372_v29  ;;  %1422 = vst [vmem:[#allocation3 + $0x114] sm:$0x1] %v1374_v30  ;;  %v1955_v43 = vrot.slane %v1953_v52, 4  ;;  %v1736_v6 = vld [vmem:[#allocation3 + $0xe4] sm:$0xff] }
 0x1d2   : > { %1421 = vst [vmem:[#allocation3 + $0x108] sm:$0xf] %v1373_v24  ;;  %v1556_v15 = vor.u32 %v1554_v60, %v1553_v62  ;;  %v1558_v3 = vrot.slane %v1553_v62, 4  ;;  %v1922_v23 = vrot.slane %v1921_v49, 4  ;;  %2711 = vmatprep.mubr.bf16.mxu0 %v3353_v0  ;;  %v1956_v11 = vshll.u32 %v1723_v40, 16 }
 0x1d3   : > { %v1636_v25 = vsel %vm4130_vm10, %v1548_v7, %v1635_v8  ;;  %v1962_v19 = vshll.u32 %v1725_v51, 16  ;;  %v1976_v47 = vshrl.u32 %v1725_v51, 16  ;;  %v1939_v46 = vshrl.u32 %v1722_v42, 16  ;;  %v1738_v7 = vld [vmem:[#allocation3 + $0xf0] sm:$0x11] }
 0x1d4   : > { %1637 = vst [vmem:[#allocation3 + $0x100] sm:$0xf] %v1636_v25  ;;  %v1557_v53 = vsel %vm3458_vm3, %v1549_v10, %v1556_v15  ;;  %v1640_v38 = vsel %vm3475_vm6, %v1558_v3, %v1639_v20  ;;  %v1927_v48 = vsel %vm3894_vm7, %v1922_v23, %v1926_v16  ;;  %v1958_v13 = vrot.slane %v1956_v11, 5 }
 0x1d5   : > { %1638 = vst [vmem:[#allocation3 + $0x10c] sm:$0xf] %v1557_v53  ;;  %1641 = vst [vmem:[#allocation3 + $0x118] sm:$0x1] %v1640_v38  ;;  %v3073_v61 = vcombine.high %v1903_v59, %v1927_v48  ;;  %v3072_v58 = vcombine.low %v1903_v59, %v1927_v48  ;;  %v1964_v36 = vrot.slane %v1962_v19, 5  ;;  %v1978_v50 = vrot.slane %v1976_v47, 4 }
 0x1d6   : > { %v1959_v34 = vor.u32 %v1958_v13, %v1955_v43  ;;  %v1941_v21 = vrot.slane %v1939_v46, 4  ;;  %v1942_v40 = vshll.u32 %v1722_v42, 16  ;;  %v1948_v28 = vshll.u32 %v1724_v41, 16 }
 0x1d7   : > { %2588 = vmatprep.mubr.bf16.mxu1 %v3073_v61  ;;  %v1979_v18 = vor.u32 %v1978_v50, %v1964_v36  ;;  %v1966_v31 = vshrl.u32 %v1724_v41, 16  ;;  %v1987_v1 = vshrl.u32 %v1728_v32, 16  ;;  %v1990_v33 = vshll.u32 %v1728_v32, 16 }
 0x1d8   : > { %2589 = vmatmul.mubr.bf16.gmra.mrb[12].mxu1 %v3072_v58  ;;  %v1960_v14 = vrot.slane %v1959_v34, 4  ;;  %v1944_v57 = vrot.slane %v1942_v40, 5  ;;  %v1950_v37 = vrot.slane %v1948_v28, 5  ;;  %v1972_v52 = vshll.u32 %v1726_v56, 16 }
 0x1d9   : > { %v1980_v55 = vrot.slane %v1979_v18, 4  ;;  %v1968_v4 = vrot.slane %v1966_v31, 4  ;;  %v1989_v12 = vrot.slane %v1987_v1, 4  ;;  %v1992_v29 = vrot.slane %v1990_v33, 5 }
 0x1da   : > { %v1965_v5 = vsel %vm3894_vm7, %v1960_v14, %v1964_v36  ;;  %v1945_v63 = vor.u32 %v1944_v57, %v1941_v21  ;;  %v1996_v27 = vshll.u32 %v1730_v45, 16  ;;  %v2014_v60 = vshrl.u32 %v1730_v45, 16 }
 0x1db   : > { %v1985_v2 = vsel %vm3894_vm7, %v1980_v55, %v1984_v44  ;;  %v1969_v22 = vor.u32 %v1968_v4, %v1950_v37  ;;  %v2020_v17 = vshll.u32 %v1732_v54, 16  ;;  %v1993_v8 = vor.u32 %v1992_v29, %v1989_v12  ;;  %v1740_v23 = vld [vmem:[#allocation3 + $0xfc] sm:$0xff]  ;;  %v1731_v29 = vld [vmem:[#allocation3 + $0xc8] sm:$0xf] }
 0x1dc   : > { %v3077_v39 = vcombine.low %v1965_v5, %v1985_v2  ;;  %v1946_v26 = vrot.slane %v1945_v63, 4  ;;  %v1998_v30 = vrot.slane %v1996_v27, 5  ;;  %v1974_v59 = vrot.slane %v1972_v52, 5  ;;  %v1742_v11 = vld [vmem:[#allocation3 + $0x108] sm:$0xff]  ;;  %v1744_v18 = vld [vmem:[#allocation3 + $0x114] sm:$0x11] }
 0x1dd   : > { %v1970_v62 = vrot.slane %v1969_v22, 4  ;;  %v2016_v49 = vrot.slane %v2014_v60, 4  ;;  %v2035_v16 = vshrl.u32 %v1734_v35, 16  ;;  %v1994_v42 = vrot.slane %v1993_v8, 4 }
 0x1de   : > { %2712 = vmatmul.mubr.bf16.gmra.mrb[48].mxu0 %v3077_v39  ;;  %v1951_v51 = vsel %vm3894_vm7, %v1946_v26, %v1950_v37  ;;  %v2038_v10 = vshll.u32 %v1734_v35, 16  ;;  %v2044_v24 = vshll.u32 %v1736_v6, 16  ;;  %v2062_v3 = vshrl.u32 %v1736_v6, 16  ;;  %v1729_v35 = vld [vmem:[#allocation3 + $0xbc] sm:$0xf] }
 0x1df   : > { %v1975_v20 = vsel %vm3894_vm7, %v1970_v62, %v1974_v59  ;;  %v2017_v43 = vor.u32 %v2016_v49, %v1998_v30  ;;  %v2037_v15 = vrot.slane %v2035_v16, 4  ;;  %v2022_v47 = vrot.slane %v2020_v17, 5  ;;  %v1733_v62 = vld [vmem:[#allocation3 + $0xd4] sm:$0x1]  ;;  %v1737_v59 = vld [vmem:[#allocation3 + $0xec] sm:$0xf] }
 0x1e0   : > { %v3076_v25 = vcombine.high %v1951_v51, %v1975_v20  ;;  %v3075_v19 = vcombine.low %v1951_v51, %v1975_v20  ;;  %v2040_v41 = vrot.slane %v2038_v10, 5  ;;  %v2046_v53 = vrot.slane %v2044_v24, 5  ;;  %v1735_v51 = vld [vmem:[#allocation3 + $0xe0] sm:$0xf] }
 0x1e1   : > { %v2018_v46 = vrot.slane %v2017_v43, 4  ;;  %v2064_v38 = vrot.slane %v2062_v3, 4  ;;  %v2068_v48 = vshll.u32 %v1738_v7, 16  ;;  %v2083_v32 = vshrl.u32 %v1740_v23, 16 }
 0x1e2   : > { %2598 = vmatprep.mubr.bf16.mxu1 %v3076_v25  ;;  %v2041_v13 = vor.u32 %v2040_v41, %v2037_v15  ;;  %v2086_v61 = vshll.u32 %v1740_v23, 16  ;;  %v2092_v58 = vshll.u32 %v1742_v11, 16  ;;  %v1999_v36 = vsel %vm3894_vm7, %v1994_v42, %v1998_v30  ;;  %v1739_v25 = vld [vmem:[#allocation3 + $0xf8] sm:$0x1]  ;;  %v1743_v41 = vld [vmem:[#allocation3 + $0x110] sm:$0xf] }
 0x1e3   : > { %2599 = vmatmul.mubr.bf16.gmra.mrb[16].mxu1 %v3075_v19  ;;  %v2023_v50 = vsel %vm3894_vm7, %v2018_v46, %v2022_v47  ;;  %v2065_v34 = vor.u32 %v2064_v38, %v2046_v53  ;;  %v2110_v56 = vshrl.u32 %v1742_v11, 16  ;;  %v2070_v28 = vrot.slane %v2068_v48, 5 }
 0x1e4   : > { %v3079_v21 = vcombine.high %v1999_v36, %v2023_v50  ;;  %v2042_v40 = vrot.slane %v2041_v13, 4  ;;  %v2085_v44 = vrot.slane %v2083_v32, 4  ;;  %v2088_v45 = vrot.slane %v2086_v61, 5  ;;  %v1741_v13 = vld [vmem:[#allocation3 + $0x104] sm:$0xf] }
 0x1e5   : > { %v2066_v31 = vrot.slane %v2065_v34, 4  ;;  %v2094_v1 = vrot.slane %v2092_v58, 5  ;;  %v2112_v14 = vrot.slane %v2110_v56, 4  ;;  %v3078_v57 = vcombine.low %v1999_v36, %v2023_v50 }
 0x1e6   : > { %2608 = vmatprep.mubr.bf16.mxu1 %v3079_v21  ;;  %v2047_v37 = vsel %vm3894_vm7, %v2042_v40, %v2046_v53  ;;  %v2089_v33 = vor.u32 %v2088_v45, %v2085_v44  ;;  %v2116_v4 = vshll.u32 %v1744_v18, 16  ;;  %v2010_v2 = vshll.u32 %v1731_v29, 16  ;;  %v1745_v45 = vld [vmem:[#allocation3 + $0x11c] sm:$0x1] }
 0x1e7   : > { %v2071_v54 = vsel %vm3894_vm7, %v2066_v31, %v2070_v28  ;;  %v2113_v55 = vor.u32 %v2112_v14, %v2094_v1  ;;  %v2024_v22 = vshrl.u32 %v1731_v29, 16  ;;  %v2001_v39 = vshrl.u32 %v1729_v35, 16 }
 0x1e8   : > { %v3082_v52 = vcombine.high %v2047_v37, %v2071_v54  ;;  %v2090_v5 = vrot.slane %v2089_v33, 4  ;;  %v2118_v63 = vrot.slane %v2116_v4, 5  ;;  %v3081_v60 = vcombine.low %v2047_v37, %v2071_v54 }
 0x1e9   : > { %v2114_v12 = vrot.slane %v2113_v55, 4  ;;  %v2004_v26 = vshll.u32 %v1729_v35, 16  ;;  %v2012_v8 = vrot.slane %v2010_v2, 5  ;;  %v2026_v30 = vrot.slane %v2024_v22, 4 }
 0x1ea   : > { %v2095_v17 = vsel %vm3894_vm7, %v2090_v5, %v2094_v1  ;;  %v2003_v49 = vrot.slane %v2001_v39, 4  ;;  %v2030_v7 = vshll.u32 %v1733_v62, 16  ;;  %v2058_v10 = vshll.u32 %v1737_v59, 16 }
 0x1eb   : > { %2609 = vmatmul.mubr.bf16.gmra.mrb[20].mxu1 %v3078_v57  ;;  %v2119_v27 = vsel %vm3894_vm7, %v2114_v12, %v2118_v63  ;;  %v2006_v16 = vrot.slane %v2004_v26, 5  ;;  %v2027_v42 = vor.u32 %v2026_v30, %v2012_v8  ;;  %v2072_v24 = vshrl.u32 %v1737_v59, 16 }
 0x1ec   : > { %2618 = vmatprep.mubr.bf16.mxu1 %v3082_v52  ;;  %v3085_v6 = vcombine.high %v2095_v17, %v2119_v27  ;;  %v3084_v20 = vcombine.low %v2095_v17, %v2119_v27  ;;  %v2049_v15 = vshrl.u32 %v1735_v51, 16  ;;  %v2052_v3 = vshll.u32 %v1735_v51, 16 }
 0x1ed   : > { %v2007_v43 = vor.u32 %v2006_v16, %v2003_v49  ;;  %v2028_v23 = vrot.slane %v2027_v42, 4  ;;  %v2032_v11 = vrot.slane %v2030_v7, 5  ;;  %v2060_v19 = vrot.slane %v2058_v10, 5 }
 0x1ee   : > { %v2074_v47 = vrot.slane %v2072_v24, 4  ;;  %v2051_v53 = vrot.slane %v2049_v15, 4  ;;  %v2054_v38 = vrot.slane %v2052_v3, 5  ;;  %v2078_v48 = vshll.u32 %v1739_v25, 16 }
 0x1ef   : > { %v2008_v46 = vrot.slane %v2007_v43, 4  ;;  %v2033_v32 = vsel %vm3894_vm7, %v2028_v23, %v2032_v11  ;;  %v2106_v58 = vshll.u32 %v1743_v41, 16  ;;  %v2120_v36 = vshrl.u32 %v1743_v41, 16 }
 0x1f0   : > { %v2075_v61 = vor.u32 %v2074_v47, %v2060_v19  ;;  %v2055_v34 = vor.u32 %v2054_v38, %v2051_v53  ;;  %v2097_v56 = vshrl.u32 %v1741_v13, 16  ;;  %v2100_v21 = vshll.u32 %v1741_v13, 16 }
 0x1f1   : > { %v2013_v50 = vsel %vm3894_vm7, %v2008_v46, %v2012_v8  ;;  %v2080_v18 = vrot.slane %v2078_v48, 5  ;;  %v2108_v44 = vrot.slane %v2106_v58, 5  ;;  %v2122_v31 = vrot.slane %v2120_v36, 4 }
 0x1f2   : > { %v3080_v40 = vcombine.low %v2013_v50, %v2033_v32  ;;  %v2076_v28 = vrot.slane %v2075_v61, 4  ;;  %v2056_v1 = vrot.slane %v2055_v34, 4  ;;  %v2099_v14 = vrot.slane %v2097_v56, 4 }
 0x1f3   : > { %2619 = vmatmul.mubr.bf16.gmra.mrb[24].mxu1 %v3081_v60  ;;  %v2102_v57 = vrot.slane %v2100_v21, 5  ;;  %v2123_v54 = vor.u32 %v2122_v31, %v2108_v44  ;;  %v2126_v33 = vshll.u32 %v1745_v45, 16  ;;  %v2180_v2 = vlaneseq }
 0x1f4   : > { %2628 = vmatprep.mubr.bf16.mxu1 %v3085_v6  ;;  %v2081_v37 = vsel %vm3894_vm7, %v2076_v28, %v2080_v18  ;;  %v2061_v55 = vsel %vm3894_vm7, %v2056_v1, %v2060_v19 }
 0x1f5   : > { %v2103_v4 = vor.u32 %v2102_v57, %v2099_v14  ;;  %v3083_v52 = vcombine.low %v2061_v55, %v2081_v37  ;;  %v2124_v12 = vrot.slane %v2123_v54, 4  ;;  %v2128_v5 = vrot.slane %v2126_v33, 5 }
 0x1f6   : > { %v2181_v39 = vshrl.u32 %v2180_v2, 7 }
 0x1f7   : > { %v2104_v63 = vrot.slane %v2103_v4, 4  ;;  %v2129_v29 = vsel %vm3894_vm7, %v2124_v12, %v2128_v5 }
 0x1f8   : > { %v2182_v26 = vsub.s32 0, %v2181_v39  ;;  %v2186_v8 = vsub.s32 1, %v2181_v39 }
 0x1f9   : > { %v2109_v27 = vsel %vm3894_vm7, %v2104_v63, %v2108_v44 }
 0x1fa   : > { %v3086_v35 = vcombine.low %v2109_v27, %v2129_v29 }
 0x1fb   : > { %2629 = vmatmul.mubr.bf16.gmra.mrb[28].mxu1 %v3084_v20 }
 0x1fc   : > { %2721 = vmatprep.mubr.bf16.mxu1 %v3353_v0 }
 0x203   : > { %2722 = vmatmul.mubr.bf16.vlgmr.msra.gmra.mrb[20].mxu1 %v3080_v40 }
 0x204   : > { %2731 = vmatprep.mubr.bf16.mxu1 %v3353_v0 }
 0x20b   : > { %2732 = vmatmul.mubr.bf16.gmra.mrb[24].mxu1 %v3083_v52 }
 0x20c   : > { %2741 = vmatprep.mubr.bf16.mxu1 %v3353_v0  ;;  %v2178_v0 = vld [vmem:[%s4476_s4] sm:$0x3] }
 0x20d   : > { %v4363_v30 = vrot.slane %v2178_v0, %v2182_v26  ;;  %v4365_v62 = vrot.slane %v2178_v0, %v2186_v8 }
 0x213   : > { %2742 = vmatmul.mubr.bf16.gmra.mrb[28].mxu1 %v3086_v35 }
 0x271   : > { %v2673_v22 = vpop.f32.mrb[32].mxu0 }
 0x272   : > { %v2675_v60 = vpop.f32.mrb[33].mxu0 }
 0x273   : > { %v2677_v17 = vpop.f32.mrb[34].mxu0 }
 0x274   : > { %v2679_v6 = vpop.f32.mrb[35].mxu0 }
 0x27f   : > { %v2560_v9 = vpop.f32.mrb[0].mxu1 }
 0x280   : > { %v2561_v59 = vadd.f32 %v2560_v9, %v4363_v30  ;;  %v2562_v49 = vpop.f32.mrb[1].mxu1 }
 0x281   : > { %v2563_v16 = vadd.f32 %v2562_v49, %v4365_v62  ;;  %v2564_v51 = vpop.f32.mrb[2].mxu1 }
 0x282   : > { %v2674_v42 = vadd.f32 %v2673_v22, %v2561_v59  ;;  %v2565_v7 = vadd.f32 %v2564_v51, %v4363_v30  ;;  %v2566_v10 = vpop.f32.mrb[3].mxu1 }
 0x283   : > { %v2676_v24 = vadd.f32 %v2675_v60, %v2563_v16  ;;  %v2567_v20 = vadd.f32 %v2566_v10, %v4365_v62 }
 0x284   : > { %v2752_v43 = vmax.f32 %v2674_v42, 0.0  ;;  %v2678_v15 = vadd.f32 %v2677_v17, %v2565_v7 }
 0x285   : > { %v2753_v3 = vmax.f32 %v2676_v24, 0.0  ;;  %v2680_v23 = vadd.f32 %v2679_v6, %v2567_v20 }
 0x286   : > { %v2754_v25 = vmax.f32 %v2678_v15, 0.0 }
 0x287   : > { %v2683_v11 = vpop.f32.mrb[36].mxu0  ;;  %v2784_v19 = vmax.f32 %v2752_v43, %v2753_v3  ;;  %v2755_v41 = vmax.f32 %v2680_v23, 0.0 }
 0x288   : > { %v2685_v47 = vpop.f32.mrb[37].mxu0 }
 0x289   : > { %v2687_v46 = vpop.f32.mrb[38].mxu0  ;;  %v2808_v53 = vrot.slane %v2784_v19, 1  ;;  %v2785_v38 = vmax.f32 %v2754_v25, %v2755_v41 }
 0x28a   : > { %v2689_v48 = vpop.f32.mrb[39].mxu0 }
 0x28b   : > { %v2824_v13 = vmax.f32 %v2784_v19, %v2808_v53  ;;  %v2872_v32 = vrot.slane %v2785_v38, 1 }
 0x28d   : > { %v2570_v61 = vpop.f32.mrb[4].mxu1  ;;  %2832 = vst [vmem:[%s4375_s15] sm:$0x1] %v2824_v13  ;;  %2840 = vst [vmem:[%s4375_s15 - $0x1] sm:$0x4] %v2824_v13  ;;  %v2888_v58 = vmax.f32 %v2785_v38, %v2872_v32 }
 0x28e   : > { %2848 = vst [vmem:[%s4375_s15 - $0x2] sm:$0x10] %v2824_v13  ;;  %2856 = vst [vmem:[%s4375_s15 - $0x3] sm:$0x40] %v2824_v13  ;;  %v2571_v36 = vadd.f32 %v2570_v61, %v4363_v30  ;;  %v2572_v50 = vpop.f32.mrb[5].mxu1 }
 0x28f   : > { %v2573_v34 = vadd.f32 %v2572_v50, %v4365_v62  ;;  %v2574_v56 = vpop.f32.mrb[6].mxu1  ;;  %2896 = vst [vmem:[%s4375_s15 + $0x4] sm:$0x1] %v2888_v58  ;;  %2904 = vst [vmem:[%s4375_s15 + $0x3] sm:$0x4] %v2888_v58 }
 0x290   : > { %2912 = vst [vmem:[%s4375_s15 + $0x2] sm:$0x10] %v2888_v58  ;;  %2920 = vst [vmem:[%s4375_s15 + $0x1] sm:$0x40] %v2888_v58  ;;  %v2684_v21 = vadd.f32 %v2683_v11, %v2571_v36  ;;  %v2575_v40 = vadd.f32 %v2574_v56, %v4363_v30  ;;  %v2576_v28 = vpop.f32.mrb[7].mxu1 }
 0x291   : > { %v2686_v18 = vadd.f32 %v2685_v47, %v2573_v34  ;;  %v2577_v44 = vadd.f32 %v2576_v28, %v4365_v62 }
 0x292   : > { %v2756_v31 = vmax.f32 %v2684_v21, 0.0  ;;  %v2688_v45 = vadd.f32 %v2687_v46, %v2575_v40 }
 0x293   : > { %v2757_v1 = vmax.f32 %v2686_v18, 0.0  ;;  %v2690_v14 = vadd.f32 %v2689_v48, %v2577_v44 }
 0x294   : > { %v2758_v57 = vmax.f32 %v2688_v45, 0.0 }
 0x295   : > { %v2786_v37 = vmax.f32 %v2756_v31, %v2757_v1  ;;  %v2759_v54 = vmax.f32 %v2690_v14, 0.0  ;;  %v2693_v33 = vpop.f32.mrb[40].mxu0 }
 0x296   : > { %v2695_v4 = vpop.f32.mrb[41].mxu0 }
 0x297   : > { %v2809_v55 = vrot.slane %v2786_v37, 1  ;;  %v2787_v52 = vmax.f32 %v2758_v57, %v2759_v54  ;;  %v2697_v12 = vpop.f32.mrb[42].mxu0 }
 0x298   : > { %v2699_v29 = vpop.f32.mrb[43].mxu0 }
 0x299   : > { %v2825_v5 = vmax.f32 %v2786_v37, %v2809_v55  ;;  %v2873_v63 = vrot.slane %v2787_v52, 1 }
 0x29b   : > { %2833 = vst [vmem:[%s4375_s15 + $0x8] sm:$0x1] %v2825_v5  ;;  %2841 = vst [vmem:[%s4375_s15 + $0x7] sm:$0x4] %v2825_v5  ;;  %v2889_v27 = vmax.f32 %v2787_v52, %v2873_v63  ;;  %v2580_v35 = vpop.f32.mrb[8].mxu1 }
 0x29c   : > { %2849 = vst [vmem:[%s4375_s15 + $0x6] sm:$0x10] %v2825_v5  ;;  %2857 = vst [vmem:[%s4375_s15 + $0x5] sm:$0x40] %v2825_v5  ;;  %v2581_v2 = vadd.f32 %v2580_v35, %v4363_v30  ;;  %v2582_v22 = vpop.f32.mrb[9].mxu1 }
 0x29d   : > { %2897 = vst [vmem:[%s4375_s15 + $0xc] sm:$0x1] %v2889_v27  ;;  %2905 = vst [vmem:[%s4375_s15 + $0xb] sm:$0x4] %v2889_v27  ;;  %v2583_v60 = vadd.f32 %v2582_v22, %v4365_v62  ;;  %v2584_v17 = vpop.f32.mrb[10].mxu1 }
 0x29e   : > { %2913 = vst [vmem:[%s4375_s15 + $0xa] sm:$0x10] %v2889_v27  ;;  %2921 = vst [vmem:[%s4375_s15 + $0x9] sm:$0x40] %v2889_v27  ;;  %v2694_v6 = vadd.f32 %v2693_v33, %v2581_v2  ;;  %v2585_v39 = vadd.f32 %v2584_v17, %v4363_v30  ;;  %v2586_v26 = vpop.f32.mrb[11].mxu1 }
 0x29f   : > { %v2696_v0 = vadd.f32 %v2695_v4, %v2583_v60  ;;  %v2587_v8 = vadd.f32 %v2586_v26, %v4365_v62 }
 0x2a0   : > { %v2760_v9 = vmax.f32 %v2694_v6, 0.0  ;;  %v2698_v59 = vadd.f32 %v2697_v12, %v2585_v39 }
 0x2a1   : > { %v2761_v49 = vmax.f32 %v2696_v0, 0.0  ;;  %v2700_v16 = vadd.f32 %v2699_v29, %v2587_v8 }
 0x2a2   : > { %v2762_v51 = vmax.f32 %v2698_v59, 0.0 }
 0x2a3   : > { %v2788_v42 = vmax.f32 %v2760_v9, %v2761_v49  ;;  %v2763_v7 = vmax.f32 %v2700_v16, 0.0 }
 0x2a4   : > { %v2703_v10 = vpop.f32.mrb[44].mxu0 }
 0x2a5   : > { %v2810_v24 = vrot.slane %v2788_v42, 1  ;;  %v2705_v20 = vpop.f32.mrb[45].mxu0  ;;  %v2789_v43 = vmax.f32 %v2762_v51, %v2763_v7 }
 0x2a6   : > { %v2707_v15 = vpop.f32.mrb[46].mxu0 }
 0x2a7   : > { %v2826_v3 = vmax.f32 %v2788_v42, %v2810_v24  ;;  %v2874_v23 = vrot.slane %v2789_v43, 1  ;;  %v2709_v11 = vpop.f32.mrb[47].mxu0 }
 0x2a9   : > { %2834 = vst [vmem:[%s4375_s15 + $0x10] sm:$0x1] %v2826_v3  ;;  %2842 = vst [vmem:[%s4375_s15 + $0xf] sm:$0x4] %v2826_v3  ;;  %v2890_v25 = vmax.f32 %v2789_v43, %v2874_v23 }
 0x2aa   : > { %2850 = vst [vmem:[%s4375_s15 + $0xe] sm:$0x10] %v2826_v3  ;;  %2858 = vst [vmem:[%s4375_s15 + $0xd] sm:$0x40] %v2826_v3 }
 0x2ab   : > { %2898 = vst [vmem:[%s4375_s15 + $0x14] sm:$0x1] %v2890_v25  ;;  %2906 = vst [vmem:[%s4375_s15 + $0x13] sm:$0x4] %v2890_v25  ;;  %v2590_v19 = vpop.f32.mrb[12].mxu1 }
 0x2ac   : > { %2914 = vst [vmem:[%s4375_s15 + $0x12] sm:$0x10] %v2890_v25  ;;  %2922 = vst [vmem:[%s4375_s15 + $0x11] sm:$0x40] %v2890_v25  ;;  %v2591_v47 = vadd.f32 %v2590_v19, %v4363_v30  ;;  %v2592_v41 = vpop.f32.mrb[13].mxu1 }
 0x2ad   : > { %v2593_v46 = vadd.f32 %v2592_v41, %v4365_v62  ;;  %v2594_v53 = vpop.f32.mrb[14].mxu1 }
 0x2ae   : > { %v2704_v38 = vadd.f32 %v2703_v10, %v2591_v47  ;;  %v2595_v48 = vadd.f32 %v2594_v53, %v4363_v30  ;;  %v2596_v13 = vpop.f32.mrb[15].mxu1 }
 0x2af   : > { %v2706_v32 = vadd.f32 %v2705_v20, %v2593_v46  ;;  %v2597_v61 = vadd.f32 %v2596_v13, %v4365_v62 }
 0x2b0   : > { %v2764_v58 = vmax.f32 %v2704_v38, 0.0  ;;  %v2708_v36 = vadd.f32 %v2707_v15, %v2595_v48 }
 0x2b1   : > { %v2713_v50 = vpop.f32.mrb[48].mxu0  ;;  %v2765_v34 = vmax.f32 %v2706_v32, 0.0  ;;  %v2710_v56 = vadd.f32 %v2709_v11, %v2597_v61 }
 0x2b2   : > { %v2715_v21 = vpop.f32.mrb[49].mxu0  ;;  %v2766_v40 = vmax.f32 %v2708_v36, 0.0 }
 0x2b3   : > { %v2790_v28 = vmax.f32 %v2764_v58, %v2765_v34  ;;  %v2717_v18 = vpop.f32.mrb[50].mxu0  ;;  %v2767_v44 = vmax.f32 %v2710_v56, 0.0 }
 0x2b4   : > { %v2719_v31 = vpop.f32.mrb[51].mxu0 }
 0x2b5   : > { %v2811_v45 = vrot.slane %v2790_v28, 1  ;;  %v2791_v1 = vmax.f32 %v2766_v40, %v2767_v44 }
 0x2b6   : > { %v2600_v14 = vpop.f32.mrb[16].mxu1 }
 0x2b7   : > { %v2827_v57 = vmax.f32 %v2790_v28, %v2811_v45  ;;  %v2875_v37 = vrot.slane %v2791_v1, 1  ;;  %v2601_v54 = vadd.f32 %v2600_v14, %v4363_v30  ;;  %v2602_v33 = vpop.f32.mrb[17].mxu1 }
 0x2b8   : > { %v2603_v55 = vadd.f32 %v2602_v33, %v4365_v62  ;;  %v2604_v4 = vpop.f32.mrb[18].mxu1 }
 0x2b9   : > { %2835 = vst [vmem:[%s4375_s15 + $0x18] sm:$0x1] %v2827_v57  ;;  %2843 = vst [vmem:[%s4375_s15 + $0x17] sm:$0x4] %v2827_v57  ;;  %v2891_v52 = vmax.f32 %v2791_v1, %v2875_v37  ;;  %v2714_v12 = vadd.f32 %v2713_v50, %v2601_v54  ;;  %v2605_v5 = vadd.f32 %v2604_v4, %v4363_v30  ;;  %v2606_v63 = vpop.f32.mrb[19].mxu1 }
 0x2ba   : > { %2851 = vst [vmem:[%s4375_s15 + $0x16] sm:$0x10] %v2827_v57  ;;  %2859 = vst [vmem:[%s4375_s15 + $0x15] sm:$0x40] %v2827_v57  ;;  %v2716_v29 = vadd.f32 %v2715_v21, %v2603_v55  ;;  %v2607_v27 = vadd.f32 %v2606_v63, %v4365_v62 }
 0x2bb   : > { %2899 = vst [vmem:[%s4375_s15 + $0x1c] sm:$0x1] %v2891_v52  ;;  %2907 = vst [vmem:[%s4375_s15 + $0x1b] sm:$0x4] %v2891_v52  ;;  %v2768_v35 = vmax.f32 %v2714_v12, 0.0  ;;  %v2718_v2 = vadd.f32 %v2717_v18, %v2605_v5 }
 0x2bc   : > { %2915 = vst [vmem:[%s4375_s15 + $0x1a] sm:$0x10] %v2891_v52  ;;  %2923 = vst [vmem:[%s4375_s15 + $0x19] sm:$0x40] %v2891_v52  ;;  %v2769_v22 = vmax.f32 %v2716_v29, 0.0  ;;  %v2720_v60 = vadd.f32 %v2719_v31, %v2607_v27 }
 0x2bd   : > { %v2770_v17 = vmax.f32 %v2718_v2, 0.0 }
 0x2be   : > { %v2792_v6 = vmax.f32 %v2768_v35, %v2769_v22  ;;  %v2771_v39 = vmax.f32 %v2720_v60, 0.0 }
 0x2c0   : > { %v2812_v26 = vrot.slane %v2792_v6, 1  ;;  %v2793_v0 = vmax.f32 %v2770_v17, %v2771_v39 }
 0x2c2   : > { %v2828_v8 = vmax.f32 %v2792_v6, %v2812_v26  ;;  %v2876_v9 = vrot.slane %v2793_v0, 1 }
 0x2c4   : > { %2836 = vst [vmem:[%s4375_s15 + $0x20] sm:$0x1] %v2828_v8  ;;  %2844 = vst [vmem:[%s4375_s15 + $0x1f] sm:$0x4] %v2828_v8  ;;  %v2892_v59 = vmax.f32 %v2793_v0, %v2876_v9 }
 0x2c5   : > { %2852 = vst [vmem:[%s4375_s15 + $0x1e] sm:$0x10] %v2828_v8  ;;  %2860 = vst [vmem:[%s4375_s15 + $0x1d] sm:$0x40] %v2828_v8 }
 0x2c6   : > { %2900 = vst [vmem:[%s4375_s15 + $0x24] sm:$0x1] %v2892_v59  ;;  %2908 = vst [vmem:[%s4375_s15 + $0x23] sm:$0x4] %v2892_v59 }
 0x2c7   : > { %2916 = vst [vmem:[%s4375_s15 + $0x22] sm:$0x10] %v2892_v59  ;;  %2924 = vst [vmem:[%s4375_s15 + $0x21] sm:$0x40] %v2892_v59 }
 0x2d6   : > { %v2723_v49 = vpop.f32.mrb[20].mxu1 }
 0x2d7   : > { %v3226_v16 = vadd.f32 %v2723_v49, %v4363_v30  ;;  %v2725_v51 = vpop.f32.mrb[21].mxu1 }
 0x2d8   : > { %v3227_v42 = vadd.f32 %v2725_v51, %v4365_v62  ;;  %v2727_v7 = vpop.f32.mrb[22].mxu1 }
 0x2d9   : > { %v2772_v10 = vmax.f32 %v3226_v16, 0.0  ;;  %v3228_v24 = vadd.f32 %v2727_v7, %v4363_v30  ;;  %v2729_v20 = vpop.f32.mrb[23].mxu1 }
 0x2da   : > { %v2773_v43 = vmax.f32 %v3227_v42, 0.0  ;;  %v3229_v15 = vadd.f32 %v2729_v20, %v4365_v62 }
 0x2db   : > { %v2774_v3 = vmax.f32 %v3228_v24, 0.0 }
 0x2dc   : > { %v2794_v23 = vmax.f32 %v2772_v10, %v2773_v43  ;;  %v2775_v11 = vmax.f32 %v3229_v15, 0.0 }
 0x2de   : > { %v2813_v25 = vrot.slane %v2794_v23, 1  ;;  %v2795_v19 = vmax.f32 %v2774_v3, %v2775_v11  ;;  %v2733_v47 = vpop.f32.mrb[24].mxu1 }
 0x2df   : > { %v3230_v41 = vadd.f32 %v2733_v47, %v4363_v30  ;;  %v2735_v46 = vpop.f32.mrb[25].mxu1 }
 0x2e0   : > { %v2829_v53 = vmax.f32 %v2794_v23, %v2813_v25  ;;  %v2877_v38 = vrot.slane %v2795_v19, 1  ;;  %v3231_v48 = vadd.f32 %v2735_v46, %v4365_v62  ;;  %v2737_v13 = vpop.f32.mrb[26].mxu1 }
 0x2e1   : > { %v2776_v32 = vmax.f32 %v3230_v41, 0.0  ;;  %v3232_v61 = vadd.f32 %v2737_v13, %v4363_v30  ;;  %v2739_v58 = vpop.f32.mrb[27].mxu1 }
 0x2e2   : > { %2837 = vst [vmem:[%s4375_s15 + $0x28] sm:$0x1] %v2829_v53  ;;  %2845 = vst [vmem:[%s4375_s15 + $0x27] sm:$0x4] %v2829_v53  ;;  %v2893_v36 = vmax.f32 %v2795_v19, %v2877_v38  ;;  %v2777_v50 = vmax.f32 %v3231_v48, 0.0  ;;  %v3233_v34 = vadd.f32 %v2739_v58, %v4365_v62 }
 0x2e3   : > { %2853 = vst [vmem:[%s4375_s15 + $0x26] sm:$0x10] %v2829_v53  ;;  %2861 = vst [vmem:[%s4375_s15 + $0x25] sm:$0x40] %v2829_v53  ;;  %v2778_v56 = vmax.f32 %v3232_v61, 0.0 }
 0x2e4   : > { %2901 = vst [vmem:[%s4375_s15 + $0x2c] sm:$0x1] %v2893_v36  ;;  %2909 = vst [vmem:[%s4375_s15 + $0x2b] sm:$0x4] %v2893_v36  ;;  %v2796_v21 = vmax.f32 %v2776_v32, %v2777_v50  ;;  %v2779_v40 = vmax.f32 %v3233_v34, 0.0 }
 0x2e5   : > { %2917 = vst [vmem:[%s4375_s15 + $0x2a] sm:$0x10] %v2893_v36  ;;  %2925 = vst [vmem:[%s4375_s15 + $0x29] sm:$0x40] %v2893_v36 }
 0x2e6   : > { %v2814_v28 = vrot.slane %v2796_v21, 1  ;;  %v2797_v18 = vmax.f32 %v2778_v56, %v2779_v40  ;;  %v2743_v44 = vpop.f32.mrb[28].mxu1 }
 0x2e7   : > { %v3234_v31 = vadd.f32 %v2743_v44, %v4363_v30  ;;  %v2745_v45 = vpop.f32.mrb[29].mxu1 }
 0x2e8   : > { %v2830_v1 = vmax.f32 %v2796_v21, %v2814_v28  ;;  %v2878_v14 = vrot.slane %v2797_v18, 1  ;;  %v3235_v57 = vadd.f32 %v2745_v45, %v4365_v62  ;;  %v2747_v37 = vpop.f32.mrb[30].mxu1 }
 0x2e9   : > { %v2780_v54 = vmax.f32 %v3234_v31, 0.0  ;;  %v3236_v33 = vadd.f32 %v2747_v37, %v4363_v30  ;;  %v2749_v55 = vpop.f32.mrb[31].mxu1 }
 0x2ea   : > { %2838 = vst [vmem:[%s4375_s15 + $0x30] sm:$0x1] %v2830_v1  ;;  %2846 = vst [vmem:[%s4375_s15 + $0x2f] sm:$0x4] %v2830_v1  ;;  %v2894_v4 = vmax.f32 %v2797_v18, %v2878_v14  ;;  %v2781_v52 = vmax.f32 %v3235_v57, 0.0  ;;  %v3237_v12 = vadd.f32 %v2749_v55, %v4365_v62 }
 0x2eb   : > { %2854 = vst [vmem:[%s4375_s15 + $0x2e] sm:$0x10] %v2830_v1  ;;  %2862 = vst [vmem:[%s4375_s15 + $0x2d] sm:$0x40] %v2830_v1  ;;  %v2782_v5 = vmax.f32 %v3236_v33, 0.0 }
 0x2ec   : > { %2902 = vst [vmem:[%s4375_s15 + $0x34] sm:$0x1] %v2894_v4  ;;  %2910 = vst [vmem:[%s4375_s15 + $0x33] sm:$0x4] %v2894_v4  ;;  %v2798_v30 = vmax.f32 %v2780_v54, %v2781_v52  ;;  %v2783_v63 = vmax.f32 %v3237_v12, 0.0 }
 0x2ed   : > { %2918 = vst [vmem:[%s4375_s15 + $0x32] sm:$0x10] %v2894_v4  ;;  %2926 = vst [vmem:[%s4375_s15 + $0x31] sm:$0x40] %v2894_v4 }
 0x2ee   : > { %v2815_v29 = vrot.slane %v2798_v30, 1  ;;  %v2799_v27 = vmax.f32 %v2782_v5, %v2783_v63 }
 0x2f0   : > { %v2831_v35 = vmax.f32 %v2798_v30, %v2815_v29  ;;  %v2879_v2 = vrot.slane %v2799_v27, 1 }
 0x2f2   : > { %2839 = vst [vmem:[%s4375_s15 + $0x38] sm:$0x1] %v2831_v35  ;;  %2847 = vst [vmem:[%s4375_s15 + $0x37] sm:$0x4] %v2831_v35  ;;  %v2895_v62 = vmax.f32 %v2799_v27, %v2879_v2 }
 0x2f3   : > { %2855 = vst [vmem:[%s4375_s15 + $0x36] sm:$0x10] %v2831_v35  ;;  %2863 = vst [vmem:[%s4375_s15 + $0x35] sm:$0x40] %v2831_v35 }
 0x2f4   : > { %2903 = vst [vmem:[%s4375_s15 + $0x3c] sm:$0x1] %v2895_v62  ;;  %2911 = vst [vmem:[%s4375_s15 + $0x3b] sm:$0x4] %v2895_v62 }
 0x2f5   : > { %2919 = vst [vmem:[%s4375_s15 + $0x3a] sm:$0x10] %v2895_v62  ;;  %2927 = vst [vmem:[%s4375_s15 + $0x39] sm:$0x40] %v2895_v62 }
 0x2f6 PF: > { %s15_s18 = sadd.s32 1, %s3351_s18  }
 0x2f7   : > { %p12_p4 = scmp.ge.s32.totalorder %s15_s18, 4  }
 0x2f9   :  { %14 = sbr.rel (!%p12_p4) target bundleno = 1 (0x1), region = 70 }

</bundles_post_ra>
